<compile_context>
chip_gen: v7x
topology: tpu7x:2x2x1
jax: 0.10.0
libtpu: 0.0.40
codegen_flags: <defaults>
</compile_context>

<pallas_src>
import functools
import math

import jax
import jax.numpy as jnp
from jax import lax
from jax.experimental import pallas as pl
from jax.experimental.pallas import tpu as pltpu

GN_EPS = 1e-5
MXU_DTYPE = jnp.bfloat16    # matmul operand dtype; accumulation is always f32


# ---------------------------------------------------------------------------
# BlockSpec helpers
# ---------------------------------------------------------------------------
def _batch_spec(shape):
    """Tile the leading batch axis only; one batch element per grid step."""
    nd = len(shape)
    return pl.BlockSpec((1,) + tuple(shape[1:]), lambda b: (b,) + (0,) * (nd - 1))


def _resident_spec(shape):
    """Whole array resident in VMEM for every grid step (weights / masks)."""
    nd = len(shape)
    return pl.BlockSpec(tuple(shape), lambda b: (0,) * nd)


# ---------------------------------------------------------------------------
# In-kernel helpers.  Activations live as (C, HW): channels on sublanes,
# flattened spatial (H*W) on lanes (lane-dense: HW >= 128).
# ---------------------------------------------------------------------------
def _swish(y):
    # y * sigmoid(y); divide goes to the EUP (approx reciprocal), exp on EUP.
    return y * pl.reciprocal(1.0 + jnp.exp(-y), approx=True)


def _group_norm(x, bd_ref, bdt_ref, gamma_ref, beta_ref, *, swish):
    """GroupNorm (+ optional Swish) on x: (C, HW).  PyTorch semantics, f32 stats.

    bd_ref:  (2G, 2C) block-diagonal group selector (one dot for sum & sum-sq)
    bdt_ref: (2C, 2G) its transpose pre-scaled by 1/(group_size*HW)
    """
    C = x.shape[0]
    xx = jnp.concatenate([x, x * x], axis=0)                                # (2C, HW)
    stats = jnp.sum(xx, axis=-1, keepdims=True)                             # (2C, 1)
    gstats = jnp.dot(bd_ref[...], stats, preferred_element_type=jnp.float32)   # (2G, 1)
    cstats = jnp.dot(bdt_ref[...], gstats, preferred_element_type=jnp.float32) # (2C, 1)
    mean = cstats[0:C, :]
    ex2 = cstats[C:2 * C, :]
    var = ex2 - mean * mean                                                 # biased, like torch
    inv = lax.rsqrt(var + GN_EPS)
    y = (x - mean) * (inv * gamma_ref[...]) + beta_ref[...]
    if swish:
        y = _swish(y)
    return y


def _conv3x3(h, w_ref, b_ref, mask_ref, *, shifts, HW):
    """3x3 'same' conv as ONE bf16 matmul over a stacked shifted-patch block.

    h:        (Cin, HW) f32 activations
    w_ref:    (Cout, 9*Cin) bf16; column (kh*3+kw)*Cin + cin = weight[:, cin, kh, kw]
    b_ref:    (Cout, 1) f32
    mask_ref: (9, HW) f32; row k zeroes positions whose tap k would read
              outside the image (row/column wrap of the circular roll).
    """
    patches = []
    for k, off in enumerate(shifts):
        if off == 0:                         # center tap: no shift, never OOB
            p = h
        else:
            p = pltpu.roll(h, shift=(-off) % HW, axis=1)      # XLU lane rotation
            p = p * mask_ref[k:k + 1, :]                      # kill wrap-around
        patches.append(p)
    block = jnp.concatenate(patches, axis=0).astype(MXU_DTYPE)              # (9*Cin, HW)
    return jnp.dot(w_ref[...], block, preferred_element_type=jnp.float32) + b_ref[...]


def _attention(y, g_ref, be_ref, bd_ref, bdt_ref, wqkv_ref, wout_ref, bout_ref,
               *, channels, scale):
    """Single-head spatial self-attention (n_head=1 in the reference)."""
    n = _group_norm(y, bd_ref, bdt_ref, g_ref, be_ref, swish=False)

    qkv = jnp.dot(wqkv_ref[...], n.astype(MXU_DTYPE),
                  preferred_element_type=jnp.float32)                       # (3C, HW)
    q = (qkv[0:channels, :] * scale).astype(MXU_DTYPE)   # fold 1/sqrt(C) into q
    k = qkv[channels:2 * channels, :].astype(MXU_DTYPE)
    v = qkv[2 * channels:3 * channels, :].astype(MXU_DTYPE)

    # TODO(synk): for HW >= ~2k replace the materialized (HW, HW) score matrix
    # with flash-style KV tiling + online softmax (mandatory on v7x / 64 MiB VMEM).
    scores = lax.dot_general(q, k, (((0,), (0,)), ((), ())),
                             preferred_element_type=jnp.float32)            # (HW, HW)
    m = jnp.max(scores, axis=-1, keepdims=True)
    e = jnp.exp(scores - m)
    denom = jnp.sum(e, axis=-1, keepdims=True)
    probs = (e * pl.reciprocal(denom, approx=True)).astype(MXU_DTYPE)       # EUP divide
    attn = lax.dot_general(v, probs, (((1,), (1,)), ((), ())),
                           preferred_element_type=jnp.float32)              # (C, HW)

    out = jnp.dot(wout_ref[...], attn.astype(MXU_DTYPE),
                  preferred_element_type=jnp.float32) + bout_ref[...]
    return out + y


# ---------------------------------------------------------------------------
# Fused kernel (whole module forward for one batch element)
# ---------------------------------------------------------------------------
def _make_kernel(*, W, HW, has_res_conv, with_attn, channels_out, scale):
    shifts = tuple((kh - 1) * W + (kw - 1) for kh in range(3) for kw in range(3))

    def kernel(*refs):
        pos = [0]

        def take(n):
            out = refs[pos[0]:pos[0] + n]
            pos[0] += n
            return out

        (x_ref,) = take(1)
        g1, be1, bd1, bdt1, w1, b1 = take(6)
        g2, be2, bd2, bdt2, w2, b2 = take(6)
        if has_res_conv:
            rw, rb = take(2)
        (mask9,) = take(1)
        if with_attn:
            ag, abe, abd, abdt, wqkv, wout, bout = take(7)
        (o_ref,) = take(1)

        x = x_ref[0]                                                        # (Cin, HW)

        # --- ResnetBlock -----------------------------------------------------
        # block1: GroupNorm -> Swish -> Conv3x3 (Cin -> Cout)
        h = _group_norm(x, bd1, bdt1, g1, be1, swish=True)
        h = _conv3x3(h, w1, b1, mask9, shifts=shifts, HW=HW)
        # block2: GroupNorm -> Swish -> Dropout(=Identity) -> Conv3x3 (Cout->Cout)
        # TODO(synk): dropout=0 in the reference module, so nn.Dropout is Identity.
        h = _group_norm(h, bd2, bdt2, g2, be2, swish=True)
        h = _conv3x3(h, w2, b2, mask9, shifts=shifts, HW=HW)
        # residual branch: 1x1 conv when dim != dim_out, identity otherwise
        if has_res_conv:
            res = jnp.dot(rw[...], x.astype(MXU_DTYPE),
                          preferred_element_type=jnp.float32) + rb[...]
        else:
            res = x
        y = h + res

        # --- SelfAttention (optional) ----------------------------------------
        if with_attn:
            y = _attention(y, ag, abe, abd, abdt, wqkv, wout, bout,
                           channels=channels_out, scale=scale)

        o_ref[0] = y.astype(o_ref.dtype)

    return kernel


# ---------------------------------------------------------------------------
# Host-side (trace-time) constant builders
# ---------------------------------------------------------------------------
def _gn_selectors(C, groups, HW):
    """Block-diagonal group selectors handling sum & sum-of-squares in one dot."""
    gsize = C // groups
    gid = jnp.arange(C, dtype=jnp.int32) // gsize
    sel = (jnp.arange(groups, dtype=jnp.int32)[:, None] == gid[None, :]).astype(jnp.float32)
    z = jnp.zeros_like(sel)
    bd = jnp.concatenate([jnp.concatenate([sel, z], axis=1),
                          jnp.concatenate([z, sel], axis=1)], axis=0)        # (2G, 2C)
    bdt = bd.T / float(gsize * HW)                                           # (2C, 2G)
    return bd, bdt


def _tap_masks(H, W):
    """(9, HW) mask; row k=(kh*3+kw) is 1 where tap (kh,kw) stays on the image."""
    HW = H * W
    yy = jnp.arange(HW, dtype=jnp.int32) // W
    xx = jnp.arange(HW, dtype=jnp.int32) % W
    rows = []
    for kh in range(3):
        for kw in range(3):
            ok = ((yy + (kh - 1) >= 0) & (yy + (kh - 1) < H) &
                  (xx + (kw - 1) >= 0) & (xx + (kw - 1) < W))
            rows.append(ok.astype(jnp.float32))
    return jnp.stack(rows, axis=0)


def _conv_w_stacked(w):
    """(Cout, Cin, 3, 3) -> (Cout, 9*Cin) bf16; column (kh*3+kw)*Cin + cin."""
    cout, cin = w.shape[0], w.shape[1]
    return w.transpose(0, 2, 3, 1).reshape(cout, 9 * cin).astype(MXU_DTYPE)


# ---------------------------------------------------------------------------
# Pallas wrapper: full module forward
# ---------------------------------------------------------------------------
def resnet_bloc_with_attn(x, params, *, norm_groups, with_attn=True):
    """x: (B, dim, H, W) NCHW float32 -> (B, dim_out, H, W) float32."""
    B, Cin, H, W = x.shape
    HW = H * W
    Cout = params["conv1_w"].shape[0]
    has_res_conv = Cin != Cout
    x_flat = x.reshape(B, Cin, HW)

    bd1, bdt1 = _gn_selectors(Cin, norm_groups, HW)
    bd2, bdt2 = _gn_selectors(Cout, norm_groups, HW)
    mask9 = _tap_masks(H, W)

    inputs = [
        x_flat,
        params["gn1_gamma"].reshape(Cin, 1), params["gn1_beta"].reshape(Cin, 1),
        bd1, bdt1,
        _conv_w_stacked(params["conv1_w"]), params["conv1_b"].reshape(Cout, 1),
        params["gn2_gamma"].reshape(Cout, 1), params["gn2_beta"].reshape(Cout, 1),
        bd2, bdt2,
        _conv_w_stacked(params["conv2_w"]), params["conv2_b"].reshape(Cout, 1),
    ]
    if has_res_conv:
        inputs += [params["res_w"].reshape(Cout, Cin).astype(MXU_DTYPE),
                   params["res_b"].reshape(Cout, 1)]
    inputs.append(mask9)
    if with_attn:
        abd, abdt = _gn_selectors(Cout, norm_groups, HW)
        inputs += [
            params["attn_gn_gamma"].reshape(Cout, 1),
            params["attn_gn_beta"].reshape(Cout, 1),
            abd, abdt,
            params["qkv_w"].reshape(3 * Cout, Cout).astype(MXU_DTYPE),
            params["out_w"].reshape(Cout, Cout).astype(MXU_DTYPE),
            params["out_b"].reshape(Cout, 1),
        ]

    in_specs = ([_batch_spec((B, Cin, HW))] +
                [_resident_spec(tuple(a.shape)) for a in inputs[1:]])

    conv_flops = 2 * HW * (9 * Cin * Cout + 9 * Cout * Cout
                           + (Cin * Cout if has_res_conv else 0))
    attn_flops = (2 * HW * 4 * Cout * Cout + 4 * Cout * HW * HW) if with_attn else 0
    trans = HW * (Cin + Cout) + (HW * HW if with_attn else 0)
    bytes_accessed = (4 * B * HW * (Cin + Cout)
                      + sum(int(a.size) * a.dtype.itemsize for a in inputs[1:]))
    cost = pl.CostEstimate(flops=int(B * (conv_flops + attn_flops)),
                           transcendentals=int(B * trans),
                           bytes_accessed=int(bytes_accessed))

    kernel = _make_kernel(W=W, HW=HW, has_res_conv=has_res_conv,
                          with_attn=with_attn, channels_out=Cout,
                          scale=1.0 / math.sqrt(Cout))

    # TODO(synk): at realistic shapes re-derive tiles + vmem_limit per generation
    # (v5e/v6e 128 MiB physical, v7x 64 MiB) and add a spatial parallel grid axis.
    out = pl.pallas_call(
        kernel,
        out_shape=jax.ShapeDtypeStruct((B, Cout, HW), x.dtype),
        grid=(B,),
        in_specs=in_specs,
        out_specs=_batch_spec((B, Cout, HW)),
        compiler_params=pltpu.CompilerParams(
            dimension_semantics=("parallel",),
            vmem_limit_bytes=64 * 1024 * 1024),
        cost_estimate=cost,
    )(*inputs)
    return out.reshape(B, Cout, H, W)


# ---------------------------------------------------------------------------
# Deterministic parameter init (shapes follow the PyTorch __init__)
# ---------------------------------------------------------------------------
def init_params(key, dim, dim_out):
    ks = jax.random.split(key, 8)

    def nrm(k, shape, scale=0.1):
        return scale * jax.random.normal(k, shape, dtype=jnp.float32)

    return {
        # Block 1: GroupNorm(dim) + Conv2d(dim, dim_out, 3, padding=1)
        "gn1_gamma": jnp.ones((dim,), jnp.float32),
        "gn1_beta": jnp.zeros((dim,), jnp.float32),
        "conv1_w": nrm(ks[0], (dim_out, dim, 3, 3)),
        "conv1_b": nrm(ks[1], (dim_out,)),
        # Block 2: GroupNorm(dim_out) + Conv2d(dim_out, dim_out, 3, padding=1)
        "gn2_gamma": jnp.ones((dim_out,), jnp.float32),
        "gn2_beta": jnp.zeros((dim_out,), jnp.float32),
        "conv2_w": nrm(ks[2], (dim_out, dim_out, 3, 3)),
        "conv2_b": nrm(ks[3], (dim_out,)),
        # res_conv: Conv2d(dim, dim_out, 1)
        "res_w": nrm(ks[4], (dim_out, dim, 1, 1)),
        "res_b": nrm(ks[5], (dim_out,)),
        # SelfAttention: GroupNorm(dim_out), qkv Conv1x1 (no bias), out Conv1x1
        "attn_gn_gamma": jnp.ones((dim_out,), jnp.float32),
        "attn_gn_beta": jnp.zeros((dim_out,), jnp.float32),
        "qkv_w": nrm(ks[6], (dim_out * 3, dim_out, 1, 1)),
        "out_w": nrm(ks[7], (dim_out, dim_out, 1, 1)),
        "out_b": jnp.zeros((dim_out,), jnp.float32),
    }


# ---------------------------------------------------------------------------
if __name__ == "__main__":
    # Sublane-aligned small test shapes (channels multiple of 8, HW = 256 lanes).
    B, dim, dim_out, H, W = 2, 8, 16, 16, 16
    norm_groups = 4

    key = jax.random.PRNGKey(0)
    k_x, k_p = jax.random.split(key)
    x = jax.random.normal(k_x, (B, dim, H, W), dtype=jnp.float32)
    params = init_params(k_p, dim, dim_out)

    fwd = jax.jit(functools.partial(resnet_bloc_with_attn,
                                    norm_groups=norm_groups, with_attn=True))
    out = jax.block_until_ready(fwd(x, params))
    assert out.shape == (B, dim_out, H, W)
    print("KERNEL_OK")
</pallas_src>

<mosaic_0001>
module attributes {stable_mosaic.version = 11 : i64} {
  func.func @kernel(%arg0: i32, %arg1: memref<1x8x256xf32, #tpu.memory_space<vmem>>, %arg2: memref<8x1xf32, #tpu.memory_space<vmem>>, %arg3: memref<8x1xf32, #tpu.memory_space<vmem>>, %arg4: memref<8x16xf32, #tpu.memory_space<vmem>>, %arg5: memref<16x8xf32, #tpu.memory_space<vmem>>, %arg6: memref<16x72xbf16, #tpu.memory_space<vmem>>, %arg7: memref<16x1xf32, #tpu.memory_space<vmem>>, %arg8: memref<16x1xf32, #tpu.memory_space<vmem>>, %arg9: memref<16x1xf32, #tpu.memory_space<vmem>>, %arg10: memref<8x32xf32, #tpu.memory_space<vmem>>, %arg11: memref<32x8xf32, #tpu.memory_space<vmem>>, %arg12: memref<16x144xbf16, #tpu.memory_space<vmem>>, %arg13: memref<16x1xf32, #tpu.memory_space<vmem>>, %arg14: memref<16x8xbf16, #tpu.memory_space<vmem>>, %arg15: memref<16x1xf32, #tpu.memory_space<vmem>>, %arg16: memref<9x256xf32, #tpu.memory_space<vmem>>, %arg17: memref<16x1xf32, #tpu.memory_space<vmem>>, %arg18: memref<16x1xf32, #tpu.memory_space<vmem>>, %arg19: memref<8x32xf32, #tpu.memory_space<vmem>>, %arg20: memref<32x8xf32, #tpu.memory_space<vmem>>, %arg21: memref<48x16xbf16, #tpu.memory_space<vmem>>, %arg22: memref<16x16xbf16, #tpu.memory_space<vmem>>, %arg23: memref<16x1xf32, #tpu.memory_space<vmem>>, %arg24: memref<1x16x256xf32, #tpu.memory_space<vmem>>) attributes {dimension_semantics = [#tpu.dimension_semantics<parallel>], iteration_bounds = array<i64: 2>, scalar_prefetch = 0 : i64, scratch_operands = 0 : i64, tpu.core_type = #tpu.core_type<tc>, window_params = [{transform_indices = @transform_0, window_bounds = array<i64: 1, 8, 256>}, {pipeline_mode = #tpu.pipeline_mode<synchronous>, transform_indices = @transform_1, window_bounds = array<i64: 8, 1>}, {pipeline_mode = #tpu.pipeline_mode<synchronous>, transform_indices = @transform_2, window_bounds = array<i64: 8, 1>}, {pipeline_mode = #tpu.pipeline_mode<synchronous>, transform_indices = @transform_3, window_bounds = array<i64: 8, 16>}, {pipeline_mode = #tpu.pipeline_mode<synchronous>, transform_indices = @transform_4, window_bounds = array<i64: 16, 8>}, {pipeline_mode = #tpu.pipeline_mode<synchronous>, transform_indices = @transform_5, window_bounds = array<i64: 16, 72>}, {pipeline_mode = #tpu.pipeline_mode<synchronous>, transform_indices = @transform_6, window_bounds = array<i64: 16, 1>}, {pipeline_mode = #tpu.pipeline_mode<synchronous>, transform_indices = @transform_7, window_bounds = array<i64: 16, 1>}, {pipeline_mode = #tpu.pipeline_mode<synchronous>, transform_indices = @transform_8, window_bounds = array<i64: 16, 1>}, {pipeline_mode = #tpu.pipeline_mode<synchronous>, transform_indices = @transform_9, window_bounds = array<i64: 8, 32>}, {pipeline_mode = #tpu.pipeline_mode<synchronous>, transform_indices = @transform_10, window_bounds = array<i64: 32, 8>}, {pipeline_mode = #tpu.pipeline_mode<synchronous>, transform_indices = @transform_11, window_bounds = array<i64: 16, 144>}, {pipeline_mode = #tpu.pipeline_mode<synchronous>, transform_indices = @transform_12, window_bounds = array<i64: 16, 1>}, {pipeline_mode = #tpu.pipeline_mode<synchronous>, transform_indices = @transform_13, window_bounds = array<i64: 16, 8>}, {pipeline_mode = #tpu.pipeline_mode<synchronous>, transform_indices = @transform_14, window_bounds = array<i64: 16, 1>}, {pipeline_mode = #tpu.pipeline_mode<synchronous>, transform_indices = @transform_15, window_bounds = array<i64: 9, 256>}, {pipeline_mode = #tpu.pipeline_mode<synchronous>, transform_indices = @transform_16, window_bounds = array<i64: 16, 1>}, {pipeline_mode = #tpu.pipeline_mode<synchronous>, transform_indices = @transform_17, window_bounds = array<i64: 16, 1>}, {pipeline_mode = #tpu.pipeline_mode<synchronous>, transform_indices = @transform_18, window_bounds = array<i64: 8, 32>}, {pipeline_mode = #tpu.pipeline_mode<synchronous>, transform_indices = @transform_19, window_bounds = array<i64: 32, 8>}, {pipeline_mode = #tpu.pipeline_mode<synchronous>, transform_indices = @transform_20, window_bounds = array<i64: 48, 16>}, {pipeline_mode = #tpu.pipeline_mode<synchronous>, transform_indices = @transform_21, window_bounds = array<i64: 16, 16>}, {pipeline_mode = #tpu.pipeline_mode<synchronous>, transform_indices = @transform_22, window_bounds = array<i64: 16, 1>}, {transform_indices = @transform_23, window_bounds = array<i64: 1, 16, 256>}]} {
    %c0 = arith.constant 0 : index
    %c0_0 = arith.constant 0 : index
    %c0_1 = arith.constant 0 : index
    %0 = vector.load %arg1[%c0, %c0_0, %c0_1] : memref<1x8x256xf32, #tpu.memory_space<vmem>>, vector<1x8x256xf32>
    %1 = vector.shape_cast %0 : vector<1x8x256xf32> to vector<8x256xf32>
    %2 = arith.mulf %1, %1 : vector<8x256xf32>
    %3 = tpu.concatenate %1, %2 in 0 : vector<8x256xf32>, vector<8x256xf32> -> vector<16x256xf32>
    %cst = arith.constant dense<0.000000e+00> : vector<16xf32>
    %4 = vector.multi_reduction <add>, %3, %cst [1] : vector<16x256xf32> to vector<16xf32>
    %5 = vector.shape_cast %4 : vector<16xf32> to vector<16x1xf32>
    %c0_2 = arith.constant 0 : index
    %c0_3 = arith.constant 0 : index
    %6 = vector.load %arg4[%c0_2, %c0_3] : memref<8x16xf32, #tpu.memory_space<vmem>>, vector<8x16xf32>
    %cst_4 = arith.constant dense<0.000000e+00> : vector<8x1xf32>
    %7 = tpu.matmul %6, %5, %cst_4 {dimension_numbers = #tpu.dot_dimension_numbers<[1], [0], [0], [1], [0, 0, 1, 1], [], []>} : vector<8x16xf32>, vector<16x1xf32>, vector<8x1xf32> -> vector<8x1xf32>
    %c0_5 = arith.constant 0 : index
    %c0_6 = arith.constant 0 : index
    %8 = vector.load %arg5[%c0_5, %c0_6] : memref<16x8xf32, #tpu.memory_space<vmem>>, vector<16x8xf32>
    %cst_7 = arith.constant dense<0.000000e+00> : vector<16x1xf32>
    %9 = tpu.matmul %8, %7, %cst_7 {dimension_numbers = #tpu.dot_dimension_numbers<[1], [0], [0], [1], [0, 0, 1, 1], [], []>} : vector<16x8xf32>, vector<8x1xf32>, vector<16x1xf32> -> vector<16x1xf32>
    %10 = vector.extract_strided_slice %9 {offsets = [0, 0], sizes = [8, 1], strides = [1, 1]} : vector<16x1xf32> to vector<8x1xf32>
    %11 = vector.extract_strided_slice %9 {offsets = [8, 0], sizes = [8, 1], strides = [1, 1]} : vector<16x1xf32> to vector<8x1xf32>
    %12 = arith.mulf %10, %10 : vector<8x1xf32>
    %13 = arith.subf %11, %12 : vector<8x1xf32>
    %cst_8 = arith.constant 9.99999974E-6 : f32
    %14 = vector.broadcast %cst_8 : f32 to vector<8x1xf32>
    %15 = arith.addf %13, %14 : vector<8x1xf32>
    %16 = math.rsqrt %15 : vector<8x1xf32>
    %17 = vector.broadcast %10 : vector<8x1xf32> to vector<8x256xf32>
    %18 = arith.subf %1, %17 : vector<8x256xf32>
    %c0_9 = arith.constant 0 : index
    %c0_10 = arith.constant 0 : index
    %19 = vector.load %arg2[%c0_9, %c0_10] : memref<8x1xf32, #tpu.memory_space<vmem>>, vector<8x1xf32>
    %20 = arith.mulf %16, %19 : vector<8x1xf32>
    %21 = vector.broadcast %20 : vector<8x1xf32> to vector<8x256xf32>
    %22 = arith.mulf %18, %21 : vector<8x256xf32>
    %c0_11 = arith.constant 0 : index
    %c0_12 = arith.constant 0 : index
    %23 = vector.load %arg3[%c0_11, %c0_12] : memref<8x1xf32, #tpu.memory_space<vmem>>, vector<8x1xf32>
    %24 = vector.broadcast %23 : vector<8x1xf32> to vector<8x256xf32>
    %25 = arith.addf %22, %24 : vector<8x256xf32>
    %cst_13 = arith.constant 0.000000e+00 : f32
    %26 = vector.broadcast %cst_13 : f32 to vector<8x256xf32>
    %27 = arith.subf %26, %25 : vector<8x256xf32>
    %28 = math.exp %27 : vector<8x256xf32>
    %cst_14 = arith.constant 1.000000e+00 : f32
    %29 = vector.broadcast %cst_14 : f32 to vector<8x256xf32>
    %30 = arith.addf %29, %28 : vector<8x256xf32>
    %31 = tpu.reciprocal %30 {approx = true} : vector<8x256xf32> -> vector<8x256xf32>
    %32 = arith.mulf %25, %31 : vector<8x256xf32>
    %c17_i32 = arith.constant 17 : i32
    %33 = tpu.dynamic_rotate %32 by %c17_i32 dim 1 : vector<8x256xf32>, i32 -> vector<8x256xf32>
    %c0_15 = arith.constant 0 : index
    %c0_16 = arith.constant 0 : index
    %34 = vector.load %arg16[%c0_15, %c0_16] : memref<9x256xf32, #tpu.memory_space<vmem>>, vector<1x256xf32>
    %35 = vector.broadcast %34 : vector<1x256xf32> to vector<8x256xf32>
    %36 = arith.mulf %33, %35 : vector<8x256xf32>
    %c16_i32 = arith.constant 16 : i32
    %37 = tpu.dynamic_rotate %32 by %c16_i32 dim 1 : vector<8x256xf32>, i32 -> vector<8x256xf32>
    %c1 = arith.constant 1 : index
    %c0_17 = arith.constant 0 : index
    %38 = vector.load %arg16[%c1, %c0_17] : memref<9x256xf32, #tpu.memory_space<vmem>>, vector<1x256xf32>
    %39 = vector.broadcast %38 : vector<1x256xf32> to vector<8x256xf32>
    %40 = arith.mulf %37, %39 : vector<8x256xf32>
    %c15_i32 = arith.constant 15 : i32
    %41 = tpu.dynamic_rotate %32 by %c15_i32 dim 1 : vector<8x256xf32>, i32 -> vector<8x256xf32>
    %c2 = arith.constant 2 : index
    %c0_18 = arith.constant 0 : index
    %42 = vector.load %arg16[%c2, %c0_18] : memref<9x256xf32, #tpu.memory_space<vmem>>, vector<1x256xf32>
    %43 = vector.broadcast %42 : vector<1x256xf32> to vector<8x256xf32>
    %44 = arith.mulf %41, %43 : vector<8x256xf32>
    %c1_i32 = arith.constant 1 : i32
    %45 = tpu.dynamic_rotate %32 by %c1_i32 dim 1 : vector<8x256xf32>, i32 -> vector<8x256xf32>
    %c3 = arith.constant 3 : index
    %c0_19 = arith.constant 0 : index
    %46 = vector.load %arg16[%c3, %c0_19] : memref<9x256xf32, #tpu.memory_space<vmem>>, vector<1x256xf32>
    %47 = vector.broadcast %46 : vector<1x256xf32> to vector<8x256xf32>
    %48 = arith.mulf %45, %47 : vector<8x256xf32>
    %c255_i32 = arith.constant 255 : i32
    %49 = tpu.dynamic_rotate %32 by %c255_i32 dim 1 : vector<8x256xf32>, i32 -> vector<8x256xf32>
    %c5 = arith.constant 5 : index
    %c0_20 = arith.constant 0 : index
    %50 = vector.load %arg16[%c5, %c0_20] : memref<9x256xf32, #tpu.memory_space<vmem>>, vector<1x256xf32>
    %51 = vector.broadcast %50 : vector<1x256xf32> to vector<8x256xf32>
    %52 = arith.mulf %49, %51 : vector<8x256xf32>
    %c241_i32 = arith.constant 241 : i32
    %53 = tpu.dynamic_rotate %32 by %c241_i32 dim 1 : vector<8x256xf32>, i32 -> vector<8x256xf32>
    %c6 = arith.constant 6 : index
    %c0_21 = arith.constant 0 : index
    %54 = vector.load %arg16[%c6, %c0_21] : memref<9x256xf32, #tpu.memory_space<vmem>>, vector<1x256xf32>
    %55 = vector.broadcast %54 : vector<1x256xf32> to vector<8x256xf32>
    %56 = arith.mulf %53, %55 : vector<8x256xf32>
    %c240_i32 = arith.constant 240 : i32
    %57 = tpu.dynamic_rotate %32 by %c240_i32 dim 1 : vector<8x256xf32>, i32 -> vector<8x256xf32>
    %c7 = arith.constant 7 : index
    %c0_22 = arith.constant 0 : index
    %58 = vector.load %arg16[%c7, %c0_22] : memref<9x256xf32, #tpu.memory_space<vmem>>, vector<1x256xf32>
    %59 = vector.broadcast %58 : vector<1x256xf32> to vector<8x256xf32>
    %60 = arith.mulf %57, %59 : vector<8x256xf32>
    %c239_i32 = arith.constant 239 : i32
    %61 = tpu.dynamic_rotate %32 by %c239_i32 dim 1 : vector<8x256xf32>, i32 -> vector<8x256xf32>
    %c8 = arith.constant 8 : index
    %c0_23 = arith.constant 0 : index
    %62 = vector.load %arg16[%c8, %c0_23] : memref<9x256xf32, #tpu.memory_space<vmem>>, vector<1x256xf32>
    %63 = vector.broadcast %62 : vector<1x256xf32> to vector<8x256xf32>
    %64 = arith.mulf %61, %63 : vector<8x256xf32>
    %65 = tpu.concatenate %36, %40, %44, %48, %32, %52, %56, %60, %64 in 0 : vector<8x256xf32>, vector<8x256xf32>, vector<8x256xf32>, vector<8x256xf32>, vector<8x256xf32>, vector<8x256xf32>, vector<8x256xf32>, vector<8x256xf32>, vector<8x256xf32> -> vector<72x256xf32>
    %66 = arith.truncf %65 : vector<72x256xf32> to vector<72x256xbf16>
    %c0_24 = arith.constant 0 : index
    %c0_25 = arith.constant 0 : index
    %67 = vector.load %arg6[%c0_24, %c0_25] : memref<16x72xbf16, #tpu.memory_space<vmem>>, vector<16x72xbf16>
    %cst_26 = arith.constant dense<0.000000e+00> : vector<16x256xf32>
    %68 = tpu.matmul %67, %66, %cst_26 {dimension_numbers = #tpu.dot_dimension_numbers<[1], [0], [0], [1], [0, 0, 1, 1], [], []>} : vector<16x72xbf16>, vector<72x256xbf16>, vector<16x256xf32> -> vector<16x256xf32>
    %c0_27 = arith.constant 0 : index
    %c0_28 = arith.constant 0 : index
    %69 = vector.load %arg7[%c0_27, %c0_28] : memref<16x1xf32, #tpu.memory_space<vmem>>, vector<16x1xf32>
    %70 = vector.broadcast %69 : vector<16x1xf32> to vector<16x256xf32>
    %71 = arith.addf %68, %70 : vector<16x256xf32>
    %72 = arith.mulf %71, %71 : vector<16x256xf32>
    %73 = tpu.concatenate %71, %72 in 0 : vector<16x256xf32>, vector<16x256xf32> -> vector<32x256xf32>
    %cst_29 = arith.constant dense<0.000000e+00> : vector<32xf32>
    %74 = vector.multi_reduction <add>, %73, %cst_29 [1] : vector<32x256xf32> to vector<32xf32>
    %75 = vector.shape_cast %74 : vector<32xf32> to vector<32x1xf32>
    %c0_30 = arith.constant 0 : index
    %c0_31 = arith.constant 0 : index
    %76 = vector.load %arg10[%c0_30, %c0_31] : memref<8x32xf32, #tpu.memory_space<vmem>>, vector<8x32xf32>
    %cst_32 = arith.constant dense<0.000000e+00> : vector<8x1xf32>
    %77 = tpu.matmul %76, %75, %cst_32 {dimension_numbers = #tpu.dot_dimension_numbers<[1], [0], [0], [1], [0, 0, 1, 1], [], []>} : vector<8x32xf32>, vector<32x1xf32>, vector<8x1xf32> -> vector<8x1xf32>
    %c0_33 = arith.constant 0 : index
    %c0_34 = arith.constant 0 : index
    %78 = vector.load %arg11[%c0_33, %c0_34] : memref<32x8xf32, #tpu.memory_space<vmem>>, vector<32x8xf32>
    %cst_35 = arith.constant dense<0.000000e+00> : vector<32x1xf32>
    %79 = tpu.matmul %78, %77, %cst_35 {dimension_numbers = #tpu.dot_dimension_numbers<[1], [0], [0], [1], [0, 0, 1, 1], [], []>} : vector<32x8xf32>, vector<8x1xf32>, vector<32x1xf32> -> vector<32x1xf32>
    %80 = vector.extract_strided_slice %79 {offsets = [0, 0], sizes = [16, 1], strides = [1, 1]} : vector<32x1xf32> to vector<16x1xf32>
    %81 = vector.extract_strided_slice %79 {offsets = [16, 0], sizes = [16, 1], strides = [1, 1]} : vector<32x1xf32> to vector<16x1xf32>
    %82 = arith.mulf %80, %80 : vector<16x1xf32>
    %83 = arith.subf %81, %82 : vector<16x1xf32>
    %cst_36 = arith.constant 9.99999974E-6 : f32
    %84 = vector.broadcast %cst_36 : f32 to vector<16x1xf32>
    %85 = arith.addf %83, %84 : vector<16x1xf32>
    %86 = math.rsqrt %85 : vector<16x1xf32>
    %87 = vector.broadcast %80 : vector<16x1xf32> to vector<16x256xf32>
    %88 = arith.subf %71, %87 : vector<16x256xf32>
    %c0_37 = arith.constant 0 : index
    %c0_38 = arith.constant 0 : index
    %89 = vector.load %arg8[%c0_37, %c0_38] : memref<16x1xf32, #tpu.memory_space<vmem>>, vector<16x1xf32>
    %90 = arith.mulf %86, %89 : vector<16x1xf32>
    %91 = vector.broadcast %90 : vector<16x1xf32> to vector<16x256xf32>
    %92 = arith.mulf %88, %91 : vector<16x256xf32>
    %c0_39 = arith.constant 0 : index
    %c0_40 = arith.constant 0 : index
    %93 = vector.load %arg9[%c0_39, %c0_40] : memref<16x1xf32, #tpu.memory_space<vmem>>, vector<16x1xf32>
    %94 = vector.broadcast %93 : vector<16x1xf32> to vector<16x256xf32>
    %95 = arith.addf %92, %94 : vector<16x256xf32>
    %cst_41 = arith.constant 0.000000e+00 : f32
    %96 = vector.broadcast %cst_41 : f32 to vector<16x256xf32>
    %97 = arith.subf %96, %95 : vector<16x256xf32>
    %98 = math.exp %97 : vector<16x256xf32>
    %cst_42 = arith.constant 1.000000e+00 : f32
    %99 = vector.broadcast %cst_42 : f32 to vector<16x256xf32>
    %100 = arith.addf %99, %98 : vector<16x256xf32>
    %101 = tpu.reciprocal %100 {approx = true} : vector<16x256xf32> -> vector<16x256xf32>
    %102 = arith.mulf %95, %101 : vector<16x256xf32>
    %c17_i32_43 = arith.constant 17 : i32
    %103 = tpu.dynamic_rotate %102 by %c17_i32_43 dim 1 : vector<16x256xf32>, i32 -> vector<16x256xf32>
    %c0_44 = arith.constant 0 : index
    %c0_45 = arith.constant 0 : index
    %104 = vector.load %arg16[%c0_44, %c0_45] : memref<9x256xf32, #tpu.memory_space<vmem>>, vector<1x256xf32>
    %105 = vector.broadcast %104 : vector<1x256xf32> to vector<16x256xf32>
    %106 = arith.mulf %103, %105 : vector<16x256xf32>
    %c16_i32_46 = arith.constant 16 : i32
    %107 = tpu.dynamic_rotate %102 by %c16_i32_46 dim 1 : vector<16x256xf32>, i32 -> vector<16x256xf32>
    %c1_47 = arith.constant 1 : index
    %c0_48 = arith.constant 0 : index
    %108 = vector.load %arg16[%c1_47, %c0_48] : memref<9x256xf32, #tpu.memory_space<vmem>>, vector<1x256xf32>
    %109 = vector.broadcast %108 : vector<1x256xf32> to vector<16x256xf32>
    %110 = arith.mulf %107, %109 : vector<16x256xf32>
    %c15_i32_49 = arith.constant 15 : i32
    %111 = tpu.dynamic_rotate %102 by %c15_i32_49 dim 1 : vector<16x256xf32>, i32 -> vector<16x256xf32>
    %c2_50 = arith.constant 2 : index
    %c0_51 = arith.constant 0 : index
    %112 = vector.load %arg16[%c2_50, %c0_51] : memref<9x256xf32, #tpu.memory_space<vmem>>, vector<1x256xf32>
    %113 = vector.broadcast %112 : vector<1x256xf32> to vector<16x256xf32>
    %114 = arith.mulf %111, %113 : vector<16x256xf32>
    %c1_i32_52 = arith.constant 1 : i32
    %115 = tpu.dynamic_rotate %102 by %c1_i32_52 dim 1 : vector<16x256xf32>, i32 -> vector<16x256xf32>
    %c3_53 = arith.constant 3 : index
    %c0_54 = arith.constant 0 : index
    %116 = vector.load %arg16[%c3_53, %c0_54] : memref<9x256xf32, #tpu.memory_space<vmem>>, vector<1x256xf32>
    %117 = vector.broadcast %116 : vector<1x256xf32> to vector<16x256xf32>
    %118 = arith.mulf %115, %117 : vector<16x256xf32>
    %c255_i32_55 = arith.constant 255 : i32
    %119 = tpu.dynamic_rotate %102 by %c255_i32_55 dim 1 : vector<16x256xf32>, i32 -> vector<16x256xf32>
    %c5_56 = arith.constant 5 : index
    %c0_57 = arith.constant 0 : index
    %120 = vector.load %arg16[%c5_56, %c0_57] : memref<9x256xf32, #tpu.memory_space<vmem>>, vector<1x256xf32>
    %121 = vector.broadcast %120 : vector<1x256xf32> to vector<16x256xf32>
    %122 = arith.mulf %119, %121 : vector<16x256xf32>
    %c241_i32_58 = arith.constant 241 : i32
    %123 = tpu.dynamic_rotate %102 by %c241_i32_58 dim 1 : vector<16x256xf32>, i32 -> vector<16x256xf32>
    %c6_59 = arith.constant 6 : index
    %c0_60 = arith.constant 0 : index
    %124 = vector.load %arg16[%c6_59, %c0_60] : memref<9x256xf32, #tpu.memory_space<vmem>>, vector<1x256xf32>
    %125 = vector.broadcast %124 : vector<1x256xf32> to vector<16x256xf32>
    %126 = arith.mulf %123, %125 : vector<16x256xf32>
    %c240_i32_61 = arith.constant 240 : i32
    %127 = tpu.dynamic_rotate %102 by %c240_i32_61 dim 1 : vector<16x256xf32>, i32 -> vector<16x256xf32>
    %c7_62 = arith.constant 7 : index
    %c0_63 = arith.constant 0 : index
    %128 = vector.load %arg16[%c7_62, %c0_63] : memref<9x256xf32, #tpu.memory_space<vmem>>, vector<1x256xf32>
    %129 = vector.broadcast %128 : vector<1x256xf32> to vector<16x256xf32>
    %130 = arith.mulf %127, %129 : vector<16x256xf32>
    %c239_i32_64 = arith.constant 239 : i32
    %131 = tpu.dynamic_rotate %102 by %c239_i32_64 dim 1 : vector<16x256xf32>, i32 -> vector<16x256xf32>
    %c8_65 = arith.constant 8 : index
    %c0_66 = arith.constant 0 : index
    %132 = vector.load %arg16[%c8_65, %c0_66] : memref<9x256xf32, #tpu.memory_space<vmem>>, vector<1x256xf32>
    %133 = vector.broadcast %132 : vector<1x256xf32> to vector<16x256xf32>
    %134 = arith.mulf %131, %133 : vector<16x256xf32>
    %135 = tpu.concatenate %106, %110, %114, %118, %102, %122, %126, %130, %134 in 0 : vector<16x256xf32>, vector<16x256xf32>, vector<16x256xf32>, vector<16x256xf32>, vector<16x256xf32>, vector<16x256xf32>, vector<16x256xf32>, vector<16x256xf32>, vector<16x256xf32> -> vector<144x256xf32>
    %136 = arith.truncf %135 : vector<144x256xf32> to vector<144x256xbf16>
    %c0_67 = arith.constant 0 : index
    %c0_68 = arith.constant 0 : index
    %137 = vector.load %arg12[%c0_67, %c0_68] : memref<16x144xbf16, #tpu.memory_space<vmem>>, vector<16x144xbf16>
    %cst_69 = arith.constant dense<0.000000e+00> : vector<16x256xf32>
    %138 = tpu.matmul %137, %136, %cst_69 {dimension_numbers = #tpu.dot_dimension_numbers<[1], [0], [0], [1], [0, 0, 1, 1], [], []>} : vector<16x144xbf16>, vector<144x256xbf16>, vector<16x256xf32> -> vector<16x256xf32>
    %c0_70 = arith.constant 0 : index
    %c0_71 = arith.constant 0 : index
    %139 = vector.load %arg13[%c0_70, %c0_71] : memref<16x1xf32, #tpu.memory_space<vmem>>, vector<16x1xf32>
    %140 = vector.broadcast %139 : vector<16x1xf32> to vector<16x256xf32>
    %141 = arith.addf %138, %140 : vector<16x256xf32>
    %c0_72 = arith.constant 0 : index
    %c0_73 = arith.constant 0 : index
    %142 = vector.load %arg14[%c0_72, %c0_73] : memref<16x8xbf16, #tpu.memory_space<vmem>>, vector<16x8xbf16>
    %143 = arith.truncf %1 : vector<8x256xf32> to vector<8x256xbf16>
    %cst_74 = arith.constant dense<0.000000e+00> : vector<16x256xf32>
    %144 = tpu.matmul %142, %143, %cst_74 {dimension_numbers = #tpu.dot_dimension_numbers<[1], [0], [0], [1], [0, 0, 1, 1], [], []>} : vector<16x8xbf16>, vector<8x256xbf16>, vector<16x256xf32> -> vector<16x256xf32>
    %c0_75 = arith.constant 0 : index
    %c0_76 = arith.constant 0 : index
    %145 = vector.load %arg15[%c0_75, %c0_76] : memref<16x1xf32, #tpu.memory_space<vmem>>, vector<16x1xf32>
    %146 = vector.broadcast %145 : vector<16x1xf32> to vector<16x256xf32>
    %147 = arith.addf %144, %146 : vector<16x256xf32>
    %148 = arith.addf %141, %147 : vector<16x256xf32>
    %149 = arith.mulf %148, %148 : vector<16x256xf32>
    %150 = tpu.concatenate %148, %149 in 0 : vector<16x256xf32>, vector<16x256xf32> -> vector<32x256xf32>
    %cst_77 = arith.constant dense<0.000000e+00> : vector<32xf32>
    %151 = vector.multi_reduction <add>, %150, %cst_77 [1] : vector<32x256xf32> to vector<32xf32>
    %152 = vector.shape_cast %151 : vector<32xf32> to vector<32x1xf32>
    %c0_78 = arith.constant 0 : index
    %c0_79 = arith.constant 0 : index
    %153 = vector.load %arg19[%c0_78, %c0_79] : memref<8x32xf32, #tpu.memory_space<vmem>>, vector<8x32xf32>
    %cst_80 = arith.constant dense<0.000000e+00> : vector<8x1xf32>
    %154 = tpu.matmul %153, %152, %cst_80 {dimension_numbers = #tpu.dot_dimension_numbers<[1], [0], [0], [1], [0, 0, 1, 1], [], []>} : vector<8x32xf32>, vector<32x1xf32>, vector<8x1xf32> -> vector<8x1xf32>
    %c0_81 = arith.constant 0 : index
    %c0_82 = arith.constant 0 : index
    %155 = vector.load %arg20[%c0_81, %c0_82] : memref<32x8xf32, #tpu.memory_space<vmem>>, vector<32x8xf32>
    %cst_83 = arith.constant dense<0.000000e+00> : vector<32x1xf32>
    %156 = tpu.matmul %155, %154, %cst_83 {dimension_numbers = #tpu.dot_dimension_numbers<[1], [0], [0], [1], [0, 0, 1, 1], [], []>} : vector<32x8xf32>, vector<8x1xf32>, vector<32x1xf32> -> vector<32x1xf32>
    %157 = vector.extract_strided_slice %156 {offsets = [0, 0], sizes = [16, 1], strides = [1, 1]} : vector<32x1xf32> to vector<16x1xf32>
    %158 = vector.extract_strided_slice %156 {offsets = [16, 0], sizes = [16, 1], strides = [1, 1]} : vector<32x1xf32> to vector<16x1xf32>
    %159 = arith.mulf %157, %157 : vector<16x1xf32>
    %160 = arith.subf %158, %159 : vector<16x1xf32>
    %cst_84 = arith.constant 9.99999974E-6 : f32
    %161 = vector.broadcast %cst_84 : f32 to vector<16x1xf32>
    %162 = arith.addf %160, %161 : vector<16x1xf32>
    %163 = math.rsqrt %162 : vector<16x1xf32>
    %164 = vector.broadcast %157 : vector<16x1xf32> to vector<16x256xf32>
    %165 = arith.subf %148, %164 : vector<16x256xf32>
    %c0_85 = arith.constant 0 : index
    %c0_86 = arith.constant 0 : index
    %166 = vector.load %arg17[%c0_85, %c0_86] : memref<16x1xf32, #tpu.memory_space<vmem>>, vector<16x1xf32>
    %167 = arith.mulf %163, %166 : vector<16x1xf32>
    %168 = vector.broadcast %167 : vector<16x1xf32> to vector<16x256xf32>
    %169 = arith.mulf %165, %168 : vector<16x256xf32>
    %c0_87 = arith.constant 0 : index
    %c0_88 = arith.constant 0 : index
    %170 = vector.load %arg18[%c0_87, %c0_88] : memref<16x1xf32, #tpu.memory_space<vmem>>, vector<16x1xf32>
    %171 = vector.broadcast %170 : vector<16x1xf32> to vector<16x256xf32>
    %172 = arith.addf %169, %171 : vector<16x256xf32>
    %c0_89 = arith.constant 0 : index
    %c0_90 = arith.constant 0 : index
    %173 = vector.load %arg21[%c0_89, %c0_90] : memref<48x16xbf16, #tpu.memory_space<vmem>>, vector<48x16xbf16>
    %174 = arith.truncf %172 : vector<16x256xf32> to vector<16x256xbf16>
    %cst_91 = arith.constant dense<0.000000e+00> : vector<48x256xf32>
    %175 = tpu.matmul %173, %174, %cst_91 {dimension_numbers = #tpu.dot_dimension_numbers<[1], [0], [0], [1], [0, 0, 1, 1], [], []>} : vector<48x16xbf16>, vector<16x256xbf16>, vector<48x256xf32> -> vector<48x256xf32>
    %176 = vector.extract_strided_slice %175 {offsets = [0, 0], sizes = [16, 256], strides = [1, 1]} : vector<48x256xf32> to vector<16x256xf32>
    %cst_92 = arith.constant 2.500000e-01 : f32
    %177 = vector.broadcast %cst_92 : f32 to vector<16x256xf32>
    %178 = arith.mulf %176, %177 : vector<16x256xf32>
    %179 = arith.truncf %178 : vector<16x256xf32> to vector<16x256xbf16>
    %180 = vector.extract_strided_slice %175 {offsets = [16, 0], sizes = [16, 256], strides = [1, 1]} : vector<48x256xf32> to vector<16x256xf32>
    %181 = arith.truncf %180 : vector<16x256xf32> to vector<16x256xbf16>
    %182 = vector.extract_strided_slice %175 {offsets = [32, 0], sizes = [16, 256], strides = [1, 1]} : vector<48x256xf32> to vector<16x256xf32>
    %183 = arith.truncf %182 : vector<16x256xf32> to vector<16x256xbf16>
    %cst_93 = arith.constant dense<0.000000e+00> : vector<256x256xf32>
    %184 = tpu.matmul %179, %181, %cst_93 {dimension_numbers = #tpu.dot_dimension_numbers<[0], [0], [1], [1], [0, 1, 1, 1], [], []>} : vector<16x256xbf16>, vector<16x256xbf16>, vector<256x256xf32> -> vector<256x256xf32>
    %cst_94 = arith.constant dense<0xFF800000> : vector<256xf32>
    %185 = vector.multi_reduction <maximumf>, %184, %cst_94 [1] : vector<256x256xf32> to vector<256xf32>
    %186 = vector.shape_cast %185 : vector<256xf32> to vector<256x1xf32>
    %187 = vector.broadcast %186 : vector<256x1xf32> to vector<256x256xf32>
    %188 = arith.subf %184, %187 : vector<256x256xf32>
    %189 = math.exp %188 : vector<256x256xf32>
    %cst_95 = arith.constant dense<0.000000e+00> : vector<256xf32>
    %190 = vector.multi_reduction <add>, %189, %cst_95 [1] : vector<256x256xf32> to vector<256xf32>
    %191 = vector.shape_cast %190 : vector<256xf32> to vector<256x1xf32>
    %192 = tpu.reciprocal %191 {approx = true} : vector<256x1xf32> -> vector<256x1xf32>
    %193 = vector.broadcast %192 : vector<256x1xf32> to vector<256x256xf32>
    %194 = arith.mulf %189, %193 : vector<256x256xf32>
    %195 = arith.truncf %194 : vector<256x256xf32> to vector<256x256xbf16>
    %cst_96 = arith.constant dense<0.000000e+00> : vector<16x256xf32>
    %196 = tpu.matmul %183, %195, %cst_96 {dimension_numbers = #tpu.dot_dimension_numbers<[1], [1], [0], [0], [0, 0, 1, 0], [], []>} : vector<16x256xbf16>, vector<256x256xbf16>, vector<16x256xf32> -> vector<16x256xf32>
    %c0_97 = arith.constant 0 : index
    %c0_98 = arith.constant 0 : index
    %197 = vector.load %arg22[%c0_97, %c0_98] : memref<16x16xbf16, #tpu.memory_space<vmem>>, vector<16x16xbf16>
    %198 = arith.truncf %196 : vector<16x256xf32> to vector<16x256xbf16>
    %cst_99 = arith.constant dense<0.000000e+00> : vector<16x256xf32>
    %199 = tpu.matmul %197, %198, %cst_99 {dimension_numbers = #tpu.dot_dimension_numbers<[1], [0], [0], [1], [0, 0, 1, 1], [], []>} : vector<16x16xbf16>, vector<16x256xbf16>, vector<16x256xf32> -> vector<16x256xf32>
    %c0_100 = arith.constant 0 : index
    %c0_101 = arith.constant 0 : index
    %200 = vector.load %arg23[%c0_100, %c0_101] : memref<16x1xf32, #tpu.memory_space<vmem>>, vector<16x1xf32>
    %201 = vector.broadcast %200 : vector<16x1xf32> to vector<16x256xf32>
    %202 = arith.addf %199, %201 : vector<16x256xf32>
    %203 = arith.addf %202, %148 : vector<16x256xf32>
    %c0_102 = arith.constant 0 : index
    %c0_103 = arith.constant 0 : index
    %c0_104 = arith.constant 0 : index
    %204 = vector.load %arg24[%c0_102, %c0_103, %c0_104] : memref<1x16x256xf32, #tpu.memory_space<vmem>>, vector<1x16x256xf32>
    %205 = vector.shape_cast %204 : vector<1x16x256xf32> to vector<16x256xf32>
    %206 = vector.shape_cast %203 : vector<16x256xf32> to vector<1x16x256xf32>
    tpu.vector_store %arg24[%c0_102, %c0_103, %c0_104], %206 {strides = array<i32>} : memref<1x16x256xf32, #tpu.memory_space<vmem>>, vector<1x16x256xf32>,
    return
  }
  func.func @transform_0(%arg0: i32) -> (i32, i32, i32) {
    %c0_i32 = arith.constant 0 : i32
    %c0_i32_0 = arith.constant 0 : i32
    %c0_i32_1 = arith.constant 0 : i32
    return %arg0, %c0_i32, %c0_i32_0 : i32, i32, i32
  }
  func.func @transform_1(%arg0: i32) -> (i32, i32) {
    %c0_i32 = arith.constant 0 : i32
    %c0_i32_0 = arith.constant 0 : i32
    %c0_i32_1 = arith.constant 0 : i32
    return %c0_i32, %c0_i32_0 : i32, i32
  }
  func.func @transform_2(%arg0: i32) -> (i32, i32) {
    %c0_i32 = arith.constant 0 : i32
    %c0_i32_0 = arith.constant 0 : i32
    %c0_i32_1 = arith.constant 0 : i32
    return %c0_i32, %c0_i32_0 : i32, i32
  }
  func.func @transform_3(%arg0: i32) -> (i32, i32) {
    %c0_i32 = arith.constant 0 : i32
    %c0_i32_0 = arith.constant 0 : i32
    %c0_i32_1 = arith.constant 0 : i32
    return %c0_i32, %c0_i32_0 : i32, i32
  }
  func.func @transform_4(%arg0: i32) -> (i32, i32) {
    %c0_i32 = arith.constant 0 : i32
    %c0_i32_0 = arith.constant 0 : i32
    %c0_i32_1 = arith.constant 0 : i32
    return %c0_i32, %c0_i32_0 : i32, i32
  }
  func.func @transform_5(%arg0: i32) -> (i32, i32) {
    %c0_i32 = arith.constant 0 : i32
    %c0_i32_0 = arith.constant 0 : i32
    %c0_i32_1 = arith.constant 0 : i32
    return %c0_i32, %c0_i32_0 : i32, i32
  }
  func.func @transform_6(%arg0: i32) -> (i32, i32) {
    %c0_i32 = arith.constant 0 : i32
    %c0_i32_0 = arith.constant 0 : i32
    %c0_i32_1 = arith.constant 0 : i32
    return %c0_i32, %c0_i32_0 : i32, i32
  }
  func.func @transform_7(%arg0: i32) -> (i32, i32) {
    %c0_i32 = arith.constant 0 : i32
    %c0_i32_0 = arith.constant 0 : i32
    %c0_i32_1 = arith.constant 0 : i32
    return %c0_i32, %c0_i32_0 : i32, i32
  }
  func.func @transform_8(%arg0: i32) -> (i32, i32) {
    %c0_i32 = arith.constant 0 : i32
    %c0_i32_0 = arith.constant 0 : i32
    %c0_i32_1 = arith.constant 0 : i32
    return %c0_i32, %c0_i32_0 : i32, i32
  }
  func.func @transform_9(%arg0: i32) -> (i32, i32) {
    %c0_i32 = arith.constant 0 : i32
    %c0_i32_0 = arith.constant 0 : i32
    %c0_i32_1 = arith.constant 0 : i32
    return %c0_i32, %c0_i32_0 : i32, i32
  }
  func.func @transform_10(%arg0: i32) -> (i32, i32) {
    %c0_i32 = arith.constant 0 : i32
    %c0_i32_0 = arith.constant 0 : i32
    %c0_i32_1 = arith.constant 0 : i32
    return %c0_i32, %c0_i32_0 : i32, i32
  }
  func.func @transform_11(%arg0: i32) -> (i32, i32) {
    %c0_i32 = arith.constant 0 : i32
    %c0_i32_0 = arith.constant 0 : i32
    %c0_i32_1 = arith.constant 0 : i32
    return %c0_i32, %c0_i32_0 : i32, i32
  }
  func.func @transform_12(%arg0: i32) -> (i32, i32) {
    %c0_i32 = arith.constant 0 : i32
    %c0_i32_0 = arith.constant 0 : i32
    %c0_i32_1 = arith.constant 0 : i32
    return %c0_i32, %c0_i32_0 : i32, i32
  }
  func.func @transform_13(%arg0: i32) -> (i32, i32) {
    %c0_i32 = arith.constant 0 : i32
    %c0_i32_0 = arith.constant 0 : i32
    %c0_i32_1 = arith.constant 0 : i32
    return %c0_i32, %c0_i32_0 : i32, i32
  }
  func.func @transform_14(%arg0: i32) -> (i32, i32) {
    %c0_i32 = arith.constant 0 : i32
    %c0_i32_0 = arith.constant 0 : i32
    %c0_i32_1 = arith.constant 0 : i32
    return %c0_i32, %c0_i32_0 : i32, i32
  }
  func.func @transform_15(%arg0: i32) -> (i32, i32) {
    %c0_i32 = arith.constant 0 : i32
    %c0_i32_0 = arith.constant 0 : i32
    %c0_i32_1 = arith.constant 0 : i32
    return %c0_i32, %c0_i32_0 : i32, i32
  }
  func.func @transform_16(%arg0: i32) -> (i32, i32) {
    %c0_i32 = arith.constant 0 : i32
    %c0_i32_0 = arith.constant 0 : i32
    %c0_i32_1 = arith.constant 0 : i32
    return %c0_i32, %c0_i32_0 : i32, i32
  }
  func.func @transform_17(%arg0: i32) -> (i32, i32) {
    %c0_i32 = arith.constant 0 : i32
    %c0_i32_0 = arith.constant 0 : i32
    %c0_i32_1 = arith.constant 0 : i32
    return %c0_i32, %c0_i32_0 : i32, i32
  }
  func.func @transform_18(%arg0: i32) -> (i32, i32) {
    %c0_i32 = arith.constant 0 : i32
    %c0_i32_0 = arith.constant 0 : i32
    %c0_i32_1 = arith.constant 0 : i32
    return %c0_i32, %c0_i32_0 : i32, i32
  }
  func.func @transform_19(%arg0: i32) -> (i32, i32) {
    %c0_i32 = arith.constant 0 : i32
    %c0_i32_0 = arith.constant 0 : i32
    %c0_i32_1 = arith.constant 0 : i32
    return %c0_i32, %c0_i32_0 : i32, i32
  }
  func.func @transform_20(%arg0: i32) -> (i32, i32) {
    %c0_i32 = arith.constant 0 : i32
    %c0_i32_0 = arith.constant 0 : i32
    %c0_i32_1 = arith.constant 0 : i32
    return %c0_i32, %c0_i32_0 : i32, i32
  }
  func.func @transform_21(%arg0: i32) -> (i32, i32) {
    %c0_i32 = arith.constant 0 : i32
    %c0_i32_0 = arith.constant 0 : i32
    %c0_i32_1 = arith.constant 0 : i32
    return %c0_i32, %c0_i32_0 : i32, i32
  }
  func.func @transform_22(%arg0: i32) -> (i32, i32) {
    %c0_i32 = arith.constant 0 : i32
    %c0_i32_0 = arith.constant 0 : i32
    %c0_i32_1 = arith.constant 0 : i32
    return %c0_i32, %c0_i32_0 : i32, i32
  }
  func.func @transform_23(%arg0: i32) -> (i32, i32, i32) {
    %c0_i32 = arith.constant 0 : i32
    %c0_i32_0 = arith.constant 0 : i32
    %c0_i32_1 = arith.constant 0 : i32
    return %arg0, %c0_i32, %c0_i32_0 : i32, i32, i32
  }
}

</mosaic_0001>

<bundles_post_ra>
// kernel: resnet_bloc_with_attn.1
= control target key start
LH: loop header
LB: loop body
LE: loop exit
PB: predicated region body
PF: predicated region fallthrough
CT: control target
= control target key end

     0   :  { %s7013_s0 = inlined_call_operand.hbm [shape: f32[2,8,256], index: 0, kind: input, shape index: {}]   ;;  %s7014_s1 = inlined_call_operand.hbm [shape: f32[8,1], index: 1, kind: input, shape index: {}]   ;;  %s7015_s2 = inlined_call_operand.hbm [shape: f32[8,1], index: 2, kind: input, shape index: {}]   ;;  %s7016_s3 = inlined_call_operand.hbm [shape: f32[8,16], index: 3, kind: input, shape index: {}]   ;;  %s7017_s4 = inlined_call_operand.hbm [shape: f32[16,8], index: 4, kind: input, shape index: {}]   ;;  %s7018_s5 = inlined_call_operand.hbm [shape: bf16[16,72], index: 5, kind: input, shape index: {}]   ;;  %s7019_s6 = inlined_call_operand.hbm [shape: f32[16,1], index: 6, kind: input, shape index: {}]   ;;  %s7020_s7 = inlined_call_operand.hbm [shape: f32[16,1], index: 7, kind: input, shape index: {}]   ;;  %s7021_s8 = inlined_call_operand.hbm [shape: f32[16,1], index: 8, kind: input, shape index: {}]   ;;  %s7022_s9 = inlined_call_operand.hbm [shape: f32[8,32], index: 9, kind: input, shape index: {}, may-alias: {9,18}]   ;;  %s7023_s10 = inlined_call_operand.hbm [shape: f32[32,8], index: 10, kind: input, shape index: {}, may-alias: {10,19}]   ;;  %s7024_s11 = inlined_call_operand.hbm [shape: bf16[16,144], index: 11, kind: input, shape index: {}]   ;;  %s7025_s12 = inlined_call_operand.hbm [shape: f32[16,1], index: 12, kind: input, shape index: {}]   ;;  %s7026_s13 = inlined_call_operand.hbm [shape: bf16[16,8], index: 13, kind: input, shape index: {}]   ;;  %s7027_s14 = inlined_call_operand.hbm [shape: f32[16,1], index: 14, kind: input, shape index: {}]   ;;  %s7028_s15 = inlined_call_operand.hbm [shape: f32[9,256], index: 15, kind: input, shape index: {}]   ;;  %s7029_s16 = inlined_call_operand.hbm [shape: f32[16,1], index: 16, kind: input, shape index: {}]   ;;  %s7030_s17 = inlined_call_operand.hbm [shape: f32[16,1], index: 17, kind: input, shape index: {}]   ;;  %s7031_s18 = inlined_call_operand.hbm [shape: f32[8,32], index: 18, kind: input, shape index: {}, may-alias: {9,18}]   ;;  %s7032_s19 = inlined_call_operand.hbm [shape: f32[32,8], index: 19, kind: input, shape index: {}, may-alias: {10,19}]   ;;  %s7033_s20 = inlined_call_operand.hbm [shape: bf16[48,16], index: 20, kind: input, shape index: {}]   ;;  %s7034_s21 = inlined_call_operand.hbm [shape: bf16[16,16], index: 21, kind: input, shape index: {}]   ;;  %s7035_s22 = inlined_call_operand.hbm [shape: f32[16,1], index: 22, kind: input, shape index: {}]   ;;  %s7036_s23 = inlined_call_operand.hbm [shape: f32[2,16,256], index: 23, kind: output, shape index: {}]  }
   0x1   :  { %7108 = sst [smem:[#allocation78_spill]] %s7013_s0 }
   0x2   :  { %7109 = sst [smem:[#allocation79_spill]] %s7014_s1 }
   0x3   :  { %7110 = sst [smem:[#allocation80_spill]] %s7015_s2 }
   0x4   :  { %7111 = sst [smem:[#allocation81_spill]] %s7016_s3 }
   0x5   :  { %7112 = sst [smem:[#allocation82_spill]] %s7017_s4 }
   0x6   :  { %7113 = sst [smem:[#allocation83_spill]] %s7018_s5 }
   0x7   :  { %7114 = sst [smem:[#allocation84_spill]] %s7019_s6 }
   0x8   :  { %7115 = sst [smem:[#allocation85_spill]] %s7020_s7 }
   0x9   :  { %7116 = sst [smem:[#allocation86_spill]] %s7021_s8 }
   0xa   :  { %7117 = sst [smem:[#allocation87_spill]] %s7022_s9 }
   0xb   :  { %7118 = sst [smem:[#allocation88_spill]] %s7023_s10 }
   0xc   :  { %7119 = sst [smem:[#allocation89_spill]] %s7024_s11 }
   0xd   :  { %7120 = sst [smem:[#allocation90_spill]] %s7029_s16 }
   0xe   :  { %7121 = sst [smem:[#allocation91_spill]] %s7031_s18 }
   0xf   :  { %7122 = sst [smem:[#allocation92_spill]] %s7033_s20 }
  0x10   :  { %7123 = sst [smem:[#allocation93_spill]] %s7035_s22 }
  0x11   :  { %7124 = sst [smem:[#allocation94_spill]] %s7036_s23 }
  0x12   :  { %28 = vsyncpa [#allocation3], 0 }
  0x13   :  { %30 = vsyncpa [#allocation3 + $0x1], 0 }
  0x14   :  { %31 = vsyncpa [#allocation6], 0 }
  0x15   :  { %32 = vsyncpa [#allocation9], 0 }
  0x16   :  { %33 = vsyncpa [#allocation12], 0 }
  0x17   :  { %34 = vsyncpa [#allocation15], 0 }
  0x18   :  { %35 = vsyncpa [#allocation18], 0 }
  0x19   :  { %36 = vsyncpa [#allocation21], 0 }
  0x1a   :  { %37 = vsyncpa [#allocation24], 0 }
  0x1b   :  { %38 = vsyncpa [#allocation27], 0 }
  0x1c   :  { %39 = vsyncpa [#allocation30], 0 }
  0x1d   :  { %40 = vsyncpa [#allocation33], 0 }
  0x1e   :  { %41 = vsyncpa [#allocation36], 0 }
  0x1f   :  { %42 = vsyncpa [#allocation4], 0 }
  0x20   :  { %44 = vsyncpa [#allocation4 + $0x1], 0  ;;  %s5276_s4 = smov 0   ;;  %s5278_s30 = smov 0  }
  0x21   :  { %s5280_s24 = smov 0   ;;  %s5282_s25 = smov 0  }
  0x22 LB: > { %7125 = sst [smem:[#allocation52_spill]] %s5099_s4  ;;  %s5113_s5 = smov [#allocation5]   ;;  %s5111_s25 = sphi %s5282_s25, %s5830_s25   ;;  %s5107_s24 = sphi %s5280_s24, %s7275_s24   ;;  %s5103_s30 = sphi %s5278_s30, %s7274_s30   ;;  %s5099_s4 = sphi %s5276_s4, %s7273_s4  }
  0x23   : > { %7126 = sst [smem:[#allocation53_spill]] %s5103_s30  ;;  %s582_s1 = sshll.u32 %s5113_s5, 4  ;;  %s583_s1 = int_to_ptr.vmem [resolvable:$true] %s582_s1 }
  0x24   : > { %7127 = sst [smem:[#allocation54_spill]] %s5107_s24  ;;  %s5297_s26 = sadd.s32 4294967295, %s5111_s25  }
  0x25   : > { %7128 = sst [smem:[#allocation55_spill]] %s5111_s25  ;;  %p3622_p0 = scmp.ge.s32.totalorder %s5111_s25, 1 }
  0x26   : > { %7129 = sst [smem:[#allocation56_spill]] %s5297_s26  ;;  %p7050_p1 = scmp.eq.s32.totalorder %s5297_s26, 0 }
  0x27   : > { %p569_p2 = scmp.lt.s32.totalorder %s5111_s25, 3  ;;  %s5114_s6 = smov [#allocation8]  }
  0x28   : > { %s604_s27 = sshll.u32 %s5114_s6, 4  ;;  %s5115_s7 = smov [#allocation11]   ;;  %s5309_s27 = int_to_ptr.vmem [resolvable:$true] %s604_s27 }
  0x29   : > { %p5302_p3 = pnand %p3622_p0, %p569_p2  ;;  %s627_s28 = sshll.u32 %s5115_s7, 4  ;;  %s5317_s28 = int_to_ptr.vmem [resolvable:$true] %s627_s28 }
  0x2a   : > { %s7133_s5 = sld [smem:[#allocation79_spill]] }
  0x2b   : > { %s7130_s2 = scalar_select %p5302_p3, 1, 0 }
  0x2c   : > { %p3922_p5 = pneg %p5302_p3 }
  0x2d   : > { %7131 = sst [smem:[#allocation57_spill]] %s7130_s2 }
  0x2e   : > { %p5313_p6 = pnand %p3922_p5, %p7050_p1 }
  0x30   : > { %s4355_s23 = scalar_lea.hbm %s7133_s5, 128  ;;  %p5327_p8 = pneg %p5313_p6 }
  0x31   : > { %p4356_p7 = scmp.ne.s32.totalorder %s7133_s5, %s4355_s23  ;;  %p4362_p11 = scmp.lt.u32.totalorder %s4355_s23, %s7133_s5 }
  0x33   : > { %p4358_p9 = pnand %p5327_p8, %p4356_p7 }
  0x35   : > { %p4359_p10 = pneg %p4358_p9 }
  0x37   : > { %p4364_p12 = pnand %p4362_p11, %p4359_p10 }
  0x39   : > { %4367 = shalt.err (!%p4364_p12)
}
  0x3a   : > { %s4368_s3 = scalar_lea.vmem %s583_s1, 128  ;;  %p4376_p5 = scmp.lt.s32.totalorder %s583_s1, %s583_s1 }
  0x3b   : > { %p4369_p13 = scmp.ne.s32.totalorder %s583_s1, %s4368_s3  ;;  %p4377_p4 = scmp.lt.s32.totalorder %s4368_s3, %s4368_s3 }
  0x3d   : > { %p4371_p0 = pnand %p4369_p13, %p5327_p8  ;;  %p4378_p1 = por %p4377_p4, %p4376_p5 }
  0x3f   : > { %p4372_p2 = pneg %p4371_p0 }
  0x41   : > { %p4379_p3 = pnand %p4378_p1, %p4372_p2 }
  0x43   : > { %4382 = shalt.err (!%p4379_p3)
}
  0x44   : > { %3925 = dma.hbm_to_vmem [thread:$0]  (!%p5313_p6), %s7133_s5, 128, %s583_s1, [#allocation6]  }
  0x45   : > { %s7135_s0 = sld [smem:[#allocation81_spill]] }
  0x4b   : > { %s4383_s7 = scalar_lea.hbm %s7135_s0, 128 }
  0x4c   : > { %p4384_p7 = scmp.ne.s32.totalorder %s7135_s0, %s4383_s7  ;;  %p4390_p1 = scmp.lt.u32.totalorder %s4383_s7, %s7135_s0 }
  0x4e   : > { %p4386_p9 = pnand %p4384_p7, %p5327_p8 }
  0x50   : > { %p4387_p4 = pneg %p4386_p9 }
  0x52   : > { %p4392_p3 = pnand %p4390_p1, %p4387_p4 }
  0x54   : > { %4395 = shalt.err (!%p4392_p3)
}
  0x55   : > { %s4396_s1 = scalar_lea.vmem %s5309_s27, 128  ;;  %p4404_p13 = scmp.lt.s32.totalorder %s5309_s27, %s5309_s27 }
  0x56   : > { %p4397_p10 = scmp.ne.s32.totalorder %s5309_s27, %s4396_s1  ;;  %p4405_p0 = scmp.lt.s32.totalorder %s4396_s1, %s4396_s1 }
  0x58   : > { %p4399_p11 = pnand %p4397_p10, %p5327_p8  ;;  %p4406_p2 = por %p4405_p0, %p4404_p13 }
  0x5a   : > { %p4400_p12 = pneg %p4399_p11 }
  0x5c   : > { %p4407_p5 = pnand %p4406_p2, %p4400_p12 }
  0x5e   : > { %4410 = shalt.err (!%p4407_p5)
}
  0x5f   : > { %3931 = dma.hbm_to_vmem [thread:$0]  (!%p5313_p6), %s7135_s0, 128, %s5309_s27, [#allocation9]  }
  0x60   : > { %s7136_s2 = sld [smem:[#allocation83_spill]] }
  0x66   : > { %s4411_s23 = scalar_lea.hbm %s7136_s2, 128 }
  0x67   : > { %p4412_p7 = scmp.ne.s32.totalorder %s7136_s2, %s4411_s23  ;;  %p4418_p1 = scmp.lt.u32.totalorder %s4411_s23, %s7136_s2 }
  0x69   : > { %p4414_p9 = pnand %p4412_p7, %p5327_p8 }
  0x6b   : > { %p4415_p4 = pneg %p4414_p9 }
  0x6d   : > { %p4420_p3 = pnand %p4418_p1, %p4415_p4 }
  0x6f   : > { %4423 = shalt.err (!%p4420_p3)
}
  0x70   : > { %s4424_s27 = scalar_lea.vmem %s5317_s28, 128  ;;  %p4432_p13 = scmp.lt.s32.totalorder %s5317_s28, %s5317_s28 }
  0x71   : > { %p4425_p10 = scmp.ne.s32.totalorder %s5317_s28, %s4424_s27  ;;  %p4433_p0 = scmp.lt.s32.totalorder %s4424_s27, %s4424_s27 }
  0x73   : > { %p4427_p11 = pnand %p4425_p10, %p5327_p8  ;;  %p4434_p2 = por %p4433_p0, %p4432_p13 }
  0x75   : > { %p4428_p12 = pneg %p4427_p11 }
  0x77   : > { %p4435_p5 = pnand %p4434_p2, %p4428_p12 }
  0x79   : > { %4438 = shalt.err (!%p4435_p5)
}
  0x7a   : > { %s7062_s30 = smov 64   ;;  %s7064_s24 = smov 4  }
  0x7b   : > { %3937 = dma.hbm_to_vmem [thread:$0]  (!%p5313_p6), %s7136_s2, 128, %s5317_s28, [#allocation12], %s7062_s30, %s7062_s30, %s7064_s24  }
  0x7c   : > { %s5118_s23 = smov [#allocation14]   ;;  %s5119_s7 = smov [#allocation17]  }
  0x7d   : > { %s653_s26 = sshll.u32 %s5118_s23, 4  ;;  %s680_s3 = sshll.u32 %s5119_s7, 4  ;;  %s654_s26 = int_to_ptr.vmem [resolvable:$true] %s653_s26  ;;  %s681_s3 = int_to_ptr.vmem [resolvable:$true] %s680_s3 }
  0x7e   : > { %s7137_s0 = sld [smem:[#allocation85_spill]] }
  0x84   : > { %s4439_s5 = scalar_lea.hbm %s7137_s0, 256 }
  0x85   : > { %p4440_p7 = scmp.ne.s32.totalorder %s7137_s0, %s4439_s5  ;;  %p4446_p1 = scmp.lt.u32.totalorder %s4439_s5, %s7137_s0 }
  0x87   : > { %p4442_p9 = pnand %p4440_p7, %p5327_p8 }
  0x89   : > { %p4443_p4 = pneg %p4442_p9 }
  0x8b   : > { %p4448_p3 = pnand %p4446_p1, %p4443_p4 }
  0x8d   : > { %4451 = shalt.err (!%p4448_p3)
}
  0x8e   : > { %s4452_s28 = scalar_lea.vmem %s654_s26, 256  ;;  %p4460_p13 = scmp.lt.s32.totalorder %s654_s26, %s654_s26 }
  0x8f   : > { %p4453_p10 = scmp.ne.s32.totalorder %s654_s26, %s4452_s28  ;;  %p4461_p0 = scmp.lt.s32.totalorder %s4452_s28, %s4452_s28 }
  0x91   : > { %p4455_p11 = pnand %p4453_p10, %p5327_p8  ;;  %p4462_p2 = por %p4461_p0, %p4460_p13 }
  0x93   : > { %p4456_p12 = pneg %p4455_p11 }
  0x95   : > { %p4463_p5 = pnand %p4462_p2, %p4456_p12 }
  0x97   : > { %4466 = shalt.err (!%p4463_p5)
}
  0x98   : > { %s7066_s20 = smov 128   ;;  %s7068_s22 = smov 8  }
  0x99   : > { %3943 = dma.hbm_to_vmem [thread:$0]  (!%p5313_p6), %s7137_s0, 256, %s654_s26, [#allocation15], %s7066_s20, %s7066_s20, %s7068_s22  }
  0x9a   : > { %s7138_s9 = sld [smem:[#allocation87_spill]] }
  0xa0   : > { %s4467_s4 = scalar_lea.hbm %s7138_s9, 128 }
  0xa1   : > { %p4468_p7 = scmp.ne.s32.totalorder %s7138_s9, %s4467_s4  ;;  %p4474_p1 = scmp.lt.u32.totalorder %s4467_s4, %s7138_s9 }
  0xa3   : > { %p4470_p9 = pnand %p4468_p7, %p5327_p8 }
  0xa5   : > { %p4471_p4 = pneg %p4470_p9 }
  0xa7   : > { %p4476_p3 = pnand %p4474_p1, %p4471_p4 }
  0xa9   : > { %4479 = shalt.err (!%p4476_p3)
}
  0xaa   : > { %s4480_s28 = scalar_lea.vmem %s681_s3, 128  ;;  %p4488_p13 = scmp.lt.s32.totalorder %s681_s3, %s681_s3 }
  0xab   : > { %p4481_p10 = scmp.ne.s32.totalorder %s681_s3, %s4480_s28  ;;  %p4489_p0 = scmp.lt.s32.totalorder %s4480_s28, %s4480_s28 }
  0xad   : > { %p4483_p11 = pnand %p4481_p10, %p5327_p8  ;;  %p4490_p2 = por %p4489_p0, %p4488_p13 }
  0xaf   : > { %p4484_p12 = pneg %p4483_p11 }
  0xb1   : > { %p4491_p5 = pnand %p4490_p2, %p4484_p12 }
  0xb3   : > { %4494 = shalt.err (!%p4491_p5)
}
  0xb4   : > { %3949 = dma.hbm_to_vmem [thread:$0]  (!%p5313_p6), %s7138_s9, 128, %s681_s3, [#allocation18]  }
  0xb5   : > { %s5122_s18 = smov [#allocation20]   ;;  %s5123_s25 = smov [#allocation23]  }
  0xb6   : > { %s703_s5 = sshll.u32 %s5122_s18, 4  ;;  %s729_s4 = sshll.u32 %s5123_s25, 4  ;;  %s704_s5 = int_to_ptr.vmem [resolvable:$true] %s703_s5  ;;  %s730_s4 = int_to_ptr.vmem [resolvable:$true] %s729_s4 }
  0xb7   : > { %s7139_s11 = sld [smem:[#allocation89_spill]] }
  0xbd   : > { %s4495_s1 = scalar_lea.hbm %s7139_s11, 256 }
  0xbe   : > { %p4496_p7 = scmp.ne.s32.totalorder %s7139_s11, %s4495_s1  ;;  %p4502_p1 = scmp.lt.u32.totalorder %s4495_s1, %s7139_s11 }
  0xc0   : > { %p4498_p9 = pnand %p4496_p7, %p5327_p8 }
  0xc2   : > { %p4499_p4 = pneg %p4498_p9 }
  0xc4   : > { %p4504_p3 = pnand %p4502_p1, %p4499_p4 }
  0xc6   : > { %4507 = shalt.err (!%p4504_p3)
}
  0xc7   : > { %s4508_s3 = scalar_lea.vmem %s704_s5, 256  ;;  %p4516_p13 = scmp.lt.s32.totalorder %s704_s5, %s704_s5 }
  0xc8   : > { %p4509_p10 = scmp.ne.s32.totalorder %s704_s5, %s4508_s3  ;;  %p4517_p0 = scmp.lt.s32.totalorder %s4508_s3, %s4508_s3 }
  0xca   : > { %p4511_p11 = pnand %p4509_p10, %p5327_p8  ;;  %p4518_p2 = por %p4517_p0, %p4516_p13 }
  0xcc   : > { %p4512_p12 = pneg %p4511_p11 }
  0xce   : > { %p4519_p5 = pnand %p4518_p2, %p4512_p12 }
  0xd0   : > { %4522 = shalt.err (!%p4519_p5)
}
  0xd1   : > { %3955 = dma.hbm_to_vmem [thread:$0]  (!%p5313_p6), %s7139_s11, 256, %s704_s5, [#allocation21], %s7066_s20, %s7066_s20, %s7068_s22  }
  0xd2   : > { %s4523_s23 = scalar_lea.hbm %s7026_s13, 128 }
  0xd3   : > { %p4524_p7 = scmp.ne.s32.totalorder %s7026_s13, %s4523_s23  ;;  %p4530_p1 = scmp.lt.u32.totalorder %s4523_s23, %s7026_s13 }
  0xd5   : > { %p4526_p9 = pnand %p4524_p7, %p5327_p8 }
  0xd7   : > { %p4527_p4 = pneg %p4526_p9 }
  0xd9   : > { %p4532_p3 = pnand %p4530_p1, %p4527_p4 }
  0xdb   : > { %4535 = shalt.err (!%p4532_p3)
}
  0xdc   : > { %s4536_s26 = scalar_lea.vmem %s730_s4, 128  ;;  %p4544_p13 = scmp.lt.s32.totalorder %s730_s4, %s730_s4 }
  0xdd   : > { %p4537_p10 = scmp.ne.s32.totalorder %s730_s4, %s4536_s26  ;;  %p4545_p0 = scmp.lt.s32.totalorder %s4536_s26, %s4536_s26 }
  0xdf   : > { %p4539_p11 = pnand %p4537_p10, %p5327_p8  ;;  %p4546_p2 = por %p4545_p0, %p4544_p13 }
  0xe1   : > { %p4540_p12 = pneg %p4539_p11 }
  0xe3   : > { %p4547_p5 = pnand %p4546_p2, %p4540_p12 }
  0xe5   : > { %4550 = shalt.err (!%p4547_p5)
}
  0xe6   : > { %s7140_s5 = smov 64   ;;  %s5124_s16 = smov [#allocation26]  }
  0xe7   : > { %3961 = dma.hbm_to_vmem [thread:$0]  (!%p5313_p6), %s7026_s13, 128, %s730_s4, [#allocation24], %s7140_s5, %s7140_s5, %s7064_s24  }
  0xe8   : > { %s755_s18 = sshll.u32 %s5124_s16, 4  ;;  %s4551_s7 = scalar_lea.hbm %s7028_s15, 512  ;;  %s756_s18 = int_to_ptr.vmem [resolvable:$true] %s755_s18 }
  0xe9   : > { %p4552_p7 = scmp.ne.s32.totalorder %s7028_s15, %s4551_s7  ;;  %p4558_p1 = scmp.lt.u32.totalorder %s4551_s7, %s7028_s15 }
  0xeb   : > { %p4554_p9 = pnand %p4552_p7, %p5327_p8 }
  0xed   : > { %p4555_p4 = pneg %p4554_p9 }
  0xef   : > { %p4560_p3 = pnand %p4558_p1, %p4555_p4 }
  0xf1   : > { %4563 = shalt.err (!%p4560_p3)
}
  0xf2   : > { %s4564_s4 = scalar_lea.vmem %s756_s18, 512  ;;  %p4572_p13 = scmp.lt.s32.totalorder %s756_s18, %s756_s18 }
  0xf3   : > { %p4565_p10 = scmp.ne.s32.totalorder %s756_s18, %s4564_s4  ;;  %p4573_p0 = scmp.lt.s32.totalorder %s4564_s4, %s4564_s4 }
  0xf5   : > { %p4567_p11 = pnand %p4565_p10, %p5327_p8  ;;  %p4574_p2 = por %p4573_p0, %p4572_p13 }
  0xf7   : > { %p4568_p12 = pneg %p4567_p11 }
  0xf9   : > { %p4575_p5 = pnand %p4574_p2, %p4568_p12 }
  0xfb   : > { %4578 = shalt.err (!%p4575_p5)
}
  0xfc   : > { %s5125_s3 = smov 256   ;;  %s5126_s30 = smov 16  }
  0xfd   : > { %3967 = dma.hbm_to_vmem [thread:$0]  (!%p5313_p6), %s7028_s15, 512, %s756_s18, [#allocation27], %s5125_s3, %s5125_s3, %s5126_s30  }
  0xfe   : > { %s5127_s23 = smov [#allocation29]   ;;  %s5128_s1 = smov [#allocation32]  }
  0xff   : > { %s781_s7 = sshll.u32 %s5127_s23, 4  ;;  %s805_s27 = sshll.u32 %s5128_s1, 4  ;;  %s782_s7 = int_to_ptr.vmem [resolvable:$true] %s781_s7  ;;  %s5491_s27 = int_to_ptr.vmem [resolvable:$true] %s805_s27 }
 0x100   : > { %s4579_s4 = scalar_lea.hbm %s7030_s17, 256 }
 0x101   : > { %p4580_p7 = scmp.ne.s32.totalorder %s7030_s17, %s4579_s4  ;;  %p4586_p1 = scmp.lt.u32.totalorder %s4579_s4, %s7030_s17 }
 0x103   : > { %p4582_p9 = pnand %p4580_p7, %p5327_p8 }
 0x105   : > { %p4583_p4 = pneg %p4582_p9 }
 0x107   : > { %p4588_p3 = pnand %p4586_p1, %p4583_p4 }
 0x109   : > { %4591 = shalt.err (!%p4588_p3)
}
 0x10a   : > { %s4592_s3 = scalar_lea.vmem %s782_s7, 256  ;;  %p4600_p13 = scmp.lt.s32.totalorder %s782_s7, %s782_s7 }
 0x10b   : > { %p4593_p10 = scmp.ne.s32.totalorder %s782_s7, %s4592_s3  ;;  %p4601_p0 = scmp.lt.s32.totalorder %s4592_s3, %s4592_s3 }
 0x10d   : > { %p4595_p11 = pnand %p4593_p10, %p5327_p8  ;;  %p4602_p2 = por %p4601_p0, %p4600_p13 }
 0x10f   : > { %p4596_p12 = pneg %p4595_p11 }
 0x111   : > { %p4603_p5 = pnand %p4602_p2, %p4596_p12 }
 0x113   : > { %4606 = shalt.err (!%p4603_p5)
}
 0x114   : > { %s7141_s24 = smov 128   ;;  %s4607_s1 = scalar_lea.hbm %s7032_s19, 512 }
 0x115   : > { %3973 = dma.hbm_to_vmem [thread:$0]  (!%p5313_p6), %s7030_s17, 256, %s782_s7, [#allocation30], %s7141_s24, %s7141_s24, %s7068_s22  }
 0x116   : > { %p4608_p7 = scmp.ne.s32.totalorder %s7032_s19, %s4607_s1  ;;  %p4614_p1 = scmp.lt.u32.totalorder %s4607_s1, %s7032_s19 }
 0x118   : > { %p4610_p9 = pnand %p4608_p7, %p5327_p8 }
 0x11a   : > { %p4611_p4 = pneg %p4610_p9 }
 0x11c   : > { %p4616_p3 = pnand %p4614_p1, %p4611_p4 }
 0x11e   : > { %4619 = shalt.err (!%p4616_p3)
}
 0x11f   : > { %s4620_s7 = scalar_lea.vmem %s5491_s27, 512  ;;  %p4628_p13 = scmp.lt.s32.totalorder %s5491_s27, %s5491_s27 }
 0x120   : > { %p4621_p10 = scmp.ne.s32.totalorder %s5491_s27, %s4620_s7  ;;  %p4629_p0 = scmp.lt.s32.totalorder %s4620_s7, %s4620_s7 }
 0x122   : > { %p4623_p11 = pnand %p4621_p10, %p5327_p8  ;;  %p4630_p2 = por %p4629_p0, %p4628_p13 }
 0x124   : > { %p4624_p12 = pneg %p4623_p11 }
 0x126   : > { %p4631_p5 = pnand %p4630_p2, %p4624_p12 }
 0x128   : > { %4634 = shalt.err (!%p4631_p5)
}
 0x129   : > { %3979 = dma.hbm_to_vmem [thread:$0]  (!%p5313_p6), %s7032_s19, 512, %s5491_s27, [#allocation33], %s7141_s24, %s7141_s24, %s7068_s22  }
 0x12a   : > { %s5129_s20 = smov [#allocation35]   ;;  %s5130_s25 = smov [#allocation7]  }
 0x12b   : > { %s831_s30 = sshll.u32 %s5129_s20, 4  ;;  %s593_s23 = sshll.u32 %s5130_s25, 4  ;;  %s832_s30 = int_to_ptr.vmem [resolvable:$true] %s831_s30  ;;  %s5540_s23 = int_to_ptr.vmem [resolvable:$true] %s593_s23 }
 0x12c   : > { %s4635_s26 = scalar_lea.hbm %s7034_s21, 128 }
 0x12d   : > { %p4636_p7 = scmp.ne.s32.totalorder %s7034_s21, %s4635_s26  ;;  %p4642_p1 = scmp.lt.u32.totalorder %s4635_s26, %s7034_s21 }
 0x12f   : > { %p4638_p9 = pnand %p4636_p7, %p5327_p8 }
 0x131   : > { %p4639_p4 = pneg %p4638_p9 }
 0x133   : > { %p4644_p3 = pnand %p4642_p1, %p4639_p4 }
 0x135   : > { %4647 = shalt.err (!%p4644_p3)
}
 0x136   : > { %s4648_s18 = scalar_lea.vmem %s832_s30, 128  ;;  %p4656_p13 = scmp.lt.s32.totalorder %s832_s30, %s832_s30 }
 0x137   : > { %p4649_p10 = scmp.ne.s32.totalorder %s832_s30, %s4648_s18  ;;  %p4657_p0 = scmp.lt.s32.totalorder %s4648_s18, %s4648_s18 }
 0x139   : > { %p4651_p11 = pnand %p4649_p10, %p5327_p8  ;;  %p4658_p2 = por %p4657_p0, %p4656_p13 }
 0x13b   : > { %p4652_p12 = pneg %p4651_p11 }
 0x13d   : > { %p4659_p5 = pnand %p4658_p2, %p4652_p12 }
 0x13f   : > { %4662 = shalt.err (!%p4659_p5)
}
 0x140   : > { %s7142_s3 = smov 4   ;;  %s7143_s26 = sld [smem:[#allocation80_spill]] }
 0x141   : > { %3985 = dma.hbm_to_vmem [thread:$0]  (!%p5313_p6), %s7034_s21, 128, %s832_s30, [#allocation36], %s7140_s5, %s7140_s5, %s7142_s3  }
 0x146   : > { %s4663_s4 = scalar_lea.hbm %s7143_s26, 128 }
 0x147   : > { %p4664_p7 = scmp.ne.s32.totalorder %s7143_s26, %s4663_s4  ;;  %p4670_p1 = scmp.lt.u32.totalorder %s4663_s4, %s7143_s26 }
 0x149   : > { %p4666_p9 = pnand %p4664_p7, %p5327_p8 }
 0x14b   : > { %p4667_p4 = pneg %p4666_p9 }
 0x14d   : > { %p4672_p3 = pnand %p4670_p1, %p4667_p4 }
 0x14f   : > { %4675 = shalt.err (!%p4672_p3)
}
 0x150   : > { %s4676_s30 = scalar_lea.vmem %s5540_s23, 128  ;;  %p4684_p13 = scmp.lt.s32.totalorder %s5540_s23, %s5540_s23 }
 0x151   : > { %p4677_p10 = scmp.ne.s32.totalorder %s5540_s23, %s4676_s30  ;;  %p4685_p0 = scmp.lt.s32.totalorder %s4676_s30, %s4676_s30 }
 0x153   : > { %p4679_p11 = pnand %p4677_p10, %p5327_p8  ;;  %p4686_p2 = por %p4685_p0, %p4684_p13 }
 0x155   : > { %p4680_p12 = pneg %p4679_p11 }
 0x157   : > { %p4687_p5 = pnand %p4686_p2, %p4680_p12 }
 0x159   : > { %4690 = shalt.err (!%p4687_p5)
}
 0x15a   : > { %3928 = dma.hbm_to_vmem [thread:$0]  (!%p5313_p6), %s7143_s26, 128, %s5540_s23, [#allocation6]  }
 0x15b   : > { %s5131_s1 = smov [#allocation10]   ;;  %s5132_s4 = smov [#allocation13]  }
 0x15c   : > { %s614_s28 = sshll.u32 %s5131_s1, 4  ;;  %s640_s16 = sshll.u32 %s5132_s4, 4  ;;  %s615_s28 = int_to_ptr.vmem [resolvable:$true] %s614_s28  ;;  %s5586_s16 = int_to_ptr.vmem [resolvable:$true] %s640_s16 }
 0x15d   : > { %s7144_s18 = sld [smem:[#allocation82_spill]] }
 0x163   : > { %s4691_s30 = scalar_lea.hbm %s7144_s18, 256 }
 0x164   : > { %p4692_p7 = scmp.ne.s32.totalorder %s7144_s18, %s4691_s30  ;;  %p4698_p1 = scmp.lt.u32.totalorder %s4691_s30, %s7144_s18 }
 0x166   : > { %p4694_p9 = pnand %p4692_p7, %p5327_p8 }
 0x168   : > { %p4695_p4 = pneg %p4694_p9 }
 0x16a   : > { %p4700_p3 = pnand %p4698_p1, %p4695_p4 }
 0x16c   : > { %4703 = shalt.err (!%p4700_p3)
}
 0x16d   : > { %s4704_s25 = scalar_lea.vmem %s615_s28, 256  ;;  %p4712_p13 = scmp.lt.s32.totalorder %s615_s28, %s615_s28 }
 0x16e   : > { %p4705_p10 = scmp.ne.s32.totalorder %s615_s28, %s4704_s25  ;;  %p4713_p0 = scmp.lt.s32.totalorder %s4704_s25, %s4704_s25 }
 0x170   : > { %p4707_p11 = pnand %p4705_p10, %p5327_p8  ;;  %p4714_p2 = por %p4713_p0, %p4712_p13 }
 0x172   : > { %p4708_p12 = pneg %p4707_p11 }
 0x174   : > { %p4715_p5 = pnand %p4714_p2, %p4708_p12 }
 0x176   : > { %4718 = shalt.err (!%p4715_p5)
}
 0x177   : > { %s7145_s0 = smov 8   ;;  %s7146_s27 = sld [smem:[#allocation84_spill]] }
 0x178   : > { %3934 = dma.hbm_to_vmem [thread:$0]  (!%p5313_p6), %s7144_s18, 256, %s615_s28, [#allocation9], %s7141_s24, %s7141_s24, %s7145_s0  }
 0x17d   : > { %s4719_s30 = scalar_lea.hbm %s7146_s27, 256 }
 0x17e   : > { %p4720_p7 = scmp.ne.s32.totalorder %s7146_s27, %s4719_s30  ;;  %p4726_p1 = scmp.lt.u32.totalorder %s4719_s30, %s7146_s27 }
 0x180   : > { %p4722_p9 = pnand %p4720_p7, %p5327_p8 }
 0x182   : > { %p4723_p4 = pneg %p4722_p9 }
 0x184   : > { %p4728_p3 = pnand %p4726_p1, %p4723_p4 }
 0x186   : > { %4731 = shalt.err (!%p4728_p3)
}
 0x187   : > { %s4732_s28 = scalar_lea.vmem %s5586_s16, 256  ;;  %p4740_p13 = scmp.lt.s32.totalorder %s5586_s16, %s5586_s16 }
 0x188   : > { %p4733_p10 = scmp.ne.s32.totalorder %s5586_s16, %s4732_s28  ;;  %p4741_p0 = scmp.lt.s32.totalorder %s4732_s28, %s4732_s28 }
 0x18a   : > { %p4735_p11 = pnand %p4733_p10, %p5327_p8  ;;  %p4742_p2 = por %p4741_p0, %p4740_p13 }
 0x18c   : > { %p4736_p12 = pneg %p4735_p11 }
 0x18e   : > { %p4743_p5 = pnand %p4742_p2, %p4736_p12 }
 0x190   : > { %4746 = shalt.err (!%p4743_p5)
}
 0x191   : > { %3940 = dma.hbm_to_vmem [thread:$0]  (!%p5313_p6), %s7146_s27, 256, %s5586_s16, [#allocation12], %s7141_s24, %s7141_s24, %s7145_s0  }
 0x192   : > { %s5133_s1 = smov [#allocation16]   ;;  %s5134_s7 = smov [#allocation19]  }
 0x193   : > { %s666_s4 = sshll.u32 %s5133_s1, 4  ;;  %s690_s30 = sshll.u32 %s5134_s7, 4  ;;  %s667_s4 = int_to_ptr.vmem [resolvable:$true] %s666_s4  ;;  %s5635_s30 = int_to_ptr.vmem [resolvable:$true] %s690_s30 }
 0x194   : > { %s7147_s8 = sld [smem:[#allocation86_spill]] }
 0x19a   : > { %s4747_s25 = scalar_lea.hbm %s7147_s8, 256 }
 0x19b   : > { %p4748_p7 = scmp.ne.s32.totalorder %s7147_s8, %s4747_s25  ;;  %p4754_p1 = scmp.lt.u32.totalorder %s4747_s25, %s7147_s8 }
 0x19d   : > { %p4750_p9 = pnand %p4748_p7, %p5327_p8 }
 0x19f   : > { %p4751_p4 = pneg %p4750_p9 }
 0x1a1   : > { %p4756_p3 = pnand %p4754_p1, %p4751_p4 }
 0x1a3   : > { %4759 = shalt.err (!%p4756_p3)
}
 0x1a4   : > { %s4760_s22 = scalar_lea.vmem %s667_s4, 256  ;;  %p4768_p13 = scmp.lt.s32.totalorder %s667_s4, %s667_s4 }
 0x1a5   : > { %p4761_p10 = scmp.ne.s32.totalorder %s667_s4, %s4760_s22  ;;  %p4769_p0 = scmp.lt.s32.totalorder %s4760_s22, %s4760_s22 }
 0x1a7   : > { %p4763_p11 = pnand %p4761_p10, %p5327_p8  ;;  %p4770_p2 = por %p4769_p0, %p4768_p13 }
 0x1a9   : > { %p4764_p12 = pneg %p4763_p11 }
 0x1ab   : > { %p4771_p5 = pnand %p4770_p2, %p4764_p12 }
 0x1ad   : > { %4774 = shalt.err (!%p4771_p5)
}
 0x1ae   : > { %3946 = dma.hbm_to_vmem [thread:$0]  (!%p5313_p6), %s7147_s8, 256, %s667_s4, [#allocation15], %s7141_s24, %s7141_s24, %s7145_s0  }
 0x1af   : > { %s7148_s10 = sld [smem:[#allocation88_spill]] }
 0x1b5   : > { %s4775_s23 = scalar_lea.hbm %s7148_s10, 512 }
 0x1b6   : > { %p4776_p7 = scmp.ne.s32.totalorder %s7148_s10, %s4775_s23  ;;  %p4782_p1 = scmp.lt.u32.totalorder %s4775_s23, %s7148_s10 }
 0x1b8   : > { %p4778_p9 = pnand %p4776_p7, %p5327_p8 }
 0x1ba   : > { %p4779_p4 = pneg %p4778_p9 }
 0x1bc   : > { %p4784_p3 = pnand %p4782_p1, %p4779_p4 }
 0x1be   : > { %4787 = shalt.err (!%p4784_p3)
}
 0x1bf   : > { %s4788_s4 = scalar_lea.vmem %s5635_s30, 512  ;;  %p4796_p13 = scmp.lt.s32.totalorder %s5635_s30, %s5635_s30 }
 0x1c0   : > { %p4789_p10 = scmp.ne.s32.totalorder %s5635_s30, %s4788_s4  ;;  %p4797_p0 = scmp.lt.s32.totalorder %s4788_s4, %s4788_s4 }
 0x1c2   : > { %p4791_p11 = pnand %p4789_p10, %p5327_p8  ;;  %p4798_p2 = por %p4797_p0, %p4796_p13 }
 0x1c4   : > { %p4792_p12 = pneg %p4791_p11 }
 0x1c6   : > { %p4799_p5 = pnand %p4798_p2, %p4792_p12 }
 0x1c8   : > { %4802 = shalt.err (!%p4799_p5)
}
 0x1c9   : > { %3952 = dma.hbm_to_vmem [thread:$0]  (!%p5313_p6), %s7148_s10, 512, %s5635_s30, [#allocation18], %s7141_s24, %s7141_s24, %s7145_s0  }
 0x1ca   : > { %s5135_s1 = smov [#allocation22]   ;;  %s5136_s20 = smov [#allocation25]  }
 0x1cb   : > { %s716_s7 = sshll.u32 %s5135_s1, 4  ;;  %s742_s23 = sshll.u32 %s5136_s20, 4  ;;  %s717_s7 = int_to_ptr.vmem [resolvable:$true] %s716_s7  ;;  %s5684_s23 = int_to_ptr.vmem [resolvable:$true] %s742_s23 }
 0x1cc   : > { %s4803_s2 = scalar_lea.hbm %s7025_s12, 256 }
 0x1cd   : > { %p4804_p7 = scmp.ne.s32.totalorder %s7025_s12, %s4803_s2  ;;  %p4810_p1 = scmp.lt.u32.totalorder %s4803_s2, %s7025_s12 }
 0x1cf   : > { %p4806_p9 = pnand %p4804_p7, %p5327_p8 }
 0x1d1   : > { %p4807_p4 = pneg %p4806_p9 }
 0x1d3   : > { %p4812_p3 = pnand %p4810_p1, %p4807_p4 }
 0x1d5   : > { %4815 = shalt.err (!%p4812_p3)
}
 0x1d6   : > { %s4816_s9 = scalar_lea.vmem %s717_s7, 256  ;;  %p4824_p13 = scmp.lt.s32.totalorder %s717_s7, %s717_s7 }
 0x1d7   : > { %p4817_p10 = scmp.ne.s32.totalorder %s717_s7, %s4816_s9  ;;  %p4825_p0 = scmp.lt.s32.totalorder %s4816_s9, %s4816_s9 }
 0x1d9   : > { %p4819_p11 = pnand %p4817_p10, %p5327_p8  ;;  %p4826_p2 = por %p4825_p0, %p4824_p13 }
 0x1db   : > { %p4820_p12 = pneg %p4819_p11 }
 0x1dd   : > { %p4827_p5 = pnand %p4826_p2, %p4820_p12 }
 0x1df   : > { %4830 = shalt.err (!%p4827_p5)
}
 0x1e0   : > { %3958 = dma.hbm_to_vmem [thread:$0]  (!%p5313_p6), %s7025_s12, 256, %s717_s7, [#allocation21], %s7141_s24, %s7141_s24, %s7145_s0  }
 0x1e1   : > { %s4831_s2 = scalar_lea.hbm %s7027_s14, 256 }
 0x1e2   : > { %p4832_p7 = scmp.ne.s32.totalorder %s7027_s14, %s4831_s2  ;;  %p4838_p1 = scmp.lt.u32.totalorder %s4831_s2, %s7027_s14 }
 0x1e4   : > { %p4834_p9 = pnand %p4832_p7, %p5327_p8 }
 0x1e6   : > { %p4835_p4 = pneg %p4834_p9 }
 0x1e8   : > { %p4840_p3 = pnand %p4838_p1, %p4835_p4 }
 0x1ea   : > { %4843 = shalt.err (!%p4840_p3)
}
 0x1eb   : > { %s4844_s7 = scalar_lea.vmem %s5684_s23, 256  ;;  %p4852_p13 = scmp.lt.s32.totalorder %s5684_s23, %s5684_s23 }
 0x1ec   : > { %p4845_p10 = scmp.ne.s32.totalorder %s5684_s23, %s4844_s7  ;;  %p4853_p0 = scmp.lt.s32.totalorder %s4844_s7, %s4844_s7 }
 0x1ee   : > { %p4847_p11 = pnand %p4845_p10, %p5327_p8  ;;  %p4854_p2 = por %p4853_p0, %p4852_p13 }
 0x1f0   : > { %p4848_p12 = pneg %p4847_p11 }
 0x1f2   : > { %p4855_p5 = pnand %p4854_p2, %p4848_p12 }
 0x1f4   : > { %4858 = shalt.err (!%p4855_p5)
}
 0x1f5   : > { %3964 = dma.hbm_to_vmem [thread:$0]  (!%p5313_p6), %s7027_s14, 256, %s5684_s23, [#allocation24], %s7141_s24, %s7141_s24, %s7145_s0  }
 0x1f6   : > { %s5137_s20 = smov [#allocation28]   ;;  %s5138_s28 = smov [#allocation31]  }
 0x1f7   : > { %s768_s25 = sshll.u32 %s5137_s20, 4  ;;  %s795_s2 = sshll.u32 %s5138_s28, 4  ;;  %s769_s25 = int_to_ptr.vmem [resolvable:$true] %s768_s25  ;;  %s5733_s2 = int_to_ptr.vmem [resolvable:$true] %s795_s2 }
 0x1f8   : > { %s7149_s22 = sld [smem:[#allocation90_spill]] }
 0x1fe   : > { %s4859_s30 = scalar_lea.hbm %s7149_s22, 256 }
 0x1ff   : > { %p4860_p7 = scmp.ne.s32.totalorder %s7149_s22, %s4859_s30  ;;  %p4866_p1 = scmp.lt.u32.totalorder %s4859_s30, %s7149_s22 }
 0x201   : > { %p4862_p9 = pnand %p4860_p7, %p5327_p8 }
 0x203   : > { %p4863_p4 = pneg %p4862_p9 }
 0x205   : > { %p4868_p3 = pnand %p4866_p1, %p4863_p4 }
 0x207   : > { %4871 = shalt.err (!%p4868_p3)
}
 0x208   : > { %s4872_s1 = scalar_lea.vmem %s769_s25, 256  ;;  %p4880_p13 = scmp.lt.s32.totalorder %s769_s25, %s769_s25 }
 0x209   : > { %p4873_p10 = scmp.ne.s32.totalorder %s769_s25, %s4872_s1  ;;  %p4881_p0 = scmp.lt.s32.totalorder %s4872_s1, %s4872_s1 }
 0x20b   : > { %p4875_p11 = pnand %p4873_p10, %p5327_p8  ;;  %p4882_p2 = por %p4881_p0, %p4880_p13 }
 0x20d   : > { %p4876_p12 = pneg %p4875_p11 }
 0x20f   : > { %p4883_p5 = pnand %p4882_p2, %p4876_p12 }
 0x211   : > { %4886 = shalt.err (!%p4883_p5)
}
 0x212   : > { %3970 = dma.hbm_to_vmem [thread:$0]  (!%p5313_p6), %s7149_s22, 256, %s769_s25, [#allocation27], %s7141_s24, %s7141_s24, %s7145_s0  }
 0x213   : > { %s7150_s4 = sld [smem:[#allocation91_spill]] }
 0x219   : > { %s7151_s7 = smov %s7150_s4  ;;  %s4887_s30 = scalar_lea.hbm %s7150_s4, 128 }
 0x21a   : > { %p4888_p7 = scmp.ne.s32.totalorder %s7151_s7, %s4887_s30  ;;  %p4894_p1 = scmp.lt.u32.totalorder %s4887_s30, %s7151_s7 }
 0x21c   : > { %p4890_p9 = pnand %p4888_p7, %p5327_p8 }
 0x21e   : > { %p4891_p4 = pneg %p4890_p9 }
 0x220   : > { %p4896_p3 = pnand %p4894_p1, %p4891_p4 }
 0x222   : > { %4899 = shalt.err (!%p4896_p3)
}
 0x223   : > { %s4900_s25 = scalar_lea.vmem %s5733_s2, 128  ;;  %p4908_p13 = scmp.lt.s32.totalorder %s5733_s2, %s5733_s2 }
 0x224   : > { %p4901_p10 = scmp.ne.s32.totalorder %s5733_s2, %s4900_s25  ;;  %p4909_p0 = scmp.lt.s32.totalorder %s4900_s25, %s4900_s25 }
 0x226   : > { %p4903_p11 = pnand %p4901_p10, %p5327_p8  ;;  %p4910_p2 = por %p4909_p0, %p4908_p13 }
 0x228   : > { %p4904_p12 = pneg %p4903_p11 }
 0x22a   : > { %p4911_p5 = pnand %p4910_p2, %p4904_p12 }
 0x22c   : > { %4914 = shalt.err (!%p4911_p5)
}
 0x22d   : > { %3976 = dma.hbm_to_vmem [thread:$0]  (!%p5313_p6), %s7151_s7, 128, %s5733_s2, [#allocation30]  }
 0x22e   : > { %s5139_s20 = smov [#allocation34]   ;;  %s5140_s16 = smov [#allocation37]  }
 0x22f   : > { %s818_s28 = sshll.u32 %s5139_s20, 4  ;;  %s844_s4 = sshll.u32 %s5140_s16, 4  ;;  %s819_s28 = int_to_ptr.vmem [resolvable:$true] %s818_s28  ;;  %s5779_s4 = int_to_ptr.vmem [resolvable:$true] %s844_s4 }
 0x230   : > { %s7152_s23 = sld [smem:[#allocation92_spill]] }
 0x236   : > { %s4915_s1 = scalar_lea.hbm %s7152_s23, 384 }
 0x237   : > { %p4916_p7 = scmp.ne.s32.totalorder %s7152_s23, %s4915_s1  ;;  %p4922_p1 = scmp.lt.u32.totalorder %s4915_s1, %s7152_s23 }
 0x239   : > { %p4918_p9 = pnand %p4916_p7, %p5327_p8 }
 0x23b   : > { %p4919_p4 = pneg %p4918_p9 }
 0x23d   : > { %p4924_p3 = pnand %p4922_p1, %p4919_p4 }
 0x23f   : > { %4927 = shalt.err (!%p4924_p3)
}
 0x240   : > { %s4928_s8 = scalar_lea.vmem %s819_s28, 384  ;;  %p4936_p13 = scmp.lt.s32.totalorder %s819_s28, %s819_s28 }
 0x241   : > { %p4929_p10 = scmp.ne.s32.totalorder %s819_s28, %s4928_s8  ;;  %p4937_p0 = scmp.lt.s32.totalorder %s4928_s8, %s4928_s8 }
 0x243   : > { %p4931_p11 = pnand %p4929_p10, %p5327_p8  ;;  %p4938_p2 = por %p4937_p0, %p4936_p13 }
 0x245   : > { %p4932_p12 = pneg %p4931_p11 }
 0x247   : > { %p4939_p5 = pnand %p4938_p2, %p4932_p12 }
 0x249   : > { %4942 = shalt.err (!%p4939_p5)
}
 0x24a   : > { %3982 = dma.hbm_to_vmem [thread:$0]  (!%p5313_p6), %s7152_s23, 384, %s819_s28, [#allocation33], %s7140_s5, %s7140_s5, %s7142_s3  }
 0x24b   : > { %s7153_s9 = sld [smem:[#allocation93_spill]] }
 0x251   : > { %s4943_s1 = scalar_lea.hbm %s7153_s9, 256 }
 0x252   : > { %p4944_p7 = scmp.ne.s32.totalorder %s7153_s9, %s4943_s1  ;;  %p4950_p1 = scmp.lt.u32.totalorder %s4943_s1, %s7153_s9 }
 0x254   : > { %p4946_p9 = pnand %p4944_p7, %p5327_p8 }
 0x256   : > { %p4947_p4 = pneg %p4946_p9 }
 0x258   : > { %p4952_p3 = pnand %p4950_p1, %p4947_p4 }
 0x25a   : > { %4955 = shalt.err (!%p4952_p3)
}
 0x25b   : > { %s4956_s5 = scalar_lea.vmem %s5779_s4, 256  ;;  %p4964_p13 = scmp.lt.s32.totalorder %s5779_s4, %s5779_s4 }
 0x25c   : > { %p4957_p10 = scmp.ne.s32.totalorder %s5779_s4, %s4956_s5  ;;  %p4965_p0 = scmp.lt.s32.totalorder %s4956_s5, %s4956_s5 }
 0x25e   : > { %p4959_p11 = pnand %p4957_p10, %p5327_p8  ;;  %p4966_p2 = por %p4965_p0, %p4964_p13 }
 0x260   : > { %p4960_p12 = pneg %p4959_p11 }
 0x262   : > { %p4967_p5 = pnand %p4966_p2, %p4960_p12 }
 0x264   : > { %4970 = shalt.err (!%p4967_p5)
}
 0x265   : > { %s7154_s11 = sld [smem:[#allocation55_spill]]  ;;  %s7155_s6 = sld [smem:[#allocation54_spill]] }
 0x266   : > { %s7156_s20 = sld [smem:[#allocation53_spill]]  ;;  %s7157_s16 = sld [smem:[#allocation52_spill]] }
 0x267   : > { %s7158_s30 = sld [smem:[#allocation56_spill]] }
 0x268   : > { %3988 = dma.hbm_to_vmem [thread:$0]  (!%p5313_p6), %s7153_s9, 256, %s5779_s4, [#allocation36], %s7141_s24, %s7141_s24, %s7145_s0  }
 0x26b   : > { %s3621_s29 = sadd.s32 4294967294, %s7154_s11   ;;  %s5830_s25 = sadd.s32 1, %s7154_s11  }
 0x26c   : > { %s54_s1 = ssub.s32 %s7154_s11, %s5830_s25  ;;  %s57_s10 = sadd.s32 1, %s7155_s6 }
 0x26d   : > { %p55_p8 = scmp.eq.s32.totalorder %s54_s1, 0  ;;  %p64_p7 = scmp.ne.s32.totalorder %s7155_s6, %s7156_s20 }
 0x26e   : > { %p65_p9 = scmp.eq.s32.totalorder %s7154_s11, 0  ;;  %p70_p4 = scmp.ne.s32.totalorder %s7156_s20, %s7157_s16 }
 0x26f   : > { %s5841_s2 = scalar_select %p55_p8, %s7155_s6, %s57_s10  }
 0x270   : > { %p5843_p1 = por %p65_p9, %p64_p7  ;;  %p7160_p3 = scmp.eq.s32.totalorder %s7158_s30, 0 }
 0x271   : > { %p556_p10 = scmp.eq.s32.totalorder %s7158_s30, 1  ;;  %p562_p11 = scmp.eq.s32.totalorder %s3621_s29, 1 }
 0x272   : > { %p5849_p6 = por %p7160_p3, %p70_p4  ;;  %p4019_p12 = scmp.lt.s32.totalorder %s7154_s11, 2 }
 0x273   : > { %s858_s0 = sand.u32 1, %s7155_s6   ;;  %p5856_p13 = por %p556_p10, %p64_p7 }
 0x274   : > { %p5860_p0 = por %p562_p11, %p70_p4  ;;  %s3646_s3 = sshll.u32 %s858_s0, 4 }
 0x275   : > { %s7162_s4 = scalar_select %p5856_p13, 1, 0 }
 0x276   : > { %s7163_s5 = scalar_select %p5860_p0, 1, 0 }
 0x277   : > { %s3725_s28 = sshll.u32 %s7154_s11, 8  ;;  %s7164_s1 = sld [smem:[#allocation78_spill]] }
 0x278   : > { %s862_s6 = scalar_lea.vmem [#allocation2], %s3646_s3  ;;  %p5874_p2 = pnand %p4019_p12, %p5843_p1 }
 0x279   : > { %s870_s30 = sshll.u32 %s862_s6, 4  ;;  %s859_s11 = scalar_lea.sflag [#allocation3], %s858_s0  ;;  %s5870_s30 = int_to_ptr.vmem [resolvable:$true] %s870_s30 }
 0x27a   : > { %p4973_p8 = pneg %p5874_p2 }
 0x27d   : > { %s5868_s10 = scalar_lea.hbm %s7164_s1, %s3725_s28  ;;  %s4976_s20 = scalar_lea.hbm %s7164_s1, 512 }
 0x27e   : > { %s4971_s7 = scalar_lea.hbm %s5868_s10, 256  ;;  %p4977_p4 = scmp.lt.u32.totalorder %s5868_s10, %s7164_s1 }
 0x27f   : > { %p4972_p5 = scmp.ne.s32.totalorder %s5868_s10, %s4971_s7  ;;  %p4978_p1 = scmp.lt.u32.totalorder %s4976_s20, %s4971_s7 }
 0x280   : > { %p4980_p10 = scmp.lt.u32.totalorder %s4971_s7, %s5868_s10 }
 0x281   : > { %p4974_p7 = pnand %p4973_p8, %p4972_p5  ;;  %p4979_p3 = por %p4978_p1, %p4977_p4 }
 0x283   : > { %p4975_p9 = pneg %p4974_p7  ;;  %p4981_p11 = por %p4980_p10, %p4979_p3 }
 0x285   : > { %p4982_p12 = pnand %p4981_p11, %p4975_p9 }
 0x287   : > { %4985 = shalt.err (!%p4982_p12)
}
 0x288   : > { %s4986_s0 = scalar_lea.vmem %s5870_s30, 256  ;;  %s5141_s6 = smov [#allocation2]  }
 0x289   : > { %p4987_p5 = scmp.ne.s32.totalorder %s5870_s30, %s4986_s0  ;;  %s4991_s3 = sshll.u32 %s5141_s6, 4  ;;  %s4992_s3 = int_to_ptr.vmem [resolvable:$false] %s4991_s3 }
 0x28a   : > { %s4993_s28 = scalar_lea.vmem %s4992_s3, 512  ;;  %p4994_p13 = scmp.lt.s32.totalorder %s5870_s30, %s4992_s3 }
 0x28b   : > { %p4989_p7 = pnand %p4987_p5, %p4973_p8  ;;  %p4995_p4 = scmp.lt.s32.totalorder %s4993_s28, %s4986_s0 }
 0x28d   : > { %p4990_p0 = pneg %p4989_p7  ;;  %p4996_p1 = por %p4995_p4, %p4994_p13 }
 0x28f   : > { %p4997_p3 = pnand %p4996_p1, %p4990_p0 }
 0x291   : > { %5000 = shalt.err (!%p4997_p3)
}
 0x292   : > { %3992 = dma.hbm_to_vmem [thread:$0]  (!%p5874_p2), %s5868_s10, 256, %s5870_s30, %s859_s11  }
 0x293   : > { %s7166_s7 = sld [smem:[#allocation57_spill]] }
 0x299   : > { %p7167_p9 = scmp.ne.s32.totalorder %s7166_s7, 0 }
 0x29b   : > { %879 = sbr.rel (%p7167_p9) target bundleno = 5302 (0x14b6), region = 112 }
 0x2a2   : > { %s7168_s20 = sld [smem:[#allocation53_spill]] }
 0x2a8   : > { %s5906_s8 = sand.u32 1, %s7168_s20  }
 0x2a9   : > { %s3650_s16 = sshll.u32 %s5906_s8, 4  ;;  %s882_s6 = scalar_lea.sflag [#allocation3], %s5906_s8 }
 0x2aa   : > { %s5910_s0 = scalar_lea.vmem [#allocation2], %s3650_s16 }
 0x2ab   : > { %5046 = dma.done.wait (%p5849_p6), %s882_s6, 256  }
 0x2ac   : > { %5048 = vsyncadd (%p5849_p6), %s882_s6, 4294967040  ;;  %s7169_s29 = sld [smem:[#allocation56_spill]] }
 0x2b2   : > { %p7170_p13 = scmp.eq.s32.totalorder %s7169_s29, 0 }
 0x2b4   : > { %5050 = dma.done.wait (%p7170_p13), [#allocation6], 256   ;;  %p7171_p0 = pmov %p7170_p13 }
 0x2b6   : > { %5052 = vsyncadd (%p7171_p0), [#allocation6], 4294967040  ;;  %p7172_p2 = pmov %p7171_p0 }
 0x2b7   : > { %p7173_p8 = pmov %p7171_p0 }
 0x2b8   : > { %5054 = dma.done.wait (%p7172_p2), [#allocation9], 384  }
 0x2b9   : > { %5056 = vsyncadd (%p7173_p8), [#allocation9], 4294966912  ;;  %p7174_p10 = pmov %p7171_p0 }
 0x2ba   : > { %p7175_p11 = pmov %p7171_p0 }
 0x2bb   : > { %5058 = dma.done.wait (%p7174_p10), [#allocation12], 384  }
 0x2bc   : > { %5060 = vsyncadd (%p7175_p11), [#allocation12], 4294966912  ;;  %p7176_p6 = pmov %p7171_p0 }
 0x2bd   : > { %p7177_p12 = pmov %p7171_p0 }
 0x2be   : > { %5062 = dma.done.wait (%p7176_p6), [#allocation15], 512  }
 0x2bf   : > { %5064 = vsyncadd (%p7177_p12), [#allocation15], 4294966784  ;;  %p7178_p5 = pmov %p7171_p0 }
 0x2c0   : > { %p7179_p7 = pmov %p7171_p0 }
 0x2c1   : > { %5066 = dma.done.wait (%p7178_p5), [#allocation18], 640  }
 0x2c2   : > { %5068 = vsyncadd (%p7179_p7), [#allocation18], 4294966656  ;;  %p7180_p4 = pmov %p7171_p0 }
 0x2c3   : > { %p7181_p1 = pmov %p7171_p0 }
 0x2c4   : > { %5070 = dma.done.wait (%p7180_p4), [#allocation21], 512  }
 0x2c5   : > { %5072 = vsyncadd (%p7181_p1), [#allocation21], 4294966784  ;;  %p7182_p3 = pmov %p7171_p0 }
 0x2c6   : > { %p7183_p9 = pmov %p7171_p0 }
 0x2c7   : > { %5074 = dma.done.wait (%p7182_p3), [#allocation24], 384  }
 0x2c8   : > { %5076 = vsyncadd (%p7183_p9), [#allocation24], 4294966912  ;;  %p7184_p13 = pmov %p7171_p0 }
 0x2ca   : > { %5078 = dma.done.wait (%p7184_p13), [#allocation27], 768  }
 0x2cb   : > { %5080 = vsyncadd (%p7171_p0), [#allocation27], 4294966528  ;;  %p7185_p2 = pmov %p7171_p0 }
 0x2cc   : > { %p7186_p8 = pmov %p7171_p0 }
 0x2cd   : > { %5082 = dma.done.wait (%p7185_p2), [#allocation30], 384  }
 0x2ce   : > { %5084 = vsyncadd (%p7186_p8), [#allocation30], 4294966912  ;;  %p7187_p10 = pmov %p7171_p0 }
 0x2cf   : > { %p7188_p11 = pmov %p7171_p0 }
 0x2d0   : > { %5086 = dma.done.wait (%p7187_p10), [#allocation33], 896  }
 0x2d1   : > { %5088 = vsyncadd (%p7188_p11), [#allocation33], 4294966400  ;;  %p7189_p6 = pmov %p7171_p0 }
 0x2d2   : > { %p7190_p12 = pmov %p7171_p0 }
 0x2d3   : > { %5090 = dma.done.wait (%p7189_p6), [#allocation36], 384  }
 0x2d4   : > { %5092 = vsyncadd (%p7190_p12), [#allocation36], 4294966912  ;;  %v1037_v0 = vld [vmem:[%s5910_s0] sm:$0xff]  ;;  %v1038_v1 = vld [vmem:[%s5910_s0 + $0x8] sm:$0xff]  ;;  %v5142_v6 = vmov 0.0|0.0   ;;  %vm5143_vm0 = vmmov 0   ;;  %v1250_v49 = vlaneseq }
 0x2d5   : > { %v1041_v2 = vadd.f32 %v1038_v1, %v1037_v0  ;;  %v1039_v3 = vmul.f32 %v1037_v0, %v1037_v0  ;;  %v1040_v4 = vmul.f32 %v1038_v1, %v1038_v1  ;;  %3803 = vmatprep.subr.bf16.mxu0 %v5142_v6  ;;  %v5144_v7 = vmov 0.0   ;;  %v1047_v11 = vld [vmem:[#allocation8] sm:$0xff]  ;;  %v1122_v12 = vld [vmem:[#allocation10] sm:$0xff]  ;;  %v1123_v14 = vld [vmem:[#allocation10 + $0x8] sm:$0xff]  ;;  %s5146_s24 = smov 17   ;;  %s5147_s10 = smov 113  }
 0x2d6   : > { %3757 = vmatprep.mubr.msk.f32.mxu0 %vm5143_vm0, %v5144_v7  ;;  %vm1048_vm1 = vcmask 130048   ;;  %vm1124_vm2 = vcmask 64512   ;;  %v5145_v16 = vmov 0   ;;  %v1226_v17 = vld [vmem:[#allocation7] sm:$0xff]  ;;  %v1217_v23 = vld [vmem:[#allocation5] sm:$0xff]  ;;  %s5148_s30 = smov 112  }
 0x2d7   : > { %1042 = vadd.xlane.f32.xlu0 %v1041_v2  ;;  %v1044_v5 = vadd.f32 %v1040_v4, %v1039_v3  ;;  %4116 = vset.pattern.permute.xlu1 %v5145_v16  ;;  %s7107_s11 = smov 16   ;;  %s5150_s3 = smov 111   ;;  %v1436_v47 = vld [vmem:[#allocation13 + $0x8] sm:$0xff]  ;;  %v1435_v48 = vld [vmem:[#allocation13] sm:$0xff]  ;;  %v1258_v51 = vshrl.u32 %v1250_v49, 7  ;;  %v6010_v52 = vand.u32 127, %v1250_v49 }
 0x2d8   : > { %4117 = vset.pattern.permute.xlu0 %v5145_v16  ;;  %1495 = vmatprep.mubr.bf16.mxu1 %v5145_v16  ;;  %s5151_s28 = smov 15   ;;  %s5152_s7 = smov 1   ;;  %v1255_v55 = vld [vmem:[#allocation26] ss:$8 sm:$0x3]  ;;  %vm1456_vm11 = vcmask 1043456  }
 0x2d9   : > { %s5153_s20 = smov 127   ;;  %v6012_v54 = vsub.s32 1, %v1258_v51  ;;  %v6014_v56 = vsub.s32 0, %v1258_v51  ;;  %v1277_v57 = vld [vmem:[#allocation26 + $0x1] ss:$8 sm:$0x3] }
 0x2da   : > { %vm1252_vm3 = vcmp.lt.s32.totalorder %v6010_v52, 17  ;;  %vm1273_vm4 = vcmp.lt.s32.totalorder %v6010_v52, 16  ;;  %vm1295_vm5 = vcmp.lt.s32.totalorder %v6010_v52, 15  ;;  %vm1317_vm6 = vcmp.lt.s32.totalorder %v6010_v52, 1  ;;  %s3673_s16 = sshll.u32 %s5906_s8, 5  ;;  %p7267_p7 = scmp.ne.s32.totalorder %s7162_s4, 0 }
 0x2db   : > { %1045 = vadd.xlane.f32.xlu0 %v1044_v5  ;;  %v6018_v59 = vrot.slane %v1255_v55, %v6012_v54  ;;  %v6022_v60 = vrot.slane %v1277_v57, %v6012_v54  ;;  %v6025_v61 = vrot.slane %v1255_v55, %v6014_v56  ;;  %v6028_v62 = vrot.slane %v1277_v57, %v6014_v56  ;;  %s1035_s6 = scalar_lea.vmem [#allocation38], %s3673_s16 }
 0x2dc   : > { %vm1339_vm7 = vcmp.lt.s32.totalorder %v6010_v52, 127  ;;  %vm1361_vm8 = vcmp.lt.s32.totalorder %v6010_v52, 113  ;;  %vm1383_vm9 = vcmp.lt.s32.totalorder %v6010_v52, 112  ;;  %vm1405_vm10 = vcmp.lt.s32.totalorder %v6010_v52, 111  ;;  %v4122_v52 = vld [vmem:[#allocation23] sm:$0xff]  }
 0x2dd   : > { %vm1452_vm12 = vcmask 588800   ;;  %vm1523_vm13 = vcmask 261120  }
 0x2f1   : > { %1229 = vperm.xlu0 %4117, %v1226_v17  }
 0x364   : > { %v1043_v8 = vpop.xlane.xlu0 %1042 }
 0x368   : > { %v1046_v9 = vpop.xlane.xlu0 %1045 }
 0x369   : > { %v3804_v10 = vpack.c.bf16 %v1046_v9, %v1043_v8 }
 0x36b   : > { %3805 = vmatpush3.bf16.msra.mxu0 %v3804_v10 }
 0x36e   : > { %3758 = vmatmul.mubr.msk.f32.vlgmr.msra.gmra.mrb[0].mxu0 %vm1048_vm1, %v1047_v11 }
 0x36f   : > { %3762 = vmatprep.mubr.msk.f32.mxu0 %vm1124_vm2, %v1122_v12 }
 0x370   : > { %v1230_v30 = vpop.permute.xlu0 %1229 }
 0x441   : > { %v1118_v13 = vpop.f32.mrb[0].mxu0 }
 0x442   : > { %v3759_v15 = vpop.f32.mrb[1].mxu0  ;;  %3760 = vmatprep.subr.mxu0 %v1118_v13 }
 0x443   : > { %3761 = vmatpush3.msra.mxu0 %v1118_v13  ;;  %v1321_v15 = vld [vmem:[#allocation26 + $0x3] ss:$8 sm:$0x3] }
 0x444   : > { %3763 = vmatmul.mubr.msk.f32.vlgmr.msra.gmra.mrb[2].mxu0 %vm1124_vm2, %v1123_v14  ;;  %3806 = vmatprep.subr.bf16.mxu0 %v5142_v6  ;;  %v1299_v14 = vld [vmem:[#allocation26 + $0x2] ss:$8 sm:$0x3] }
 0x445   : > { %3773 = vmatprep.mubr.msk.f32.mxu0 %vm5143_vm0, %v5144_v7 }
 0x517   : > { %v3764_v18 = vpop.f32.mrb[2].mxu0 }
 0x518   : > { %v1197_v19 = vpop.f32.mrb[3].mxu0 }
 0x519   : > { %v1206_v20 = vmul.f32 %v1197_v19, %v1197_v19  ;;  %1212 = vperm.xlu1 %4116, %v1197_v19   ;;  %v6047_v19 = vrot.slane %v1299_v14, %v6012_v54 }
 0x51b   : > { %v1207_v21 = vsub.f32 %v3764_v18, %v1206_v20  ;;  %v6044_v18 = vrot.slane %v1299_v14, %v6014_v56  ;;  %v6051_v20 = vrot.slane %v1321_v15, %v6014_v56 }
 0x51d   : > { %v1208_v22 = vadd.f32 1e-05, %v1207_v21  ;;  %v6054_v21 = vrot.slane %v1321_v15, %v6012_v54 }
 0x51f   : > { %4127 = vrsqrt.f32 %v1208_v22 }
 0x529   : > { %v4128_v24 = vpop.eup %4127 }
 0x52a   : > { %v1218_v25 = vmul.f32 %v4128_v24, %v1217_v23 }
 0x52c   : > { %1221 = vperm.xlu1 %4116, %v1218_v25  }
 0x598   : > { %v1213_v26 = vpop.permute.xlu1 %1212 }
 0x599   : > { %v1215_v27 = vsub.f32 %v1037_v0, %v1213_v26  ;;  %v1216_v28 = vsub.f32 %v1038_v1, %v1213_v26 }
 0x5ab   : > { %v1222_v29 = vpop.permute.xlu1 %1221 }
 0x5ac   : > { %v1224_v31 = vmul.f32 %v1222_v29, %v1215_v27  ;;  %v1225_v32 = vmul.f32 %v1222_v29, %v1216_v28 }
 0x5ae   : > { %v1232_v33 = vadd.f32 %v1230_v30, %v1224_v31  ;;  %v1233_v34 = vadd.f32 %v1230_v30, %v1225_v32  ;;  %v1343_v31 = vld [vmem:[#allocation26 + $0x5] ss:$8 sm:$0x3] }
 0x5b0   : > { %v1234_v35 = vsub.f32 0.0, %v1232_v33  ;;  %v1235_v36 = vsub.f32 0.0, %v1233_v34 }
 0x5b2   : > { %v1236_v37 = vmul.f32 1.442695, %v1234_v35  ;;  %v1238_v38 = vmul.f32 1.442695, %v1235_v36  ;;  %v6070_v35 = vrot.slane %v1343_v31, %v6014_v56  ;;  %v6073_v36 = vrot.slane %v1343_v31, %v6012_v54 }
 0x5b4   : > { %4129 = vpow2.f32 %v1236_v37 }
 0x5b5   : > { %4131 = vpow2.f32 %v1238_v38 }
 0x5be   : > { %v4130_v39 = vpop.eup %4129 }
 0x5bf   : > { %v4132_v40 = vpop.eup %4131  ;;  %v1240_v41 = vadd.f32 1.0, %v4130_v39 }
 0x5c0   : > { %v1241_v42 = vadd.f32 1.0, %v4132_v40 }
 0x5c1   : > { %4133 = vrcp.f32 %v1240_v41 }
 0x5c2   : > { %4135 = vrcp.f32 %v1241_v42 }
 0x5cb   : > { %v4134_v43 = vpop.eup %4133 }
 0x5cc   : > { %v4136_v44 = vpop.eup %4135  ;;  %v5974_v45 = vmul.f32 %v4134_v43, %v1232_v33  ;;  %v1365_v43 = vld [vmem:[#allocation26 + $0x6] ss:$8 sm:$0x3] }
 0x5cd   : > { %v5976_v46 = vmul.f32 %v4136_v44, %v1233_v34  ;;  %v1387_v44 = vld [vmem:[#allocation26 + $0x7] ss:$8 sm:$0x3] }
 0x5ce   : > { %1246 = vrot.lane.b32.xlu1 %v5974_v45, %s5146_s24  ;;  %v6092_v55 = vrot.slane %v1387_v44, %v6014_v56  ;;  %v6095_v57 = vrot.slane %v1387_v44, %v6012_v54 }
 0x5cf   : > { %1359 = vrot.lane.b32.xlu0 %v5976_v46, %s5147_s10 }
 0x5d2   : > { %1248 = vrot.lane.b32.xlu1 %v5976_v46, %s5146_s24 }
 0x5d3   : > { %1381 = vrot.lane.b32.xlu0 %v5976_v46, %s5148_s30 }
 0x5d6   : > { %1269 = vrot.lane.b32.xlu1 %v5974_v45, %s7107_s11 }
 0x5d7   : > { %1403 = vrot.lane.b32.xlu0 %v5976_v46, %s5150_s3 }
 0x5da   : > { %1271 = vrot.lane.b32.xlu1 %v5976_v46, %s7107_s11 }
 0x5db   : > { %1444 = vperm.xlu0 %4117, %v1436_v47  }
 0x5de   : > { %1291 = vrot.lane.b32.xlu1 %v5974_v45, %s5151_s28 }
 0x5e2   : > { %1293 = vrot.lane.b32.xlu1 %v5976_v46, %s5151_s28 }
 0x5e6   : > { %1313 = vrot.lane.b32.xlu1 %v5974_v45, %s5152_s7 }
 0x5ea   : > { %1315 = vrot.lane.b32.xlu1 %v5976_v46, %s5152_s7 }
 0x5ee   : > { %1335 = vrot.lane.b32.xlu1 %v5974_v45, %s5153_s20 }
 0x5f2   : > { %1337 = vrot.lane.b32.xlu1 %v5976_v46, %s5153_s20 }
 0x5f6   : > { %1357 = vrot.lane.b32.xlu1 %v5974_v45, %s5147_s10 }
 0x5fa   : > { %1379 = vrot.lane.b32.xlu1 %v5974_v45, %s5148_s30 }
 0x5fe   : > { %1401 = vrot.lane.b32.xlu1 %v5974_v45, %s5150_s3 }
 0x602   : > { %1439 = vperm.xlu1 %4116, %v1435_v48  }
 0x640   : > { %v1247_v50 = vpop.permute.xlu1 %1246 }
 0x641   : > { %v1360_v37 = vpop.permute.xlu0 %1359 }
 0x644   : > { %v1249_v53 = vpop.permute.xlu1 %1248 }
 0x645   : > { %v1254_v63 = vsel %vm1252_vm3, %v1249_v53, %v1247_v50  ;;  %v1253_v0 = vsel %vm1252_vm3, %v1247_v50, %v1249_v53  ;;  %v6085_v50 = vrot.slane %v1365_v43, %v6014_v56  ;;  %v1382_v51 = vpop.permute.xlu0 %1381  ;;  %v6088_v53 = vrot.slane %v1365_v43, %v6012_v54 }
 0x646   : > { %v1268_v4 = vmul.f32 %v6018_v59, %v1253_v0  ;;  %v1267_v8 = vmul.f32 %v6025_v61, %v1254_v63 }
 0x648   : > { %v1270_v58 = vpop.permute.xlu1 %1269 }
 0x64c   : > { %v1272_v1 = vpop.permute.xlu1 %1271 }
 0x64d   : > { %v1275_v2 = vsel %vm1273_vm4, %v1272_v1, %v1270_v58  ;;  %v1274_v3 = vsel %vm1273_vm4, %v1270_v58, %v1272_v1  ;;  %v1409_v58 = vld [vmem:[#allocation26 + $0x10] ss:$8 sm:$0x3] }
 0x64e   : > { %v1290_v5 = vmul.f32 %v6022_v60, %v1274_v3  ;;  %v1289_v9 = vmul.f32 %v6028_v62, %v1275_v2  ;;  %v6107_v2 = vrot.slane %v1409_v58, %v6012_v54  ;;  %v6110_v3 = vrot.slane %v1409_v58, %v6014_v56 }
 0x650   : > { %v1292_v10 = vpop.permute.xlu1 %1291  ;;  %v1424_v11 = vpack.c.bf16 %v1290_v5, %v1268_v4  ;;  %v1423_v12 = vpack.c.bf16 %v1289_v9, %v1267_v8 }
 0x652   : > { %1463 = vmatprep.subr.bf16.mxu1 %v1424_v11 }
 0x653   : > { %1464 = vmatpush1.bf16.msra.mxu1 %v1423_v12 }
 0x654   : > { %v1294_v13 = vpop.permute.xlu1 %1293 }
 0x655   : > { %v1296_v22 = vsel %vm1295_vm5, %v1292_v10, %v1294_v13  ;;  %v1297_v23 = vsel %vm1295_vm5, %v1294_v13, %v1292_v10  ;;  %v1404_v10 = vpop.permute.xlu0 %1403 }
 0x656   : > { %v1311_v27 = vmul.f32 %v6044_v18, %v1297_v23  ;;  %v1312_v28 = vmul.f32 %v6047_v19, %v1296_v22 }
 0x658   : > { %v1314_v17 = vpop.permute.xlu1 %1313 }
 0x65c   : > { %v1316_v24 = vpop.permute.xlu1 %1315 }
 0x65d   : > { %v1318_v25 = vsel %vm1317_vm6, %v1314_v17, %v1316_v24  ;;  %v1319_v26 = vsel %vm1317_vm6, %v1316_v24, %v1314_v17  ;;  %v4118_v24 = vld [vmem:[#allocation11] sm:$0xff]  }
 0x65e   : > { %v1333_v29 = vmul.f32 %v6051_v20, %v1319_v26  ;;  %v1334_v30 = vmul.f32 %v6054_v21, %v1318_v25 }
 0x660   : > { %v1336_v32 = vpop.permute.xlu1 %1335  ;;  %v1426_v33 = vpack.c.bf16 %v1334_v30, %v1312_v28  ;;  %v1425_v34 = vpack.c.bf16 %v1333_v29, %v1311_v27  ;;  %v1445_v29 = vpop.permute.xlu0 %1444 }
 0x662   : > { %1465 = vmatprep.subr.bf16.mxu1 %v1426_v33 }
 0x663   : > { %1466 = vmatpush1.bf16.msra.mxu1 %v1425_v34 }
 0x664   : > { %v1338_v38 = vpop.permute.xlu1 %1337 }
 0x665   : > { %v1340_v39 = vsel %vm1339_vm7, %v1336_v32, %v1338_v38  ;;  %v1341_v40 = vsel %vm1339_vm7, %v1338_v38, %v1336_v32 }
 0x666   : > { %v1355_v41 = vmul.f32 %v6070_v35, %v1340_v39  ;;  %v1356_v42 = vmul.f32 %v6073_v36, %v1341_v40 }
 0x668   : > { %v1358_v47 = vpop.permute.xlu1 %1357  ;;  %v1428_v48 = vpack.c.bf16 %v1356_v42, %v5976_v46  ;;  %v1427_v49 = vpack.c.bf16 %v1355_v41, %v5974_v45 }
 0x669   : > { %v1362_v45 = vsel %vm1361_vm8, %v1358_v47, %v1360_v37  ;;  %v1363_v46 = vsel %vm1361_vm8, %v1360_v37, %v1358_v47 }
 0x66a   : > { %1467 = vmatprep.subr.bf16.mxu1 %v1428_v48  ;;  %v1377_v4 = vmul.f32 %v6085_v50, %v1362_v45  ;;  %v1378_v5 = vmul.f32 %v6088_v53, %v1363_v46  ;;  %v1522_v45 = vld [vmem:[#allocation17] sm:$0xff]  ;;  %v1597_v46 = vld [vmem:[#allocation19] sm:$0xff] }
 0x66b   : > { %1468 = vmatpush1.bf16.msra.mxu1 %v1427_v49 }
 0x66c   : > { %v1380_v63 = vpop.permute.xlu1 %1379 }
 0x66d   : > { %v1384_v0 = vsel %vm1383_vm9, %v1380_v63, %v1382_v51  ;;  %v1385_v1 = vsel %vm1383_vm9, %v1382_v51, %v1380_v63 }
 0x66e   : > { %v1399_v8 = vmul.f32 %v6092_v55, %v1384_v0  ;;  %v1400_v9 = vmul.f32 %v6095_v57, %v1385_v1  ;;  %v1598_v0 = vld [vmem:[#allocation19 + $0x8] sm:$0xff] }
 0x670   : > { %v1402_v11 = vpop.permute.xlu1 %1401  ;;  %v1430_v12 = vpack.c.bf16 %v1400_v9, %v1378_v5  ;;  %v1429_v13 = vpack.c.bf16 %v1399_v8, %v1377_v4  ;;  %v1599_v4 = vld [vmem:[#allocation19 + $0x10] sm:$0xff]  ;;  %v1600_v5 = vld [vmem:[#allocation19 + $0x18] sm:$0xff] }
 0x671   : > { %v1406_v14 = vsel %vm1405_vm10, %v1402_v11, %v1404_v10  ;;  %v1407_v54 = vsel %vm1405_vm10, %v1404_v10, %v1402_v11 }
 0x672   : > { %v1422_v56 = vmul.f32 %v6107_v2, %v1407_v54  ;;  %1469 = vmatprep.subr.bf16.mxu1 %v1430_v12  ;;  %v1421_v15 = vmul.f32 %v6110_v3, %v1406_v14 }
 0x673   : > { %1470 = vmatpush1.bf16.msra.mxu1 %v1429_v13 }
 0x674   : > { %v1432_v17 = vpack.c.bf16 %v1422_v56, %v1422_v56  ;;  %v1431_v22 = vpack.c.bf16 %v1421_v15, %v1421_v15 }
 0x676   : > { %3678 = vmatprep.subr.msk.bf16.mxu1 %vm1456_vm11, %v1432_v17  ;;  %v1458_v23 = vsel %vm1456_vm11, %v1431_v22, 0  ;;  %v1721_v17 = vld [vmem:[#allocation14 + $0x8] sm:$0xff]  ;;  %v1720_v22 = vld [vmem:[#allocation14] sm:$0xff] }
 0x677   : > { %1472 = vmatpush1.bf16.msra.mxu1 %v1458_v23 }
 0x678   : > { %3812 = vmatprep.subr.bf16.mxu1 %v5142_v6 }
 0x67a   : > { %3679 = vmatmul.mubr.msk.bf16.vlgmr.msra.gmra.mrb[0].mxu1 %vm1452_vm12, %v4118_v24 }
 0x67b   : > { %3792 = vmatprep.mubr.msk.f32.mxu1 %vm5143_vm0, %v5144_v7 }
 0x681   : > { %v1440_v25 = vpop.permute.xlu1 %1439 }
 0x74d   : > { %v1497_v26 = vpop.f32.mrb[0].mxu1 }
 0x74e   : > { %v6127_v27 = vadd.f32 %v1497_v26, %v1440_v25  ;;  %v1499_v28 = vpop.f32.mrb[1].mxu1 }
 0x74f   : > { %v6129_v30 = vadd.f32 %v1499_v28, %v1440_v25  ;;  %v1501_v31 = vpop.f32.mrb[2].mxu1  ;;  %v1739_v28 = vld [vmem:[#allocation16 + $0x8] sm:$0xff] }
 0x750   : > { %v6131_v32 = vadd.f32 %v1501_v31, %v1445_v29  ;;  %v1503_v33 = vpop.f32.mrb[3].mxu1  ;;  %v1506_v40 = vmul.f32 %v6127_v27, %v6127_v27 }
 0x751   : > { %v6133_v34 = vadd.f32 %v1503_v33, %v1445_v29  ;;  %v1510_v37 = vadd.f32 %v6129_v30, %v6127_v27  ;;  %v1507_v41 = vmul.f32 %v6129_v30, %v6129_v30  ;;  %v1738_v29 = vld [vmem:[#allocation16] sm:$0xff] }
 0x752   : > { %v1508_v7 = vmul.f32 %v6131_v32, %v6131_v32 }
 0x753   : > { %1511 = vadd.xlane.f32.xlu1 %v1510_v37  ;;  %v1513_v38 = vadd.f32 %v6133_v34, %v6131_v32  ;;  %v1509_v39 = vmul.f32 %v6133_v34, %v6133_v34  ;;  %v1516_v43 = vadd.f32 %v1507_v41, %v1506_v40 }
 0x755   : > { %1514 = vadd.xlane.f32.xlu0 %v1513_v38  ;;  %v1519_v42 = vadd.f32 %v1509_v39, %v1508_v7 }
 0x757   : > { %1520 = vadd.xlane.f32.xlu1 %v1519_v42 }
 0x759   : > { %1517 = vadd.xlane.f32.xlu0 %v1516_v43 }
 0x7e0   : > { %v1512_v44 = vpop.xlane.xlu1 %1511 }
 0x7e2   : > { %v1515_v47 = vpop.xlane.xlu0 %1514 }
 0x7e3   : > { %v3807_v48 = vpack.c.bf16 %v1515_v47, %v1512_v44 }
 0x7e4   : > { %v1521_v49 = vpop.xlane.xlu1 %1520 }
 0x7e5   : > { %3808 = vmatpush3.bf16.msra.mxu0 %v3807_v48 }
 0x7e6   : > { %v1518_v51 = vpop.xlane.xlu0 %1517  ;;  %3809 = vmatprep.subr.bf16.mxu0 %v5142_v6 }
 0x7e7   : > { %v3810_v58 = vpack.c.bf16 %v1521_v49, %v1518_v51 }
 0x7e9   : > { %3811 = vmatpush3.bf16.msra.mxu0 %v3810_v58 }
 0x7ec   : > { %3774 = vmatmul.mubr.msk.f32.vlgmr.msra.gmra.mrb[4].mxu0 %vm1523_vm13, %v1522_v45 }
 0x7ed   : > { %3778 = vmatprep.mubr.msk.f32.mxu0 %vm1124_vm2, %v1597_v46 }
 0x8bf   : > { %v1593_v63 = vpop.f32.mrb[4].mxu0 }
 0x8c0   : > { %v3775_v1 = vpop.f32.mrb[5].mxu0  ;;  %3776 = vmatprep.subr.mxu0 %v1593_v63 }
 0x8c1   : > { %3777 = vmatpush3.msra.mxu0 %v1593_v63 }
 0x8c2   : > { %3779 = vmatmul.mubr.msk.f32.vlgmr.msra.gmra.mrb[6].mxu0 %vm1124_vm2, %v1598_v0 }
 0x8c3   : > { %3781 = vmatprep.mubr.msk.f32.mxu0 %vm1124_vm2, %v1599_v4 }
 0x8c6   : > { %3782 = vmatmul.mubr.msk.f32.gmra.mrb[8].mxu0 %vm1124_vm2, %v1600_v5 }
 0x995   : > { %v3780_v8 = vpop.f32.mrb[6].mxu0 }
 0x996   : > { %1713 = vperm.xlu1 %4116, %v3780_v8   ;;  %v1679_v9 = vpop.f32.mrb[7].mxu0  ;;  %v1699_v10 = vmul.f32 %v3780_v8, %v3780_v8 }
 0x997   : > { %1708 = vperm.xlu0 %4117, %v1679_v9   ;;  %v1698_v11 = vmul.f32 %v1679_v9, %v1679_v9 }
 0x999   : > { %v3783_v12 = vpop.f32.mrb[8].mxu0 }
 0x99a   : > { %v1701_v13 = vsub.f32 %v3783_v12, %v1699_v10  ;;  %v1689_v14 = vpop.f32.mrb[9].mxu0 }
 0x99b   : > { %v1700_v54 = vsub.f32 %v1689_v14, %v1698_v11 }
 0x99c   : > { %v1703_v56 = vadd.f32 1e-05, %v1701_v13 }
 0x99d   : > { %v1702_v15 = vadd.f32 1e-05, %v1700_v54 }
 0x99e   : > { %4137 = vrsqrt.f32 %v1703_v56 }
 0x99f   : > { %4139 = vrsqrt.f32 %v1702_v15 }
 0x9a8   : > { %v4138_v23 = vpop.eup %4137 }
 0x9a9   : > { %v4140_v24 = vpop.eup %4139  ;;  %v1723_v25 = vmul.f32 %v4138_v23, %v1721_v17 }
 0x9aa   : > { %v1722_v26 = vmul.f32 %v4140_v24, %v1720_v22 }
 0x9ab   : > { %1731 = vperm.xlu0 %4117, %v1723_v25  }
 0x9ac   : > { %1726 = vperm.xlu1 %4116, %v1722_v26  }
 0x9af   : > { %1747 = vperm.xlu0 %4117, %v1739_v28  }
 0x9b0   : > { %1742 = vperm.xlu1 %4116, %v1738_v29   ;;  %v4121_v29 = vld [vmem:[#allocation20 + $0x4] ss:$8 sps:$4 sm:$0xff]  }
 0x9b1   : > { %3687 = vmatprep.mubr.msk.bf16.mxu0 %vm1048_vm1, %v4121_v29 }
 0xa15   : > { %v1714_v33 = vpop.permute.xlu1 %1713 }
 0xa16   : > { %v1709_v31 = vpop.permute.xlu0 %1708  ;;  %v1718_v7 = vsub.f32 %v6131_v32, %v1714_v33  ;;  %v1719_v38 = vsub.f32 %v6133_v34, %v1714_v33  ;;  %v1926_v33 = vld [vmem:[#allocation22] sm:$0xff] }
 0xa17   : > { %v1716_v40 = vsub.f32 %v6127_v27, %v1709_v31  ;;  %v1717_v41 = vsub.f32 %v6129_v30, %v1709_v31  ;;  %v1927_v31 = vld [vmem:[#allocation22 + $0x8] sm:$0xff] }
 0xa2a   : > { %v1732_v37 = vpop.permute.xlu0 %1731 }
 0xa2b   : > { %v1727_v39 = vpop.permute.xlu1 %1726  ;;  %v1736_v42 = vmul.f32 %v1732_v37, %v1718_v7  ;;  %v1737_v43 = vmul.f32 %v1732_v37, %v1719_v38  ;;  %v1998_v37 = vld [vmem:[#allocation25 + $0x8] sm:$0xff]  ;;  %v1997_v7 = vld [vmem:[#allocation25] sm:$0xff] }
 0xa2c   : > { %v1734_v44 = vmul.f32 %v1727_v39, %v1716_v40  ;;  %v1735_v47 = vmul.f32 %v1727_v39, %v1717_v41 }
 0xa2e   : > { %v1748_v48 = vpop.permute.xlu0 %1747 }
 0xa2f   : > { %v1752_v49 = vadd.f32 %v1748_v48, %v1736_v42  ;;  %v1753_v51 = vadd.f32 %v1748_v48, %v1737_v43  ;;  %v1743_v58 = vpop.permute.xlu1 %1742 }
 0xa30   : > { %v1750_v45 = vadd.f32 %v1743_v58, %v1734_v44  ;;  %v1751_v46 = vadd.f32 %v1743_v58, %v1735_v47 }
 0xa31   : > { %v1756_v63 = vsub.f32 0.0, %v1752_v49  ;;  %v1757_v0 = vsub.f32 0.0, %v1753_v51 }
 0xa32   : > { %v1754_v32 = vsub.f32 0.0, %v1750_v45  ;;  %v1755_v1 = vsub.f32 0.0, %v1751_v46 }
 0xa33   : > { %v1762_v34 = vmul.f32 1.442695, %v1756_v63  ;;  %v1764_v4 = vmul.f32 1.442695, %v1757_v0 }
 0xa34   : > { %v1758_v5 = vmul.f32 1.442695, %v1754_v32  ;;  %v1760_v27 = vmul.f32 1.442695, %v1755_v1 }
 0xa35   : > { %4141 = vpow2.f32 %v1762_v34 }
 0xa36   : > { %4143 = vpow2.f32 %v1764_v4 }
 0xa37   : > { %4145 = vpow2.f32 %v1758_v5 }
 0xa38   : > { %4147 = vpow2.f32 %v1760_v27 }
 0xa3f   : > { %v4142_v30 = vpop.eup %4141 }
 0xa40   : > { %v4144_v8 = vpop.eup %4143  ;;  %v1768_v9 = vadd.f32 1.0, %v4142_v30 }
 0xa41   : > { %v4146_v10 = vpop.eup %4145  ;;  %v1769_v11 = vadd.f32 1.0, %v4144_v8 }
 0xa42   : > { %v4148_v12 = vpop.eup %4147  ;;  %4149 = vrcp.f32 %v1768_v9  ;;  %v1766_v13 = vadd.f32 1.0, %v4146_v10 }
 0xa43   : > { %4151 = vrcp.f32 %v1769_v11  ;;  %v1767_v14 = vadd.f32 1.0, %v4148_v12 }
 0xa44   : > { %4153 = vrcp.f32 %v1766_v13 }
 0xa45   : > { %4155 = vrcp.f32 %v1767_v14 }
 0xa4c   : > { %v4150_v54 = vpop.eup %4149 }
 0xa4d   : > { %v4152_v56 = vpop.eup %4151  ;;  %v6157_v15 = vmul.f32 %v4150_v54, %v1752_v49 }
 0xa4e   : > { %v4154_v17 = vpop.eup %4153  ;;  %v6159_v22 = vmul.f32 %v4152_v56, %v1753_v51 }
 0xa4f   : > { %v4156_v23 = vpop.eup %4155  ;;  %v6161_v24 = vmul.f32 %v4154_v17, %v1750_v45  ;;  %1780 = vrot.lane.b32.xlu0 %v6157_v15, %s5146_s24 }
 0xa50   : > { %v6165_v25 = vmul.f32 %v4156_v23, %v1751_v46 }
 0xa51   : > { %1778 = vrot.lane.b32.xlu1 %v6161_v24, %s5146_s24  ;;  %v1914_v26 = vpack.c.bf16 %v6157_v15, %v6161_v24 }
 0xa52   : > { %v1915_v28 = vpack.c.bf16 %v6159_v22, %v6165_v25 }
 0xa53   : > { %1784 = vrot.lane.b32.xlu0 %v6159_v22, %s5146_s24 }
 0xa55   : > { %1782 = vrot.lane.b32.xlu1 %v6165_v25, %s5146_s24  ;;  %s3726_s24 = sshll.u32 %s7169_s29, 9  ;;  %s3326_s29 = scalar_lea.sflag [#allocation4], %s5906_s8 }
 0xa57   : > { %1796 = vrot.lane.b32.xlu0 %v6157_v15, %s7107_s11 }
 0xa59   : > { %1794 = vrot.lane.b32.xlu1 %v6161_v24, %s7107_s11 }
 0xa5b   : > { %1800 = vrot.lane.b32.xlu0 %v6159_v22, %s7107_s11 }
 0xa5d   : > { %1798 = vrot.lane.b32.xlu1 %v6165_v25, %s7107_s11 }
 0xa5f   : > { %1812 = vrot.lane.b32.xlu0 %v6157_v15, %s5151_s28 }
 0xa61   : > { %1810 = vrot.lane.b32.xlu1 %v6161_v24, %s5151_s28 }
 0xa63   : > { %1816 = vrot.lane.b32.xlu0 %v6159_v22, %s5151_s28 }
 0xa65   : > { %1814 = vrot.lane.b32.xlu1 %v6165_v25, %s5151_s28 }
 0xa67   : > { %1828 = vrot.lane.b32.xlu0 %v6157_v15, %s5152_s7 }
 0xa69   : > { %1826 = vrot.lane.b32.xlu1 %v6161_v24, %s5152_s7 }
 0xa6b   : > { %1832 = vrot.lane.b32.xlu0 %v6159_v22, %s5152_s7 }
 0xa6d   : > { %1830 = vrot.lane.b32.xlu1 %v6165_v25, %s5152_s7 }
 0xa6f   : > { %1844 = vrot.lane.b32.xlu0 %v6157_v15, %s5153_s20 }
 0xa71   : > { %1842 = vrot.lane.b32.xlu1 %v6161_v24, %s5153_s20 }
 0xa73   : > { %1848 = vrot.lane.b32.xlu0 %v6159_v22, %s5153_s20 }
 0xa75   : > { %1846 = vrot.lane.b32.xlu1 %v6165_v25, %s5153_s20  ;;  %s5154_s20 = smov [#allocation38]  }
 0xa76   : > { %s5005_s16 = sshll.u32 %s5154_s20, 4  ;;  %s5006_s16 = int_to_ptr.vmem [resolvable:$false] %s5005_s16 }
 0xa77   : > { %1860 = vrot.lane.b32.xlu0 %v6157_v15, %s5147_s10  ;;  %s5007_s11 = scalar_lea.vmem %s5006_s16, 1024 }
 0xa79   : > { %1858 = vrot.lane.b32.xlu1 %v6161_v24, %s5147_s10 }
 0xa7b   : > { %1864 = vrot.lane.b32.xlu0 %v6159_v22, %s5147_s10 }
 0xa7d   : > { %1862 = vrot.lane.b32.xlu1 %v6165_v25, %s5147_s10 }
 0xa7f   : > { %1876 = vrot.lane.b32.xlu0 %v6157_v15, %s5148_s30 }
 0xa81   : > { %1874 = vrot.lane.b32.xlu1 %v6161_v24, %s5148_s30 }
 0xa83   : > { %1880 = vrot.lane.b32.xlu0 %v6159_v22, %s5148_s30 }
 0xa85   : > { %1878 = vrot.lane.b32.xlu1 %v6165_v25, %s5148_s30 }
 0xa87   : > { %1892 = vrot.lane.b32.xlu0 %v6157_v15, %s5150_s3 }
 0xa89   : > { %1890 = vrot.lane.b32.xlu1 %v6161_v24, %s5150_s3 }
 0xa8b   : > { %1896 = vrot.lane.b32.xlu0 %v6159_v22, %s5150_s3 }
 0xa8d   : > { %1894 = vrot.lane.b32.xlu1 %v6165_v25, %s5150_s3  ;;  %s7266_s3 = sld [smem:[#allocation94_spill]] }
 0xa8f   : > { %1935 = vperm.xlu0 %4117, %v1927_v31  }
 0xa91   : > { %1930 = vperm.xlu1 %4116, %v1926_v33  }
 0xa93   : > { %2006 = vperm.xlu0 %4117, %v1998_v37   ;;  %s6968_s28 = scalar_lea.hbm %s7266_s3, %s3726_s24 }
 0xa95   : > { %2001 = vperm.xlu1 %4116, %v1997_v7  }
 0xac1   : > { %v1781_v38 = vpop.permute.xlu0 %1780 }
 0xac3   : > { %v1779_v39 = vpop.permute.xlu1 %1778 }
 0xac5   : > { %v1785_v40 = vpop.permute.xlu0 %1784 }
 0xac6   : > { %v1787_v41 = vsel %vm1252_vm3, %v1781_v38, %v1785_v40  ;;  %v1789_v42 = vsel %vm1252_vm3, %v1785_v40, %v1781_v38 }
 0xac7   : > { %v1792_v43 = vmul.f32 %v1789_v42, %v6025_v61  ;;  %v1793_v44 = vmul.f32 %v1787_v41, %v6018_v59  ;;  %v1783_v47 = vpop.permute.xlu1 %1782 }
 0xac8   : > { %v1786_v48 = vsel %vm1252_vm3, %v1779_v39, %v1783_v47  ;;  %v1788_v49 = vsel %vm1252_vm3, %v1783_v47, %v1779_v39 }
 0xac9   : > { %v1790_v51 = vmul.f32 %v1788_v49, %v6025_v61  ;;  %v1791_v58 = vmul.f32 %v1786_v48, %v6018_v59  ;;  %v1797_v45 = vpop.permute.xlu0 %1796 }
 0xacb   : > { %v1906_v46 = vpack.c.bf16 %v1792_v43, %v1790_v51  ;;  %v1795_v63 = vpop.permute.xlu1 %1794  ;;  %v1907_v0 = vpack.c.bf16 %v1793_v44, %v1791_v58 }
 0xacd   : > { %1950 = vmatprep.subr.bf16.mxu0 %v1907_v0  ;;  %v1801_v32 = vpop.permute.xlu0 %1800 }
 0xace   : > { %v1803_v1 = vsel %vm1273_vm4, %v1797_v45, %v1801_v32  ;;  %v1805_v34 = vsel %vm1273_vm4, %v1801_v32, %v1797_v45  ;;  %1951 = vmatpush1.bf16.msra.mxu0 %v1906_v46 }
 0xacf   : > { %v1808_v4 = vmul.f32 %v1805_v34, %v6028_v62  ;;  %v1809_v5 = vmul.f32 %v1803_v1, %v6022_v60  ;;  %v1799_v61 = vpop.permute.xlu1 %1798 }
 0xad0   : > { %v1802_v59 = vsel %vm1273_vm4, %v1795_v63, %v1799_v61  ;;  %v1804_v27 = vsel %vm1273_vm4, %v1799_v61, %v1795_v63 }
 0xad1   : > { %v1806_v30 = vmul.f32 %v1804_v27, %v6028_v62  ;;  %v1807_v8 = vmul.f32 %v1802_v59, %v6022_v60  ;;  %v1813_v9 = vpop.permute.xlu0 %1812 }
 0xad3   : > { %v1908_v10 = vpack.c.bf16 %v1808_v4, %v1806_v30  ;;  %v1811_v11 = vpop.permute.xlu1 %1810  ;;  %v1909_v12 = vpack.c.bf16 %v1809_v5, %v1807_v8 }
 0xad5   : > { %1952 = vmatprep.subr.bf16.mxu0 %v1909_v12  ;;  %v1817_v13 = vpop.permute.xlu0 %1816 }
 0xad6   : > { %v1819_v14 = vsel %vm1295_vm5, %v1813_v9, %v1817_v13  ;;  %v1821_v54 = vsel %vm1295_vm5, %v1817_v13, %v1813_v9  ;;  %1953 = vmatpush1.bf16.msra.mxu0 %v1908_v10 }
 0xad7   : > { %v1824_v56 = vmul.f32 %v1821_v54, %v6044_v18  ;;  %v1825_v17 = vmul.f32 %v1819_v14, %v6047_v19  ;;  %v1815_v62 = vpop.permute.xlu1 %1814 }
 0xad8   : > { %v1818_v60 = vsel %vm1295_vm5, %v1811_v11, %v1815_v62  ;;  %v1820_v23 = vsel %vm1295_vm5, %v1815_v62, %v1811_v11 }
 0xad9   : > { %v1822_v29 = vmul.f32 %v1820_v23, %v6044_v18  ;;  %v1823_v31 = vmul.f32 %v1818_v60, %v6047_v19  ;;  %v1829_v33 = vpop.permute.xlu0 %1828 }
 0xadb   : > { %v1910_v37 = vpack.c.bf16 %v1824_v56, %v1822_v29  ;;  %v1827_v7 = vpop.permute.xlu1 %1826  ;;  %v1911_v38 = vpack.c.bf16 %v1825_v17, %v1823_v31 }
 0xadd   : > { %1954 = vmatprep.subr.bf16.mxu0 %v1911_v38  ;;  %v1833_v39 = vpop.permute.xlu0 %1832 }
 0xade   : > { %v1835_v40 = vsel %vm1317_vm6, %v1829_v33, %v1833_v39  ;;  %v1837_v41 = vsel %vm1317_vm6, %v1833_v39, %v1829_v33  ;;  %1955 = vmatpush1.bf16.msra.mxu0 %v1910_v37 }
 0xadf   : > { %v1840_v42 = vmul.f32 %v1837_v41, %v6051_v20  ;;  %v1841_v43 = vmul.f32 %v1835_v40, %v6054_v21  ;;  %v1831_v18 = vpop.permute.xlu1 %1830 }
 0xae0   : > { %v1834_v19 = vsel %vm1317_vm6, %v1827_v7, %v1831_v18  ;;  %v1836_v44 = vsel %vm1317_vm6, %v1831_v18, %v1827_v7 }
 0xae1   : > { %v1838_v47 = vmul.f32 %v1836_v44, %v6051_v20  ;;  %v1839_v48 = vmul.f32 %v1834_v19, %v6054_v21  ;;  %v1845_v49 = vpop.permute.xlu0 %1844 }
 0xae3   : > { %v1912_v51 = vpack.c.bf16 %v1840_v42, %v1838_v47  ;;  %v1843_v58 = vpop.permute.xlu1 %1842  ;;  %v1913_v45 = vpack.c.bf16 %v1841_v43, %v1839_v48  ;;  %v4353_v48 = vld [vmem:[%s5910_s0 + $0x8] sm:$0xff] }
 0xae5   : > { %1956 = vmatprep.subr.bf16.mxu0 %v1913_v45  ;;  %v1849_v46 = vpop.permute.xlu0 %1848  ;;  %v4119_v45 = vld [vmem:[#allocation20] ss:$8 sps:$4 sm:$0xff]  }
 0xae6   : > { %v1851_v63 = vsel %vm1339_vm7, %v1845_v49, %v1849_v46  ;;  %v1853_v0 = vsel %vm1339_vm7, %v1849_v46, %v1845_v49  ;;  %1957 = vmatpush1.bf16.msra.mxu0 %v1912_v51  ;;  %v1996_v49 = vpack.c.bf16 %v4353_v48, %v4353_v48  ;;  %v4354_v51 = vld [vmem:[%s5910_s0] sm:$0xff]  ;;  %s3339_s0 = sshll.u32 %s1035_s6, 4  ;;  %s6961_s0 = int_to_ptr.vmem [resolvable:$true] %s3339_s0 }
 0xae7   : > { %v1856_v32 = vmul.f32 %v1851_v63, %v6070_v35  ;;  %v1857_v1 = vmul.f32 %v1853_v0, %v6073_v36  ;;  %1958 = vmatprep.subr.bf16.mxu0 %v1915_v28  ;;  %v1847_v20 = vpop.permute.xlu1 %1846  ;;  %s5001_s7 = scalar_lea.vmem %s6961_s0, 512  ;;  %p5008_p3 = scmp.lt.s32.totalorder %s6961_s0, %s5006_s16 }
 0xae8   : > { %v1850_v21 = vsel %vm1339_vm7, %v1843_v58, %v1847_v20  ;;  %v1852_v34 = vsel %vm1339_vm7, %v1847_v20, %v1843_v58  ;;  %v1995_v58 = vpack.c.bf16 %v4354_v51, %v4354_v51  ;;  %p5002_p5 = scmp.ne.s32.totalorder %s6961_s0, %s5001_s7  ;;  %p5009_p9 = scmp.lt.s32.totalorder %s5007_s11, %s5001_s7 }
 0xae9   : > { %v1854_v4 = vmul.f32 %v1850_v21, %v6070_v35  ;;  %v1855_v5 = vmul.f32 %v1852_v34, %v6073_v36  ;;  %v1861_v61 = vpop.permute.xlu0 %1860 }
 0xaea   : > { %1959 = vmatpush1.bf16.msra.mxu0 %v1914_v26  ;;  %v2018_v46 = vsel %vm1456_vm11, %v1995_v58, 0  ;;  %p5003_p4 = pnand %p5002_p5, %p7267_p7  ;;  %p5010_p13 = por %p5009_p9, %p5008_p3 }
 0xaeb   : > { %v1916_v59 = vpack.c.bf16 %v1856_v32, %v1854_v4  ;;  %v1859_v27 = vpop.permute.xlu1 %1858  ;;  %v1917_v22 = vpack.c.bf16 %v1857_v1, %v1855_v5 }
 0xaec   : > { %p5004_p1 = pneg %p5003_p4 }
 0xaed   : > { %1960 = vmatprep.subr.bf16.mxu0 %v1917_v22  ;;  %v1865_v25 = vpop.permute.xlu0 %1864 }
 0xaee   : > { %v1867_v28 = vsel %vm1361_vm8, %v1861_v61, %v1865_v25  ;;  %v1869_v30 = vsel %vm1361_vm8, %v1865_v25, %v1861_v61  ;;  %1961 = vmatpush1.bf16.msra.mxu0 %v1916_v59  ;;  %p5011_p0 = pnand %p5010_p13, %p5004_p1 }
 0xaef   : > { %v1872_v35 = vmul.f32 %v1867_v28, %v6085_v50  ;;  %v1873_v36 = vmul.f32 %v1869_v30, %v6088_v53  ;;  %v1863_v8 = vpop.permute.xlu1 %1862 }
 0xaf0   : > { %v1866_v15 = vsel %vm1361_vm8, %v1859_v27, %v1863_v8  ;;  %v1868_v24 = vsel %vm1361_vm8, %v1863_v8, %v1859_v27 }
 0xaf1   : > { %v1870_v26 = vmul.f32 %v1866_v15, %v6085_v50  ;;  %v1871_v9 = vmul.f32 %v1868_v24, %v6088_v53  ;;  %v1877_v10 = vpop.permute.xlu0 %1876 }
 0xaf3   : > { %v1918_v11 = vpack.c.bf16 %v1872_v35, %v1870_v26  ;;  %v1875_v12 = vpop.permute.xlu1 %1874  ;;  %v1919_v13 = vpack.c.bf16 %v1873_v36, %v1871_v9 }
 0xaf5   : > { %1962 = vmatprep.subr.bf16.mxu0 %v1919_v13  ;;  %v1881_v14 = vpop.permute.xlu0 %1880  ;;  %v2086_v13 = vld [vmem:[#allocation31] sm:$0xff] }
 0xaf6   : > { %v1883_v54 = vsel %vm1383_vm9, %v1877_v10, %v1881_v14  ;;  %v1885_v56 = vsel %vm1383_vm9, %v1881_v14, %v1877_v10  ;;  %1963 = vmatpush1.bf16.msra.mxu0 %v1918_v11  ;;  %v2160_v14 = vld [vmem:[#allocation32] sm:$0xff] }
 0xaf7   : > { %v1888_v17 = vmul.f32 %v1883_v54, %v6092_v55  ;;  %v1889_v62 = vmul.f32 %v1885_v56, %v6095_v57  ;;  %v1879_v50 = vpop.permute.xlu1 %1878  ;;  %v2161_v56 = vld [vmem:[#allocation32 + $0x8] sm:$0xff] }
 0xaf8   : > { %v1882_v53 = vsel %vm1383_vm9, %v1875_v12, %v1879_v50  ;;  %v1884_v60 = vsel %vm1383_vm9, %v1879_v50, %v1875_v12  ;;  %v2163_v50 = vld [vmem:[#allocation32 + $0x18] sm:$0xff] }
 0xaf9   : > { %v1886_v23 = vmul.f32 %v1882_v53, %v6092_v55  ;;  %v1887_v29 = vmul.f32 %v1884_v60, %v6095_v57  ;;  %v1893_v31 = vpop.permute.xlu0 %1892 }
 0xafb   : > { %v1920_v33 = vpack.c.bf16 %v1888_v17, %v1886_v23  ;;  %v1891_v37 = vpop.permute.xlu1 %1890  ;;  %v1921_v7 = vpack.c.bf16 %v1889_v62, %v1887_v29  ;;  %v2162_v62 = vld [vmem:[#allocation32 + $0x10] sm:$0xff] }
 0xafd   : > { %1964 = vmatprep.subr.bf16.mxu0 %v1921_v7  ;;  %v1897_v38 = vpop.permute.xlu0 %1896 }
 0xafe   : > { %v1899_v39 = vsel %vm1405_vm10, %v1893_v31, %v1897_v38  ;;  %v1901_v40 = vsel %vm1405_vm10, %v1897_v38, %v1893_v31  ;;  %1965 = vmatpush1.bf16.msra.mxu0 %v1920_v33 }
 0xaff   : > { %v1904_v41 = vmul.f32 %v1899_v39, %v6110_v3  ;;  %v1905_v55 = vmul.f32 %v1901_v40, %v6107_v2  ;;  %v1895_v57 = vpop.permute.xlu1 %1894  ;;  %v2284_v39 = vld [vmem:[#allocation28 + $0x8] sm:$0xff]  ;;  %v2283_v40 = vld [vmem:[#allocation28] sm:$0xff] }
 0xb00   : > { %v1898_v42 = vsel %vm1405_vm10, %v1891_v37, %v1895_v57  ;;  %v1900_v43 = vsel %vm1405_vm10, %v1895_v57, %v1891_v37 }
 0xb01   : > { %v1902_v18 = vmul.f32 %v1898_v42, %v6110_v3  ;;  %v1903_v19 = vmul.f32 %v1900_v43, %v6107_v2  ;;  %v2302_v43 = vld [vmem:[#allocation29 + $0x8] sm:$0xff] }
 0xb03   : > { %v1922_v44 = vpack.c.bf16 %v1904_v41, %v1902_v18  ;;  %v1923_v47 = vpack.c.bf16 %v1905_v55, %v1903_v19  ;;  %v2301_v18 = vld [vmem:[#allocation29] sm:$0xff] }
 0xb05   : > { %1966 = vmatprep.subr.bf16.mxu0 %v1923_v47 }
 0xb06   : > { %1967 = vmatpush1.bf16.msra.mxu0 %v1922_v44 }
 0xb07   : > { %3689 = vmatprep.subr.msk.bf16.mxu0 %vm1456_vm11, %v1996_v49 }
 0xb09   : > { %1983 = vmatmul.mubr.bf16.vlgmr.msra.gmra.mrb[12].mxu0 %v4119_v45 }
 0xb0a   : > { %2024 = vmatpush1.bf16.msra.mxu0 %v2018_v46  ;;  %2055 = vmatprep.mubr.bf16.mxu0 %v5145_v16 }
 0xb0e   : > { %v1936_v3 = vpop.permute.xlu0 %1935 }
 0xb10   : > { %v1931_v2 = vpop.permute.xlu1 %1930 }
 0xb12   : > { %v2007_v0 = vpop.permute.xlu0 %2006 }
 0xb13   : > { %v3822_v20 = vadd.f32 %v2007_v0, %v1936_v3 }
 0xb14   : > { %v2002_v63 = vpop.permute.xlu1 %2001 }
 0xb15   : > { %3690 = vmatmul.mubr.msk.bf16.vlgmr.msra.gmra.mrb[12].mxu0 %vm1124_vm2, %v4122_v52  ;;  %v3818_v32 = vadd.f32 %v2002_v63, %v1931_v2 }
 0xbe8   : > { %v2057_v1 = vpop.f32.mrb[12].mxu0 }
 0xbe9   : > { %v6342_v21 = vadd.f32 %v3818_v32, %v2057_v1  ;;  %v2059_v34 = vpop.f32.mrb[13].mxu0 }
 0xbea   : > { %v6344_v4 = vadd.f32 %v3818_v32, %v2059_v34  ;;  %v2061_v5 = vpop.f32.mrb[14].mxu0 }
 0xbeb   : > { %7191 = vst [vmem:[#allocation58_spill] sm:$0xff] %v6342_v21  ;;  %v6346_v61 = vadd.f32 %v3822_v20, %v2061_v5  ;;  %v2063_v59 = vpop.f32.mrb[15].mxu0  ;;  %v2070_v35 = vmul.f32 %v6342_v21, %v6342_v21 }
 0xbec   : > { %7192 = vst [vmem:[#allocation59_spill] sm:$0xff] %v6344_v4  ;;  %v6348_v27 = vadd.f32 %v3822_v20, %v2063_v59  ;;  %v2074_v22 = vadd.f32 %v6344_v4, %v6342_v21  ;;  %v2071_v36 = vmul.f32 %v6344_v4, %v6344_v4 }
 0xbed   : > { %7193 = vst [vmem:[#allocation60_spill] sm:$0xff] %v6346_v61  ;;  %v2072_v25 = vmul.f32 %v6346_v61, %v6346_v61 }
 0xbee   : > { %7194 = vst [vmem:[#allocation61_spill] sm:$0xff] %v6348_v27  ;;  %2075 = vadd.xlane.f32.xlu1 %v2074_v22  ;;  %v2077_v28 = vadd.f32 %v6348_v27, %v6346_v61  ;;  %v2073_v30 = vmul.f32 %v6348_v27, %v6348_v27  ;;  %v2080_v15 = vadd.f32 %v2071_v36, %v2070_v35  ;;  %v4123_v22 = vld [vmem:[#allocation34] sm:$0xff]  }
 0xbf0   : > { %2078 = vadd.xlane.f32.xlu0 %v2077_v28  ;;  %v2083_v8 = vadd.f32 %v2073_v30, %v2072_v25  ;;  %v4124_v25 = vld [vmem:[#allocation34 + $0x8] sm:$0xff]   ;;  %v4125_v28 = vld [vmem:[#allocation34 + $0x10] sm:$0xff]  }
 0xbf2   : > { %2084 = vadd.xlane.f32.xlu1 %v2083_v8 }
 0xbf4   : > { %2081 = vadd.xlane.f32.xlu0 %v2080_v15 }
 0xc7b   : > { %v2076_v24 = vpop.xlane.xlu1 %2075 }
 0xc7d   : > { %v2079_v26 = vpop.xlane.xlu0 %2078 }
 0xc7e   : > { %v3813_v9 = vpack.c.bf16 %v2079_v26, %v2076_v24 }
 0xc7f   : > { %v2085_v10 = vpop.xlane.xlu1 %2084 }
 0xc80   : > { %3814 = vmatpush3.bf16.msra.mxu1 %v3813_v9 }
 0xc81   : > { %v2082_v11 = vpop.xlane.xlu0 %2081  ;;  %3815 = vmatprep.subr.bf16.mxu1 %v5142_v6 }
 0xc82   : > { %v3816_v12 = vpack.c.bf16 %v2085_v10, %v2082_v11 }
 0xc84   : > { %3817 = vmatpush3.bf16.msra.mxu1 %v3816_v12 }
 0xc87   : > { %3793 = vmatmul.mubr.msk.f32.vlgmr.msra.gmra.mrb[4].mxu1 %vm1523_vm13, %v2086_v13 }
 0xc88   : > { %3797 = vmatprep.mubr.msk.f32.mxu1 %vm1124_vm2, %v2160_v14 }
 0xd5a   : > { %v2156_v54 = vpop.f32.mrb[4].mxu1 }
 0xd5b   : > { %v3794_v17 = vpop.f32.mrb[5].mxu1  ;;  %3795 = vmatprep.subr.mxu1 %v2156_v54 }
 0xd5c   : > { %3796 = vmatpush3.msra.mxu1 %v2156_v54 }
 0xd5d   : > { %3798 = vmatmul.mubr.msk.f32.vlgmr.msra.gmra.mrb[6].mxu1 %vm1124_vm2, %v2161_v56 }
 0xd5e   : > { %3800 = vmatprep.mubr.msk.f32.mxu1 %vm1124_vm2, %v2162_v62 }
 0xd61   : > { %3801 = vmatmul.mubr.msk.f32.gmra.mrb[8].mxu1 %vm1124_vm2, %v2163_v50 }
 0xd62   : > { %2381 = vmatprep.mubr.bf16.mxu1 %v5145_v16 }
 0xe30   : > { %v3799_v6 = vpop.f32.mrb[6].mxu1 }
 0xe31   : > { %2276 = vperm.xlu1 %4116, %v3799_v6   ;;  %v2242_v53 = vpop.f32.mrb[7].mxu1  ;;  %v2262_v60 = vmul.f32 %v3799_v6, %v3799_v6 }
 0xe32   : > { %2271 = vperm.xlu0 %4117, %v2242_v53   ;;  %v2261_v23 = vmul.f32 %v2242_v53, %v2242_v53 }
 0xe34   : > { %v3802_v29 = vpop.f32.mrb[8].mxu1 }
 0xe35   : > { %v2264_v31 = vsub.f32 %v3802_v29, %v2262_v60  ;;  %v2252_v33 = vpop.f32.mrb[9].mxu1 }
 0xe36   : > { %v2263_v37 = vsub.f32 %v2252_v33, %v2261_v23 }
 0xe37   : > { %v2266_v7 = vadd.f32 1e-05, %v2264_v31 }
 0xe38   : > { %v2265_v38 = vadd.f32 1e-05, %v2263_v37 }
 0xe39   : > { %4157 = vrsqrt.f32 %v2266_v7 }
 0xe3a   : > { %4159 = vrsqrt.f32 %v2265_v38 }
 0xe43   : > { %v4158_v41 = vpop.eup %4157 }
 0xe44   : > { %v4160_v55 = vpop.eup %4159  ;;  %v2286_v57 = vmul.f32 %v4158_v41, %v2284_v39 }
 0xe45   : > { %v2285_v42 = vmul.f32 %v4160_v55, %v2283_v40 }
 0xe46   : > { %2294 = vperm.xlu0 %4117, %v2286_v57  }
 0xe47   : > { %2289 = vperm.xlu1 %4116, %v2285_v42  }
 0xe4a   : > { %2310 = vperm.xlu0 %4117, %v2302_v43  }
 0xe4b   : > { %2305 = vperm.xlu1 %4116, %v2301_v18  }
 0xeb0   : > { %v2277_v44 = vpop.permute.xlu1 %2276 }
 0xeb1   : > { %v2272_v19 = vpop.permute.xlu0 %2271  ;;  %v2281_v48 = vsub.f32 %v6346_v61, %v2277_v44  ;;  %v2282_v49 = vsub.f32 %v6348_v27, %v2277_v44 }
 0xeb2   : > { %v2279_v58 = vsub.f32 %v6342_v21, %v2272_v19  ;;  %v2280_v45 = vsub.f32 %v6344_v4, %v2272_v19 }
 0xec5   : > { %v2295_v47 = vpop.permute.xlu0 %2294 }
 0xec6   : > { %v2290_v51 = vpop.permute.xlu1 %2289  ;;  %v2299_v46 = vmul.f32 %v2295_v47, %v2281_v48  ;;  %v2300_v52 = vmul.f32 %v2295_v47, %v2282_v49 }
 0xec7   : > { %v2297_v2 = vmul.f32 %v2290_v51, %v2279_v58  ;;  %v2298_v3 = vmul.f32 %v2290_v51, %v2280_v45 }
 0xec9   : > { %v2311_v63 = vpop.permute.xlu0 %2310 }
 0xeca   : > { %v2315_v0 = vadd.f32 %v2311_v63, %v2299_v46  ;;  %v2316_v32 = vadd.f32 %v2311_v63, %v2300_v52  ;;  %v2306_v1 = vpop.permute.xlu1 %2305 }
 0xecb   : > { %v2313_v20 = vadd.f32 %v2306_v1, %v2297_v2  ;;  %v2314_v34 = vadd.f32 %v2306_v1, %v2298_v3 }
 0xecd   : > { %v2323_v5 = vpack.c.bf16 %v2315_v0, %v2313_v20  ;;  %v2324_v59 = vpack.c.bf16 %v2316_v32, %v2314_v34 }
 0xecf   : > { %2349 = vmatprep.subr.bf16.mxu1 %v2324_v59 }
 0xed0   : > { %2350 = vmatpush1.bf16.msra.mxu1 %v2323_v5 }
 0xed3   : > { %3699 = vmatmul.mubr.msk.bf16.vlgmr.msra.gmra.mrb[12].mxu1 %vm1048_vm1, %v4123_v22 }
 0xed4   : > { %2391 = vmatprep.mubr.bf16.mxu1 %v5145_v16 }
 0xedb   : > { %3700 = vmatmul.mubr.msk.bf16.gmra.mrb[16].mxu1 %vm1048_vm1, %v4124_v25 }
 0xedc   : > { %2401 = vmatprep.mubr.bf16.mxu1 %v5145_v16 }
 0xee3   : > { %3701 = vmatmul.mubr.msk.bf16.gmra.mrb[20].mxu1 %vm1048_vm1, %v4125_v28 }
 0xee4   : > { %2534 = vmatprep.mubr.bf16.mxu1 %v5145_v16 }
 0xfa6   : > { %v2383_v30 = vpop.f32.mrb[12].mxu1 }
 0xfa7   : > { %v2385_v35 = vpop.f32.mrb[13].mxu1  ;;  %v2412_v8 = vmul.f32 0.25, %v2383_v30 }
 0xfa8   : > { %v2387_v36 = vpop.f32.mrb[14].mxu1  ;;  %v2413_v26 = vmul.f32 0.25, %v2385_v35 }
 0xfa9   : > { %v2414_v15 = vmul.f32 0.25, %v2387_v36  ;;  %v2389_v24 = vpop.f32.mrb[15].mxu1 }
 0xfaa   : > { %v2415_v9 = vmul.f32 0.25, %v2389_v24 }
 0xfab   : > { %v2416_v10 = vpack.c.bf16 %v2414_v15, %v2412_v8 }
 0xfac   : > { %v2417_v11 = vpack.c.bf16 %v2415_v9, %v2413_v26 }
 0xfad   : > { %2422 = vxpose.xlu1.c.b16.start.end [1/1] (short) %v2416_v10, 128 }
 0xfae   : > { %2438 = vxpose.xlu0.c.b16.start.end [1/1] (short) %v2417_v11, 128  ;;  %v2393_v12 = vpop.f32.mrb[16].mxu1 }
 0xfaf   : > { %v2395_v13 = vpop.f32.mrb[17].mxu1 }
 0xfb0   : > { %v2397_v14 = vpop.f32.mrb[18].mxu1 }
 0xfb1   : > { %v2418_v54 = vpack.c.bf16 %v2397_v14, %v2393_v12  ;;  %v2399_v56 = vpop.f32.mrb[19].mxu1 }
 0xfb2   : > { %v2419_v17 = vpack.c.bf16 %v2399_v56, %v2395_v13 }
 0xfb4   : > { %2502 = vmatprep.subr.bf16.mxu1 %v2419_v17 }
 0xfb5   : > { %2503 = vmatpush1.bf16.msra.mxu1 %v2418_v54 }
 0xfb6   : > { %v6379_v62 = vpop.f32.mrb[20].mxu1 }
 0xfb7   : > { %7195 = vst [vmem:[#allocation62_spill] sm:$0xff] %v6379_v62  ;;  %v2405_v50 = vpop.f32.mrb[21].mxu1 }
 0xfb8   : > { %v6381_v6 = vpop.f32.mrb[22].mxu1 }
 0xfb9   : > { %7196 = vst [vmem:[#allocation63_spill] sm:$0xff] %v6381_v6  ;;  %v2409_v60 = vpop.f32.mrb[23].mxu1 }
 0xfba   : > { %v2421_v23 = vpack.c.bf16 %v2409_v60, %v2405_v50 }
 0xfbc   : > { %3239 = vmatprep.mubr.bf16.mxu0 %v2421_v23 }
0x1013   : > { %v2430_v29 = vpop.trf.xlu1 }
0x1014   : > { %3702 = vmatmul.mubr.msk.bf16.vlgmr.msra.gmra.mrb[24].mxu1 %vm1048_vm1, %v2430_v29  ;;  %v2446_v41 = vpop.trf.xlu0 }
0x1015   : > { %2544 = vmatprep.mubr.bf16.mxu1 %v5145_v16 }
0x1017   : > { %v2431_v31 = vpop.trf.xlu1 }
0x1018   : > { %v2447_v55 = vpop.trf.xlu0 }
0x101b   : > { %v2432_v33 = vpop.trf.xlu1 }
0x101c   : > { %3703 = vmatmul.mubr.msk.bf16.gmra.mrb[28].mxu1 %vm1048_vm1, %v2431_v31  ;;  %v2448_v57 = vpop.trf.xlu0 }
0x101d   : > { %2554 = vmatprep.mubr.bf16.mxu1 %v5145_v16 }
0x101f   : > { %v2433_v37 = vpop.trf.xlu1 }
0x1020   : > { %v2449_v42 = vpop.trf.xlu0 }
0x1023   : > { %v2434_v7 = vpop.trf.xlu1 }
0x1024   : > { %3704 = vmatmul.mubr.msk.bf16.gmra.mrb[32].mxu1 %vm1048_vm1, %v2432_v33  ;;  %v2450_v43 = vpop.trf.xlu0 }
0x1025   : > { %2564 = vmatprep.mubr.bf16.mxu1 %v5145_v16 }
0x1027   : > { %v2435_v38 = vpop.trf.xlu1 }
0x1028   : > { %v2451_v18 = vpop.trf.xlu0 }
0x102b   : > { %v2436_v39 = vpop.trf.xlu1 }
0x102c   : > { %3705 = vmatmul.mubr.msk.bf16.gmra.mrb[36].mxu1 %vm1048_vm1, %v2433_v37  ;;  %v2452_v19 = vpop.trf.xlu0 }
0x102d   : > { %2574 = vmatprep.mubr.bf16.mxu1 %v5145_v16 }
0x102f   : > { %v2437_v40 = vpop.trf.xlu1 }
0x1030   : > { %v2453_v44 = vpop.trf.xlu0 }
0x1034   : > { %3706 = vmatmul.mubr.msk.bf16.gmra.mrb[40].mxu1 %vm1048_vm1, %v2434_v7 }
0x1035   : > { %2584 = vmatprep.mubr.bf16.mxu1 %v5145_v16 }
0x103c   : > { %3707 = vmatmul.mubr.msk.bf16.gmra.mrb[44].mxu1 %vm1048_vm1, %v2435_v38 }
0x103d   : > { %2594 = vmatprep.mubr.bf16.mxu1 %v5145_v16 }
0x1044   : > { %3708 = vmatmul.mubr.msk.bf16.gmra.mrb[48].mxu1 %vm1048_vm1, %v2436_v39 }
0x1045   : > { %2604 = vmatprep.mubr.bf16.mxu1 %v5145_v16 }
0x104c   : > { %3709 = vmatmul.mubr.msk.bf16.gmra.mrb[52].mxu1 %vm1048_vm1, %v2437_v40 }
0x104d   : > { %2614 = vmatprep.mubr.bf16.mxu1 %v5145_v16 }
0x1054   : > { %3710 = vmatmul.mubr.msk.bf16.gmra.mrb[56].mxu1 %vm1048_vm1, %v2446_v41 }
0x1055   : > { %2624 = vmatprep.mubr.bf16.mxu1 %v5145_v16 }
0x105c   : > { %3711 = vmatmul.mubr.msk.bf16.gmra.mrb[60].mxu1 %vm1048_vm1, %v2447_v55 }
0x105d   : > { %2634 = vmatprep.mubr.bf16.mxu1 %v5145_v16 }
0x1064   : > { %3712 = vmatmul.mubr.msk.bf16.gmra.mrb[64].mxu1 %vm1048_vm1, %v2448_v57 }
0x1065   : > { %2644 = vmatprep.mubr.bf16.mxu1 %v5145_v16 }
0x106c   : > { %3713 = vmatmul.mubr.msk.bf16.gmra.mrb[68].mxu1 %vm1048_vm1, %v2449_v42 }
0x106d   : > { %2654 = vmatprep.mubr.bf16.mxu1 %v5145_v16 }
0x1074   : > { %3714 = vmatmul.mubr.msk.bf16.gmra.mrb[72].mxu1 %vm1048_vm1, %v2450_v43 }
0x1075   : > { %2664 = vmatprep.mubr.bf16.mxu1 %v5145_v16 }
0x107c   : > { %3715 = vmatmul.mubr.msk.bf16.gmra.mrb[76].mxu1 %vm1048_vm1, %v2451_v18 }
0x107d   : > { %2674 = vmatprep.mubr.bf16.mxu1 %v5145_v16 }
0x1084   : > { %3716 = vmatmul.mubr.msk.bf16.gmra.mrb[80].mxu1 %vm1048_vm1, %v2452_v19 }
0x1085   : > { %2684 = vmatprep.mubr.bf16.mxu1 %v5145_v16 }
0x108c   : > { %3717 = vmatmul.mubr.msk.bf16.gmra.mrb[84].mxu1 %vm1048_vm1, %v2453_v44 }
0x108d   : > { %3306 = vmatprep.mubr.bf16.mxu1 %v5145_v16 }
0x10e7   : > { %v6417_v47 = vpop.f32.mrb[24].mxu1 }
0x10e8   : > { %v6419_v48 = vpop.f32.mrb[25].mxu1 }
0x10e9   : > { %v6421_v49 = vpop.f32.mrb[26].mxu1  ;;  %v2695_v51 = vmax.f32 %v6417_v47, %v6419_v48 }
0x10ea   : > { %v6425_v58 = vpop.f32.mrb[27].mxu1 }
0x10eb   : > { %v2698_v45 = vmax.f32 %v6421_v49, %v6425_v58  ;;  %2696 = vmax.xlane.f32.xlu0 %v2695_v51 }
0x10ed   : > { %2699 = vmax.xlane.f32.xlu1 %v2698_v45 }
0x10ef   : > { %v6429_v46 = vpop.f32.mrb[28].mxu1 }
0x10f0   : > { %v6431_v52 = vpop.f32.mrb[29].mxu1 }
0x10f1   : > { %v6433_v16 = vpop.f32.mrb[30].mxu1  ;;  %v2701_v2 = vmax.f32 %v6429_v46, %v6431_v52 }
0x10f2   : > { %v6437_v3 = vpop.f32.mrb[31].mxu1 }
0x10f3   : > { %v2704_v63 = vmax.f32 %v6433_v16, %v6437_v3  ;;  %2702 = vmax.xlane.f32.xlu0 %v2701_v2 }
0x10f5   : > { %2705 = vmax.xlane.f32.xlu1 %v2704_v63 }
0x10f7   : > { %v6441_v0 = vpop.f32.mrb[32].mxu1 }
0x10f8   : > { %v6443_v32 = vpop.f32.mrb[33].mxu1 }
0x10f9   : > { %v6445_v1 = vpop.f32.mrb[34].mxu1  ;;  %v2707_v20 = vmax.f32 %v6441_v0, %v6443_v32 }
0x10fa   : > { %v6449_v34 = vpop.f32.mrb[35].mxu1 }
0x10fb   : > { %v2710_v5 = vmax.f32 %v6445_v1, %v6449_v34  ;;  %2708 = vmax.xlane.f32.xlu0 %v2707_v20 }
0x10fd   : > { %2711 = vmax.xlane.f32.xlu1 %v2710_v5 }
0x10ff   : > { %v6453_v59 = vpop.f32.mrb[36].mxu1 }
0x1100   : > { %v6455_v22 = vpop.f32.mrb[37].mxu1 }
0x1101   : > { %v6457_v25 = vpop.f32.mrb[38].mxu1  ;;  %v2713_v28 = vmax.f32 %v6453_v59, %v6455_v22 }
0x1102   : > { %v6461_v30 = vpop.f32.mrb[39].mxu1 }
0x1103   : > { %v2716_v35 = vmax.f32 %v6457_v25, %v6461_v30  ;;  %2714 = vmax.xlane.f32.xlu0 %v2713_v28 }
0x1105   : > { %2717 = vmax.xlane.f32.xlu1 %v2716_v35 }
0x1107   : > { %v6465_v36 = vpop.f32.mrb[40].mxu1 }
0x1108   : > { %v6467_v8 = vpop.f32.mrb[41].mxu1 }
0x1109   : > { %v6469_v15 = vpop.f32.mrb[42].mxu1  ;;  %v2719_v24 = vmax.f32 %v6465_v36, %v6467_v8 }
0x110a   : > { %v6473_v26 = vpop.f32.mrb[43].mxu1 }
0x110b   : > { %v2722_v9 = vmax.f32 %v6469_v15, %v6473_v26  ;;  %2720 = vmax.xlane.f32.xlu0 %v2719_v24 }
0x110d   : > { %2723 = vmax.xlane.f32.xlu1 %v2722_v9 }
0x110f   : > { %v6477_v10 = vpop.f32.mrb[44].mxu1 }
0x1110   : > { %v6479_v11 = vpop.f32.mrb[45].mxu1 }
0x1111   : > { %v6481_v12 = vpop.f32.mrb[46].mxu1  ;;  %v2725_v13 = vmax.f32 %v6477_v10, %v6479_v11 }
0x1112   : > { %v6485_v14 = vpop.f32.mrb[47].mxu1 }
0x1113   : > { %v2728_v54 = vmax.f32 %v6481_v12, %v6485_v14  ;;  %2726 = vmax.xlane.f32.xlu0 %v2725_v13 }
0x1115   : > { %2729 = vmax.xlane.f32.xlu1 %v2728_v54 }
0x1117   : > { %v6489_v56 = vpop.f32.mrb[48].mxu1 }
0x1118   : > { %v6491_v17 = vpop.f32.mrb[49].mxu1 }
0x1119   : > { %v2731_v50 = vmax.f32 %v6489_v56, %v6491_v17  ;;  %v6495_v60 = vpop.f32.mrb[50].mxu1 }
0x111a   : > { %v6497_v23 = vpop.f32.mrb[51].mxu1 }
0x111b   : > { %v2734_v29 = vmax.f32 %v6495_v60, %v6497_v23  ;;  %2732 = vmax.xlane.f32.xlu0 %v2731_v50 }
0x111d   : > { %2735 = vmax.xlane.f32.xlu1 %v2734_v29 }
0x111f   : > { %v6501_v31 = vpop.f32.mrb[52].mxu1 }
0x1120   : > { %v6503_v33 = vpop.f32.mrb[53].mxu1 }
0x1121   : > { %v2737_v37 = vmax.f32 %v6501_v31, %v6503_v33  ;;  %v6507_v7 = vpop.f32.mrb[54].mxu1 }
0x1122   : > { %v6509_v38 = vpop.f32.mrb[55].mxu1 }
0x1123   : > { %v2740_v39 = vmax.f32 %v6507_v7, %v6509_v38  ;;  %2738 = vmax.xlane.f32.xlu0 %v2737_v37 }
0x1125   : > { %2741 = vmax.xlane.f32.xlu1 %v2740_v39 }
0x1127   : > { %v6513_v40 = vpop.f32.mrb[56].mxu1 }
0x1128   : > { %v6515_v41 = vpop.f32.mrb[57].mxu1 }
0x1129   : > { %v2743_v55 = vmax.f32 %v6513_v40, %v6515_v41  ;;  %v6519_v57 = vpop.f32.mrb[58].mxu1 }
0x112a   : > { %v6521_v42 = vpop.f32.mrb[59].mxu1 }
0x112b   : > { %7197 = vst [vmem:[#allocation64_spill] sm:$0xff] %v6521_v42  ;;  %v2746_v43 = vmax.f32 %v6519_v57, %v6521_v42  ;;  %2744 = vmax.xlane.f32.xlu0 %v2743_v55 }
0x112d   : > { %2747 = vmax.xlane.f32.xlu1 %v2746_v43 }
0x112f   : > { %v6525_v18 = vpop.f32.mrb[60].mxu1 }
0x1130   : > { %7198 = vst [vmem:[#allocation65_spill] sm:$0xff] %v6525_v18  ;;  %v6527_v19 = vpop.f32.mrb[61].mxu1 }
0x1131   : > { %7199 = vst [vmem:[#allocation66_spill] sm:$0xff] %v6527_v19  ;;  %v2749_v44 = vmax.f32 %v6525_v18, %v6527_v19  ;;  %v6531_v51 = vpop.f32.mrb[62].mxu1 }
0x1132   : > { %7200 = vst [vmem:[#allocation67_spill] sm:$0xff] %v6531_v51  ;;  %v6533_v45 = vpop.f32.mrb[63].mxu1 }
0x1133   : > { %7201 = vst [vmem:[#allocation68_spill] sm:$0xff] %v6533_v45  ;;  %v2752_v2 = vmax.f32 %v6531_v51, %v6533_v45  ;;  %2750 = vmax.xlane.f32.xlu0 %v2749_v44 }
0x1135   : > { %2753 = vmax.xlane.f32.xlu1 %v2752_v2 }
0x1137   : > { %v6537_v63 = vpop.f32.mrb[64].mxu1 }
0x1138   : > { %7202 = vst [vmem:[#allocation69_spill] sm:$0xff] %v6537_v63  ;;  %v6539_v20 = vpop.f32.mrb[65].mxu1 }
0x1139   : > { %7203 = vst [vmem:[#allocation70_spill] sm:$0xff] %v6539_v20  ;;  %v2755_v5 = vmax.f32 %v6537_v63, %v6539_v20  ;;  %v6543_v28 = vpop.f32.mrb[66].mxu1 }
0x113a   : > { %7204 = vst [vmem:[#allocation71_spill] sm:$0xff] %v6543_v28  ;;  %v6545_v35 = vpop.f32.mrb[67].mxu1 }
0x113b   : > { %7205 = vst [vmem:[#allocation72_spill] sm:$0xff] %v6545_v35  ;;  %v2758_v24 = vmax.f32 %v6543_v28, %v6545_v35  ;;  %2756 = vmax.xlane.f32.xlu0 %v2755_v5 }
0x113d   : > { %2759 = vmax.xlane.f32.xlu1 %v2758_v24 }
0x113f   : > { %v6549_v9 = vpop.f32.mrb[68].mxu1 }
0x1140   : > { %7206 = vst [vmem:[#allocation73_spill] sm:$0xff] %v6549_v9  ;;  %v6551_v13 = vpop.f32.mrb[69].mxu1 }
0x1141   : > { %7207 = vst [vmem:[#allocation74_spill] sm:$0xff] %v6551_v13  ;;  %v2761_v54 = vmax.f32 %v6549_v9, %v6551_v13  ;;  %v6555_v50 = vpop.f32.mrb[70].mxu1 }
0x1142   : > { %7208 = vst [vmem:[#allocation75_spill] sm:$0xff] %v6555_v50  ;;  %v6557_v29 = vpop.f32.mrb[71].mxu1 }
0x1143   : > { %7209 = vst [vmem:[#allocation76_spill] sm:$0xff] %v6557_v29  ;;  %v2764_v37 = vmax.f32 %v6555_v50, %v6557_v29  ;;  %2762 = vmax.xlane.f32.xlu0 %v2761_v54 }
0x1145   : > { %2765 = vmax.xlane.f32.xlu1 %v2764_v37 }
0x1147   : > { %v6561_v39 = vpop.f32.mrb[72].mxu1 }
0x1148   : > { %v6563_v55 = vpop.f32.mrb[73].mxu1 }
0x1149   : > { %v6567_v44 = vpop.f32.mrb[74].mxu1 }
0x114a   : > { %v6569_v2 = vpop.f32.mrb[75].mxu1 }
0x114f   : > { %v6573_v24 = vpop.f32.mrb[76].mxu1 }
0x1150   : > { %v6575_v53 = vpop.f32.mrb[77].mxu1 }
0x1151   : > { %v6579_v37 = vpop.f32.mrb[78].mxu1 }
0x1152   : > { %v6581_v27 = vpop.f32.mrb[79].mxu1 }
0x1157   : > { %v6585_v61 = vpop.f32.mrb[80].mxu1 }
0x1158   : > { %v6587_v4 = vpop.f32.mrb[81].mxu1 }
0x1159   : > { %v6591_v21 = vpop.f32.mrb[82].mxu1 }
0x115a   : > { %v6593_v62 = vpop.f32.mrb[83].mxu1 }
0x115f   : > { %v6597_v6 = vpop.f32.mrb[84].mxu1 }
0x1160   : > { %v6599_v29 = vpop.f32.mrb[85].mxu1 }
0x1161   : > { %v6603_v50 = vpop.f32.mrb[86].mxu1 }
0x1162   : > { %v6605_v13 = vpop.f32.mrb[87].mxu1 }
0x1178   : > { %v2697_v9 = vpop.xlane.xlu0 %2696 }
0x1179   : > { %v2791_v35 = vsub.f32 %v6417_v47, %v2697_v9  ;;  %v2792_v28 = vsub.f32 %v6419_v48, %v2697_v9 }
0x117a   : > { %v2700_v54 = vpop.xlane.xlu1 %2699 }
0x117b   : > { %v2855_v20 = vmul.f32 1.442695, %v2791_v35  ;;  %v2857_v63 = vmul.f32 1.442695, %v2792_v28  ;;  %v2793_v45 = vsub.f32 %v6421_v49, %v2700_v54  ;;  %v2794_v51 = vsub.f32 %v6425_v58, %v2700_v54 }
0x117d   : > { %4161 = vpow2.f32 %v2855_v20  ;;  %v2859_v43 = vmul.f32 1.442695, %v2793_v45  ;;  %v2861_v19 = vmul.f32 1.442695, %v2794_v51 }
0x117e   : > { %4163 = vpow2.f32 %v2857_v63 }
0x117f   : > { %4165 = vpow2.f32 %v2859_v43 }
0x1180   : > { %4167 = vpow2.f32 %v2861_v19  ;;  %v2703_v18 = vpop.xlane.xlu0 %2702 }
0x1181   : > { %v2795_v5 = vsub.f32 %v6429_v46, %v2703_v18  ;;  %v2796_v47 = vsub.f32 %v6431_v52, %v2703_v18 }
0x1182   : > { %v2706_v42 = vpop.xlane.xlu1 %2705 }
0x1183   : > { %v2863_v48 = vmul.f32 1.442695, %v2795_v5  ;;  %v2865_v9 = vmul.f32 1.442695, %v2796_v47  ;;  %v2797_v28 = vsub.f32 %v6433_v16, %v2706_v42  ;;  %v2798_v49 = vsub.f32 %v6437_v3, %v2706_v42 }
0x1185   : > { %4169 = vpow2.f32 %v2863_v48  ;;  %v2867_v58 = vmul.f32 1.442695, %v2797_v28  ;;  %v2869_v20 = vmul.f32 1.442695, %v2798_v49  ;;  %v7210_v48 = vmax.f32 %v6561_v39, %v6563_v55 }
0x1186   : > { %4171 = vpow2.f32 %v2865_v9 }
0x1187   : > { %v6617_v51 = vpop.eup %4161  ;;  %4173 = vpow2.f32 %v2867_v58 }
0x1188   : > { %v6619_v19 = vpop.eup %4163  ;;  %4175 = vpow2.f32 %v2869_v20  ;;  %v2709_v46 = vpop.xlane.xlu0 %2708 }
0x1189   : > { %v6621_v45 = vpop.eup %4165  ;;  %v2799_v52 = vsub.f32 %v6441_v0, %v2709_v46  ;;  %v2800_v18 = vsub.f32 %v6443_v32, %v2709_v46  ;;  %v2983_v16 = vadd.f32 %v6619_v19, %v6617_v51  ;;  %v7211_v46 = vmax.f32 %v6567_v44, %v6569_v2 }
0x118a   : > { %v6627_v3 = vpop.eup %4167  ;;  %v2712_v42 = vpop.xlane.xlu1 %2711 }
0x118b   : > { %v2871_v63 = vmul.f32 1.442695, %v2799_v52  ;;  %v2873_v35 = vmul.f32 1.442695, %v2800_v18  ;;  %v2801_v43 = vsub.f32 %v6445_v1, %v2712_v42  ;;  %v2802_v5 = vsub.f32 %v6449_v34, %v2712_v42  ;;  %2984 = vadd.xlane.f32.xlu0 %v2983_v16 }
0x118c   : > { %v2986_v54 = vadd.f32 %v6627_v3, %v6621_v45 }
0x118d   : > { %4177 = vpow2.f32 %v2871_v63  ;;  %v2875_v0 = vmul.f32 1.442695, %v2801_v43  ;;  %v2877_v47 = vmul.f32 1.442695, %v2802_v5  ;;  %v7212_v5 = vmax.f32 %v6573_v24, %v6575_v53 }
0x118e   : > { %4179 = vpow2.f32 %v2873_v35  ;;  %2987 = vadd.xlane.f32.xlu1 %v2986_v54 }
0x118f   : > { %v6633_v32 = vpop.eup %4169  ;;  %4181 = vpow2.f32 %v2875_v0  ;;  %2768 = vmax.xlane.f32.xlu0 %v7210_v48 }
0x1190   : > { %v6638_v9 = vpop.eup %4171  ;;  %4183 = vpow2.f32 %v2877_v47  ;;  %v2715_v1 = vpop.xlane.xlu0 %2714 }
0x1191   : > { %v6640_v34 = vpop.eup %4173  ;;  %v2803_v28 = vsub.f32 %v6453_v59, %v2715_v1  ;;  %v2804_v49 = vsub.f32 %v6455_v22, %v2715_v1  ;;  %v2989_v58 = vadd.f32 %v6638_v9, %v6633_v32 }
0x1192   : > { %v6646_v20 = vpop.eup %4175  ;;  %2771 = vmax.xlane.f32.xlu1 %v7211_v46  ;;  %v2718_v52 = vpop.xlane.xlu1 %2717 }
0x1193   : > { %v2879_v18 = vmul.f32 1.442695, %v2803_v28  ;;  %v2881_v16 = vmul.f32 1.442695, %v2804_v49  ;;  %v2805_v42 = vsub.f32 %v6457_v25, %v2718_v52  ;;  %v2806_v63 = vsub.f32 %v6461_v30, %v2718_v52  ;;  %2990 = vadd.xlane.f32.xlu0 %v2989_v58 }
0x1194   : > { %v2992_v59 = vadd.f32 %v6646_v20, %v6640_v34  ;;  %v7213_v28 = vmax.f32 %v6579_v37, %v6581_v27 }
0x1195   : > { %4185 = vpow2.f32 %v2879_v18  ;;  %v2883_v22 = vmul.f32 1.442695, %v2805_v42  ;;  %v2885_v35 = vmul.f32 1.442695, %v2806_v63  ;;  %v7214_v63 = vmax.f32 %v6585_v61, %v6587_v4 }
0x1196   : > { %4187 = vpow2.f32 %v2881_v16  ;;  %2993 = vadd.xlane.f32.xlu1 %v2992_v59 }
0x1197   : > { %v6655_v43 = vpop.eup %4177  ;;  %4189 = vpow2.f32 %v2883_v22  ;;  %2774 = vmax.xlane.f32.xlu0 %v7212_v5 }
0x1198   : > { %v6660_v54 = vpop.eup %4179  ;;  %4191 = vpow2.f32 %v2885_v35  ;;  %v2721_v25 = vpop.xlane.xlu0 %2720 }
0x1199   : > { %v6662_v30 = vpop.eup %4181  ;;  %v2807_v0 = vsub.f32 %v6465_v36, %v2721_v25  ;;  %v2808_v47 = vsub.f32 %v6467_v8, %v2721_v25  ;;  %v2995_v48 = vadd.f32 %v6660_v54, %v6655_v43 }
0x119a   : > { %v6668_v1 = vpop.eup %4183  ;;  %2777 = vmax.xlane.f32.xlu1 %v7213_v28  ;;  %v2724_v49 = vpop.xlane.xlu1 %2723 }
0x119b   : > { %v2887_v58 = vmul.f32 1.442695, %v2807_v0  ;;  %v2889_v46 = vmul.f32 1.442695, %v2808_v47  ;;  %v2809_v52 = vsub.f32 %v6469_v15, %v2724_v49  ;;  %v2810_v18 = vsub.f32 %v6473_v26, %v2724_v49  ;;  %2996 = vadd.xlane.f32.xlu0 %v2995_v48 }
0x119c   : > { %v2998_v36 = vadd.f32 %v6668_v1, %v6662_v30  ;;  %v7215_v0 = vmax.f32 %v6591_v21, %v6593_v62 }
0x119d   : > { %4193 = vpow2.f32 %v2887_v58  ;;  %v2891_v8 = vmul.f32 1.442695, %v2809_v52  ;;  %v2893_v16 = vmul.f32 1.442695, %v2810_v18  ;;  %v7216_v18 = vmax.f32 %v6597_v6, %v6599_v29 }
0x119e   : > { %4195 = vpow2.f32 %v2889_v46  ;;  %2999 = vadd.xlane.f32.xlu1 %v2998_v36 }
0x119f   : > { %v6677_v42 = vpop.eup %4185  ;;  %4197 = vpow2.f32 %v2891_v8  ;;  %2780 = vmax.xlane.f32.xlu0 %v7214_v63 }
0x11a0   : > { %v6682_v59 = vpop.eup %4187  ;;  %4199 = vpow2.f32 %v2893_v16  ;;  %v2727_v15 = vpop.xlane.xlu0 %2726 }
0x11a1   : > { %v6684_v26 = vpop.eup %4189  ;;  %v2811_v22 = vsub.f32 %v6477_v10, %v2727_v15  ;;  %v2812_v35 = vsub.f32 %v6479_v11, %v2727_v15  ;;  %v3001_v5 = vadd.f32 %v6682_v59, %v6677_v42 }
0x11a2   : > { %v6690_v25 = vpop.eup %4191  ;;  %2783 = vmax.xlane.f32.xlu1 %v7215_v0  ;;  %v2730_v47 = vpop.xlane.xlu1 %2729 }
0x11a3   : > { %v2895_v48 = vmul.f32 1.442695, %v2811_v22  ;;  %v2897_v28 = vmul.f32 1.442695, %v2812_v35  ;;  %v2813_v49 = vsub.f32 %v6481_v12, %v2730_v47  ;;  %v2814_v58 = vsub.f32 %v6485_v14, %v2730_v47  ;;  %3002 = vadd.xlane.f32.xlu0 %v3001_v5 }
0x11a4   : > { %v3004_v10 = vadd.f32 %v6690_v25, %v6684_v26  ;;  %v7217_v22 = vmax.f32 %v6603_v50, %v6605_v13 }
0x11a5   : > { %4201 = vpow2.f32 %v2895_v48  ;;  %v2899_v11 = vmul.f32 1.442695, %v2813_v49  ;;  %v2901_v46 = vmul.f32 1.442695, %v2814_v58 }
0x11a6   : > { %4203 = vpow2.f32 %v2897_v28  ;;  %3005 = vadd.xlane.f32.xlu1 %v3004_v10 }
0x11a7   : > { %v6699_v52 = vpop.eup %4193  ;;  %4205 = vpow2.f32 %v2899_v11  ;;  %2786 = vmax.xlane.f32.xlu0 %v7216_v18 }
0x11a8   : > { %v6704_v36 = vpop.eup %4195  ;;  %4207 = vpow2.f32 %v2901_v46  ;;  %v2733_v12 = vpop.xlane.xlu0 %2732 }
0x11a9   : > { %v6706_v14 = vpop.eup %4197  ;;  %v2815_v8 = vsub.f32 %v6489_v56, %v2733_v12  ;;  %v2816_v16 = vsub.f32 %v6491_v17, %v2733_v12  ;;  %v3007_v63 = vadd.f32 %v6704_v36, %v6699_v52 }
0x11aa   : > { %v6712_v15 = vpop.eup %4199  ;;  %2789 = vmax.xlane.f32.xlu1 %v7217_v22  ;;  %v2736_v35 = vpop.xlane.xlu1 %2735 }
0x11ab   : > { %v2903_v5 = vmul.f32 1.442695, %v2815_v8  ;;  %v2905_v0 = vmul.f32 1.442695, %v2816_v16  ;;  %v2817_v47 = vsub.f32 %v6495_v60, %v2736_v35  ;;  %v2818_v48 = vsub.f32 %v6497_v23, %v2736_v35  ;;  %3008 = vadd.xlane.f32.xlu0 %v3007_v63 }
0x11ac   : > { %v3010_v56 = vadd.f32 %v6712_v15, %v6706_v14 }
0x11ad   : > { %4209 = vpow2.f32 %v2903_v5  ;;  %v2907_v17 = vmul.f32 1.442695, %v2817_v47  ;;  %v2909_v28 = vmul.f32 1.442695, %v2818_v48 }
0x11ae   : > { %4211 = vpow2.f32 %v2905_v0  ;;  %3011 = vadd.xlane.f32.xlu1 %v3010_v56 }
0x11af   : > { %v6721_v49 = vpop.eup %4201  ;;  %4213 = vpow2.f32 %v2907_v17 }
0x11b0   : > { %v6723_v58 = vpop.eup %4203  ;;  %4215 = vpow2.f32 %v2909_v28  ;;  %v2739_v10 = vpop.xlane.xlu0 %2738 }
0x11b1   : > { %v6725_v11 = vpop.eup %4205  ;;  %v2819_v60 = vsub.f32 %v6501_v31, %v2739_v10  ;;  %v2820_v23 = vsub.f32 %v6503_v33, %v2739_v10  ;;  %v3013_v46 = vadd.f32 %v6723_v58, %v6721_v49 }
0x11b2   : > { %v6731_v18 = vpop.eup %4207  ;;  %v2742_v12 = vpop.xlane.xlu1 %2741 }
0x11b3   : > { %v2911_v8 = vmul.f32 1.442695, %v2819_v60  ;;  %v2913_v16 = vmul.f32 1.442695, %v2820_v23  ;;  %v2821_v63 = vsub.f32 %v6507_v7, %v2742_v12  ;;  %v2822_v22 = vsub.f32 %v6509_v38, %v2742_v12  ;;  %3014 = vadd.xlane.f32.xlu0 %v3013_v46  ;;  %v7218_v46 = vld [vmem:[#allocation64_spill] sm:$0xff] }
0x11b4   : > { %v3016_v35 = vadd.f32 %v6731_v18, %v6725_v11 }
0x11b5   : > { %4217 = vpow2.f32 %v2911_v8  ;;  %v2915_v31 = vmul.f32 1.442695, %v2821_v63  ;;  %v2917_v5 = vmul.f32 1.442695, %v2822_v22 }
0x11b6   : > { %4219 = vpow2.f32 %v2913_v16  ;;  %3017 = vadd.xlane.f32.xlu1 %v3016_v35 }
0x11b7   : > { %v6737_v33 = vpop.eup %4209  ;;  %4221 = vpow2.f32 %v2915_v31 }
0x11b8   : > { %v6739_v0 = vpop.eup %4211  ;;  %4223 = vpow2.f32 %v2917_v5  ;;  %v2745_v47 = vpop.xlane.xlu0 %2744  ;;  %v7222_v5 = vld [vmem:[#allocation66_spill] sm:$0xff] }
0x11b9   : > { %v6741_v48 = vpop.eup %4213  ;;  %v2823_v7 = vsub.f32 %v6513_v40, %v2745_v47  ;;  %v2824_v38 = vsub.f32 %v6515_v41, %v2745_v47  ;;  %v3019_v56 = vadd.f32 %v6739_v0, %v6737_v33 }
0x11ba   : > { %v6747_v17 = vpop.eup %4215  ;;  %v2748_v28 = vpop.xlane.xlu1 %2747 }
0x11bb   : > { %v2919_v10 = vmul.f32 1.442695, %v2823_v7  ;;  %v2921_v60 = vmul.f32 1.442695, %v2824_v38  ;;  %v2825_v23 = vsub.f32 %v6519_v57, %v2748_v28  ;;  %v2826_v12 = vsub.f32 %v7218_v46, %v2748_v28  ;;  %3020 = vadd.xlane.f32.xlu0 %v3019_v56  ;;  %v7221_v57 = vld [vmem:[#allocation65_spill] sm:$0xff]  ;;  %v7225_v46 = vld [vmem:[#allocation68_spill] sm:$0xff] }
0x11bc   : > { %v3022_v8 = vadd.f32 %v6747_v17, %v6741_v48 }
0x11bd   : > { %4225 = vpow2.f32 %v2919_v10  ;;  %v2923_v40 = vmul.f32 1.442695, %v2825_v23  ;;  %v2925_v16 = vmul.f32 1.442695, %v2826_v12 }
0x11be   : > { %4227 = vpow2.f32 %v2921_v60  ;;  %3023 = vadd.xlane.f32.xlu1 %v3022_v8  ;;  %v7224_v60 = vld [vmem:[#allocation67_spill] sm:$0xff] }
0x11bf   : > { %v6753_v41 = vpop.eup %4217  ;;  %4229 = vpow2.f32 %v2923_v40 }
0x11c0   : > { %7219 = vst [vmem:[#allocation64_spill] sm:$0xff] %v6753_v41  ;;  %v6755_v63 = vpop.eup %4219  ;;  %4231 = vpow2.f32 %v2925_v16  ;;  %v2751_v22 = vpop.xlane.xlu0 %2750 }
0x11c1   : > { %v6757_v35 = vpop.eup %4221  ;;  %v2827_v31 = vsub.f32 %v7221_v57, %v2751_v22  ;;  %v2828_v47 = vsub.f32 %v7222_v5, %v2751_v22  ;;  %v3025_v7 = vadd.f32 %v6755_v63, %v6753_v41  ;;  %v7233_v41 = vld [vmem:[#allocation72_spill] sm:$0xff] }
0x11c2   : > { %7220 = vst [vmem:[#allocation77_spill] sm:$0xff] %v6757_v35  ;;  %v6763_v38 = vpop.eup %4223  ;;  %v2754_v56 = vpop.xlane.xlu1 %2753 }
0x11c3   : > { %7223 = vst [vmem:[#allocation65_spill] sm:$0xff] %v6763_v38  ;;  %v2927_v28 = vmul.f32 1.442695, %v2827_v31  ;;  %v2929_v10 = vmul.f32 1.442695, %v2828_v47  ;;  %v2829_v23 = vsub.f32 %v7224_v60, %v2754_v56  ;;  %v2830_v12 = vsub.f32 %v7225_v46, %v2754_v56  ;;  %3026 = vadd.xlane.f32.xlu0 %v3025_v7  ;;  %v7229_v47 = vld [vmem:[#allocation69_spill] sm:$0xff] }
0x11c4   : > { %v3028_v8 = vadd.f32 %v6763_v38, %v6757_v35  ;;  %v7230_v7 = vld [vmem:[#allocation70_spill] sm:$0xff] }
0x11c5   : > { %4233 = vpow2.f32 %v2927_v28  ;;  %v2931_v40 = vmul.f32 1.442695, %v2829_v23  ;;  %v2933_v16 = vmul.f32 1.442695, %v2830_v12 }
0x11c6   : > { %4235 = vpow2.f32 %v2929_v10  ;;  %3029 = vadd.xlane.f32.xlu1 %v3028_v8  ;;  %v7232_v8 = vld [vmem:[#allocation71_spill] sm:$0xff] }
0x11c7   : > { %v6769_v22 = vpop.eup %4225  ;;  %4237 = vpow2.f32 %v2931_v40 }
0x11c8   : > { %7226 = vst [vmem:[#allocation66_spill] sm:$0xff] %v6769_v22  ;;  %v6771_v57 = vpop.eup %4227  ;;  %4239 = vpow2.f32 %v2933_v16  ;;  %v2757_v31 = vpop.xlane.xlu0 %2756 }
0x11c9   : > { %7227 = vst [vmem:[#allocation67_spill] sm:$0xff] %v6771_v57  ;;  %v6773_v5 = vpop.eup %4229  ;;  %v2831_v56 = vsub.f32 %v7229_v47, %v2757_v31  ;;  %v2832_v60 = vsub.f32 %v7230_v7, %v2757_v31  ;;  %v3031_v28 = vadd.f32 %v6771_v57, %v6769_v22  ;;  %v7236_v22 = vld [vmem:[#allocation75_spill] sm:$0xff] }
0x11ca   : > { %7228 = vst [vmem:[#allocation68_spill] sm:$0xff] %v6773_v5  ;;  %v6779_v23 = vpop.eup %4231  ;;  %v2760_v10 = vpop.xlane.xlu1 %2759 }
0x11cb   : > { %7231 = vst [vmem:[#allocation69_spill] sm:$0xff] %v6779_v23  ;;  %v2935_v46 = vmul.f32 1.442695, %v2831_v56  ;;  %v2937_v12 = vmul.f32 1.442695, %v2832_v60  ;;  %v2833_v40 = vsub.f32 %v7232_v8, %v2760_v10  ;;  %v2834_v35 = vsub.f32 %v7233_v41, %v2760_v10  ;;  %3032 = vadd.xlane.f32.xlu0 %v3031_v28  ;;  %v7234_v8 = vld [vmem:[#allocation73_spill] sm:$0xff] }
0x11cc   : > { %v3034_v16 = vadd.f32 %v6779_v23, %v6773_v5  ;;  %v7235_v28 = vld [vmem:[#allocation74_spill] sm:$0xff]  ;;  %v7237_v5 = vld [vmem:[#allocation76_spill] sm:$0xff] }
0x11cd   : > { %4241 = vpow2.f32 %v2935_v46  ;;  %v2939_v47 = vmul.f32 1.442695, %v2833_v40  ;;  %v2941_v38 = vmul.f32 1.442695, %v2834_v35 }
0x11ce   : > { %4243 = vpow2.f32 %v2937_v12  ;;  %3035 = vadd.xlane.f32.xlu1 %v3034_v16 }
0x11cf   : > { %v6785_v31 = vpop.eup %4233  ;;  %4245 = vpow2.f32 %v2939_v47 }
0x11d0   : > { %v6787_v7 = vpop.eup %4235  ;;  %4247 = vpow2.f32 %v2941_v38  ;;  %v2763_v56 = vpop.xlane.xlu0 %2762 }
0x11d1   : > { %v6789_v60 = vpop.eup %4237  ;;  %v2835_v41 = vsub.f32 %v7234_v8, %v2763_v56  ;;  %v2836_v10 = vsub.f32 %v7235_v28, %v2763_v56  ;;  %v3037_v46 = vadd.f32 %v6787_v7, %v6785_v31 }
0x11d2   : > { %v6795_v40 = vpop.eup %4239  ;;  %v2766_v35 = vpop.xlane.xlu1 %2765 }
0x11d3   : > { %v2943_v12 = vmul.f32 1.442695, %v2835_v41  ;;  %v2945_v16 = vmul.f32 1.442695, %v2836_v10  ;;  %v2837_v47 = vsub.f32 %v7236_v22, %v2766_v35  ;;  %v2838_v23 = vsub.f32 %v7237_v5, %v2766_v35  ;;  %3038 = vadd.xlane.f32.xlu0 %v3037_v46 }
0x11d4   : > { %v3040_v38 = vadd.f32 %v6795_v40, %v6789_v60 }
0x11d5   : > { %4249 = vpow2.f32 %v2943_v12  ;;  %v2947_v8 = vmul.f32 1.442695, %v2837_v47  ;;  %v2949_v57 = vmul.f32 1.442695, %v2838_v23 }
0x11d6   : > { %4251 = vpow2.f32 %v2945_v16  ;;  %3041 = vadd.xlane.f32.xlu1 %v3040_v38 }
0x11d7   : > { %v6801_v56 = vpop.eup %4241  ;;  %4253 = vpow2.f32 %v2947_v8 }
0x11d8   : > { %7238 = vst [vmem:[#allocation70_spill] sm:$0xff] %v6801_v56  ;;  %v6803_v28 = vpop.eup %4243  ;;  %4255 = vpow2.f32 %v2949_v57 }
0x11d9   : > { %v6805_v41 = vpop.eup %4245  ;;  %v3043_v22 = vadd.f32 %v6803_v28, %v6801_v56 }
0x11da   : > { %7239 = vst [vmem:[#allocation71_spill] sm:$0xff] %v6805_v41  ;;  %v6809_v5 = vpop.eup %4247 }
0x11db   : > { %7240 = vst [vmem:[#allocation72_spill] sm:$0xff] %v6809_v5  ;;  %3044 = vadd.xlane.f32.xlu0 %v3043_v22  ;;  %v3046_v10 = vadd.f32 %v6809_v5, %v6805_v41 }
0x11dd   : > { %3047 = vadd.xlane.f32.xlu1 %v3046_v10 }
0x11df   : > { %v6813_v23 = vpop.eup %4249 }
0x11e0   : > { %7241 = vst [vmem:[#allocation73_spill] sm:$0xff] %v6813_v23  ;;  %v6815_v46 = vpop.eup %4251 }
0x11e1   : > { %7242 = vst [vmem:[#allocation74_spill] sm:$0xff] %v6815_v46  ;;  %v6817_v35 = vpop.eup %4253  ;;  %v3049_v57 = vadd.f32 %v6815_v46, %v6813_v23 }
0x11e2   : > { %7243 = vst [vmem:[#allocation75_spill] sm:$0xff] %v6817_v35  ;;  %v6821_v12 = vpop.eup %4255 }
0x11e3   : > { %7244 = vst [vmem:[#allocation76_spill] sm:$0xff] %v6821_v12  ;;  %3050 = vadd.xlane.f32.xlu0 %v3049_v57  ;;  %v3052_v16 = vadd.f32 %v6821_v12, %v6817_v35 }
0x11e5   : > { %3053 = vadd.xlane.f32.xlu1 %v3052_v16 }
0x1218   : > { %v2985_v47 = vpop.xlane.xlu0 %2984 }
0x1219   : > { %4257 = vrcp.f32 %v2985_v47 }
0x121b   : > { %v2988_v38 = vpop.xlane.xlu1 %2987 }
0x121c   : > { %4259 = vrcp.f32 %v2988_v38  ;;  %v2769_v8 = vpop.xlane.xlu0 %2768 }
0x121d   : > { %v2839_v22 = vsub.f32 %v6561_v39, %v2769_v8  ;;  %v2840_v10 = vsub.f32 %v6563_v55, %v2769_v8 }
0x121f   : > { %v2951_v56 = vmul.f32 1.442695, %v2839_v22  ;;  %v2953_v41 = vmul.f32 1.442695, %v2840_v10  ;;  %v2772_v5 = vpop.xlane.xlu1 %2771 }
0x1220   : > { %v2841_v23 = vsub.f32 %v6567_v44, %v2772_v5  ;;  %v2842_v57 = vsub.f32 %v6569_v2, %v2772_v5  ;;  %v2991_v46 = vpop.xlane.xlu0 %2990 }
0x1221   : > { %4261 = vpow2.f32 %v2951_v56 }
0x1222   : > { %4263 = vpow2.f32 %v2953_v41  ;;  %v2955_v16 = vmul.f32 1.442695, %v2841_v23  ;;  %v2957_v35 = vmul.f32 1.442695, %v2842_v57 }
0x1223   : > { %v4258_v47 = vpop.eup %4257  ;;  %4265 = vrcp.f32 %v2991_v46  ;;  %v2994_v38 = vpop.xlane.xlu1 %2993 }
0x1224   : > { %4267 = vpow2.f32 %v2955_v16  ;;  %v2775_v12 = vpop.xlane.xlu0 %2774  ;;  %v3112_v44 = vmul.f32 %v4258_v47, %v6619_v19  ;;  %v3111_v2 = vmul.f32 %v4258_v47, %v6617_v51 }
0x1225   : > { %4269 = vpow2.f32 %v2957_v35  ;;  %v2843_v39 = vsub.f32 %v6573_v24, %v2775_v12  ;;  %v2844_v55 = vsub.f32 %v6575_v53, %v2775_v12 }
0x1226   : > { %v4260_v8 = vpop.eup %4259  ;;  %4271 = vrcp.f32 %v2994_v38 }
0x1227   : > { %v2959_v56 = vmul.f32 1.442695, %v2843_v39  ;;  %v2961_v41 = vmul.f32 1.442695, %v2844_v55  ;;  %v2778_v5 = vpop.xlane.xlu1 %2777  ;;  %v3114_v23 = vmul.f32 %v4260_v8, %v6627_v3  ;;  %v3113_v46 = vmul.f32 %v4260_v8, %v6621_v45 }
0x1228   : > { %v2845_v22 = vsub.f32 %v6579_v37, %v2778_v5  ;;  %v2846_v35 = vsub.f32 %v6581_v27, %v2778_v5  ;;  %v2997_v24 = vpop.xlane.xlu0 %2996 }
0x1229   : > { %4273 = vpow2.f32 %v2959_v56  ;;  %v3176_v53 = vpack.c.bf16 %v3114_v23, %v3112_v44  ;;  %v3175_v12 = vpack.c.bf16 %v3113_v46, %v3111_v2 }
0x122a   : > { %4275 = vpow2.f32 %v2961_v41  ;;  %v2963_v10 = vmul.f32 1.442695, %v2845_v22  ;;  %v2965_v19 = vmul.f32 1.442695, %v2846_v35 }
0x122b   : > { %v6837_v57 = vpop.eup %4261  ;;  %4277 = vrcp.f32 %v2997_v24  ;;  %3207 = vmatprep.subr.bf16.mxu0 %v3176_v53  ;;  %v3000_v51 = vpop.xlane.xlu1 %2999 }
0x122c   : > { %v6839_v16 = vpop.eup %4263  ;;  %4279 = vpow2.f32 %v2963_v10  ;;  %3208 = vmatpush1.bf16.xpose.msra.mxu0 %v3175_v12  ;;  %v2781_v45 = vpop.xlane.xlu0 %2780 }
0x122d   : > { %v4266_v37 = vpop.eup %4265  ;;  %4281 = vpow2.f32 %v2965_v19  ;;  %v2847_v27 = vsub.f32 %v6585_v61, %v2781_v45  ;;  %v2848_v3 = vsub.f32 %v6587_v4, %v2781_v45  ;;  %v3055_v47 = vadd.f32 %v6839_v16, %v6837_v57 }
0x122e   : > { %v6845_v38 = vpop.eup %4267  ;;  %4283 = vrcp.f32 %v3000_v51  ;;  %v3116_v5 = vmul.f32 %v4266_v37, %v6638_v9  ;;  %v3115_v46 = vmul.f32 %v4266_v37, %v6633_v32 }
0x122f   : > { %v6847_v39 = vpop.eup %4269  ;;  %v2967_v55 = vmul.f32 1.442695, %v2847_v27  ;;  %v2969_v8 = vmul.f32 1.442695, %v2848_v3  ;;  %v2784_v44 = vpop.xlane.xlu1 %2783  ;;  %3056 = vadd.xlane.f32.xlu0 %v3055_v47 }
0x1230   : > { %v4272_v2 = vpop.eup %4271  ;;  %v2849_v56 = vsub.f32 %v6591_v21, %v2784_v44  ;;  %v2850_v41 = vsub.f32 %v6593_v62, %v2784_v44  ;;  %v3003_v61 = vpop.xlane.xlu0 %3002  ;;  %v3058_v4 = vadd.f32 %v6847_v39, %v6845_v38 }
0x1231   : > { %4285 = vpow2.f32 %v2967_v55  ;;  %v3118_v23 = vmul.f32 %v4272_v2, %v6646_v20  ;;  %v3117_v22 = vmul.f32 %v4272_v2, %v6640_v34 }
0x1232   : > { %4287 = vpow2.f32 %v2969_v8  ;;  %v2971_v35 = vmul.f32 1.442695, %v2849_v56  ;;  %v2973_v24 = vmul.f32 1.442695, %v2850_v41  ;;  %3059 = vadd.xlane.f32.xlu1 %v3058_v4 }
0x1233   : > { %v6857_v21 = vpop.eup %4273  ;;  %4289 = vrcp.f32 %v3003_v61  ;;  %v3178_v62 = vpack.c.bf16 %v3118_v23, %v3116_v5  ;;  %v3006_v53 = vpop.xlane.xlu1 %3005  ;;  %v3177_v12 = vpack.c.bf16 %v3117_v22, %v3115_v46 }
0x1234   : > { %v6859_v10 = vpop.eup %4275  ;;  %4291 = vpow2.f32 %v2971_v35  ;;  %v2787_v9 = vpop.xlane.xlu0 %2786 }
0x1235   : > { %v4278_v19 = vpop.eup %4277  ;;  %4293 = vpow2.f32 %v2973_v24  ;;  %3209 = vmatprep.subr.bf16.mxu0 %v3178_v62  ;;  %v2851_v32 = vsub.f32 %v6597_v6, %v2787_v9  ;;  %v2852_v34 = vsub.f32 %v6599_v29, %v2787_v9  ;;  %v3061_v20 = vadd.f32 %v6859_v10, %v6857_v21 }
0x1236   : > { %v6865_v51 = vpop.eup %4279  ;;  %4295 = vrcp.f32 %v3006_v53  ;;  %3210 = vmatpush1.bf16.xpose.msra.mxu0 %v3177_v12  ;;  %v3120_v44 = vmul.f32 %v4278_v19, %v6660_v54  ;;  %v3119_v56 = vmul.f32 %v4278_v19, %v6655_v43 }
0x1237   : > { %v6867_v45 = vpop.eup %4281  ;;  %v2975_v37 = vmul.f32 1.442695, %v2851_v32  ;;  %v2977_v27 = vmul.f32 1.442695, %v2852_v34  ;;  %3062 = vadd.xlane.f32.xlu0 %v3061_v20  ;;  %v2790_v3 = vpop.xlane.xlu1 %2789 }
0x1238   : > { %v4284_v47 = vpop.eup %4283  ;;  %v2853_v55 = vsub.f32 %v6603_v50, %v2790_v3  ;;  %v2854_v6 = vsub.f32 %v6605_v13, %v2790_v3  ;;  %v3009_v8 = vpop.xlane.xlu0 %3008  ;;  %v3064_v29 = vadd.f32 %v6867_v45, %v6865_v51 }
0x1239   : > { %4297 = vpow2.f32 %v2975_v37  ;;  %v3122_v2 = vmul.f32 %v4284_v47, %v6668_v1  ;;  %v3121_v41 = vmul.f32 %v4284_v47, %v6662_v30 }
0x123a   : > { %4299 = vpow2.f32 %v2977_v27  ;;  %v2979_v61 = vmul.f32 1.442695, %v2853_v55  ;;  %v2981_v4 = vmul.f32 1.442695, %v2854_v6  ;;  %3065 = vadd.xlane.f32.xlu1 %v3064_v29 }
0x123b   : > { %v6877_v50 = vpop.eup %4285  ;;  %4301 = vrcp.f32 %v3009_v8  ;;  %v3180_v13 = vpack.c.bf16 %v3122_v2, %v3120_v44  ;;  %v3012_v5 = vpop.xlane.xlu1 %3011  ;;  %v3179_v23 = vpack.c.bf16 %v3121_v41, %v3119_v56 }
0x123c   : > { %v6879_v46 = vpop.eup %4287  ;;  %4303 = vpow2.f32 %v2979_v61 }
0x123d   : > { %v4290_v54 = vpop.eup %4289  ;;  %4305 = vpow2.f32 %v2981_v4  ;;  %3211 = vmatprep.subr.bf16.mxu0 %v3180_v13  ;;  %v3067_v43 = vadd.f32 %v6879_v46, %v6877_v50 }
0x123e   : > { %v6883_v30 = vpop.eup %4291  ;;  %4307 = vrcp.f32 %v3012_v5  ;;  %3212 = vmatpush1.bf16.xpose.msra.mxu0 %v3179_v23  ;;  %v3124_v62 = vmul.f32 %v4290_v54, %v6682_v59  ;;  %v3123_v12 = vmul.f32 %v4290_v54, %v6677_v42 }
0x123f   : > { %v6885_v1 = vpop.eup %4293  ;;  %3068 = vadd.xlane.f32.xlu0 %v3067_v43 }
0x1240   : > { %v4296_v22 = vpop.eup %4295  ;;  %v3015_v35 = vpop.xlane.xlu0 %3014  ;;  %v3070_v24 = vadd.f32 %v6885_v1, %v6883_v30 }
0x1241   : > { %v3126_v53 = vmul.f32 %v4296_v22, %v6690_v25  ;;  %v3125_v9 = vmul.f32 %v4296_v22, %v6684_v26  ;;  %4309 = vrcp.f32 %v3015_v35 }
0x1242   : > { %3071 = vadd.xlane.f32.xlu1 %v3070_v24 }
0x1243   : > { %v6893_v19 = vpop.eup %4297  ;;  %v3182_v32 = vpack.c.bf16 %v3126_v53, %v3124_v62  ;;  %v3018_v34 = vpop.xlane.xlu1 %3017  ;;  %v3181_v20 = vpack.c.bf16 %v3125_v9, %v3123_v12  ;;  %v3254_v53 = vld [vmem:[#allocation37] sm:$0xff] }
0x1244   : > { %v6895_v37 = vpop.eup %4299  ;;  %4311 = vrcp.f32 %v3018_v34  ;;  %v7246_v34 = vld [vmem:[#allocation77_spill] sm:$0xff] }
0x1245   : > { %v4302_v27 = vpop.eup %4301  ;;  %3213 = vmatprep.subr.bf16.mxu0 %v3182_v32  ;;  %v3073_v59 = vadd.f32 %v6895_v37, %v6893_v19 }
0x1246   : > { %v6899_v25 = vpop.eup %4303  ;;  %3214 = vmatpush1.bf16.xpose.msra.mxu0 %v3181_v20  ;;  %v3128_v55 = vmul.f32 %v4302_v27, %v6704_v36  ;;  %v3127_v8 = vmul.f32 %v4302_v27, %v6699_v52 }
0x1247   : > { %v6901_v42 = vpop.eup %4305  ;;  %3074 = vadd.xlane.f32.xlu0 %v3073_v59 }
0x1248   : > { %v4308_v26 = vpop.eup %4307  ;;  %v3021_v3 = vpop.xlane.xlu0 %3020  ;;  %v3076_v47 = vadd.f32 %v6901_v42, %v6899_v25 }
0x1249   : > { %v3130_v6 = vmul.f32 %v4308_v26, %v6712_v15  ;;  %v3129_v29 = vmul.f32 %v4308_v26, %v6706_v14  ;;  %4313 = vrcp.f32 %v3021_v3 }
0x124a   : > { %3077 = vadd.xlane.f32.xlu1 %v3076_v47 }
0x124b   : > { %v3184_v44 = vpack.c.bf16 %v3130_v6, %v3128_v55  ;;  %v3024_v2 = vpop.xlane.xlu1 %3023  ;;  %v3183_v56 = vpack.c.bf16 %v3129_v29, %v3127_v8  ;;  %v4310_v41 = vpop.eup %4309  ;;  %v7248_v8 = vld [vmem:[#allocation67_spill] sm:$0xff] }
0x124c   : > { %4315 = vrcp.f32 %v3024_v2  ;;  %v3132_v4 = vmul.f32 %v4310_v41, %v6723_v58  ;;  %v3131_v52 = vmul.f32 %v4310_v41, %v6721_v49  ;;  %v7250_v2 = vld [vmem:[#allocation68_spill] sm:$0xff] }
0x124d   : > { %3215 = vmatprep.subr.bf16.mxu0 %v3184_v44  ;;  %v7249_v44 = vld [vmem:[#allocation69_spill] sm:$0xff] }
0x124e   : > { %v4312_v61 = vpop.eup %4311  ;;  %3216 = vmatpush1.bf16.xpose.msra.mxu0 %v3183_v56 }
0x124f   : > { %v3134_v36 = vmul.f32 %v4312_v61, %v6731_v18  ;;  %v3133_v15 = vmul.f32 %v4312_v61, %v6725_v11  ;;  %v3255_v11 = vld [vmem:[#allocation37 + $0x8] sm:$0xff]  ;;  %v7251_v61 = vld [vmem:[#allocation66_spill] sm:$0xff] }
0x1250   : > { %v3027_v13 = vpop.xlane.xlu0 %3026 }
0x1251   : > { %v3186_v14 = vpack.c.bf16 %v3134_v36, %v3132_v4  ;;  %4317 = vrcp.f32 %v3027_v13  ;;  %v3185_v5 = vpack.c.bf16 %v3133_v15, %v3131_v52 }
0x1253   : > { %3217 = vmatprep.subr.bf16.mxu0 %v3186_v14  ;;  %v3030_v23 = vpop.xlane.xlu1 %3029  ;;  %v4314_v54 = vpop.eup %4313 }
0x1254   : > { %4319 = vrcp.f32 %v3030_v23  ;;  %v3136_v22 = vmul.f32 %v4314_v54, %v6739_v0  ;;  %v3135_v24 = vmul.f32 %v4314_v54, %v6737_v33  ;;  %v7247_v33 = vld [vmem:[#allocation64_spill] sm:$0xff] }
0x1256   : > { %v4316_v43 = vpop.eup %4315  ;;  %3218 = vmatpush1.bf16.xpose.msra.mxu0 %v3185_v5 }
0x1257   : > { %v3138_v58 = vmul.f32 %v4316_v43, %v6747_v17  ;;  %v3137_v18 = vmul.f32 %v4316_v43, %v6741_v48  ;;  %v7245_v17 = vld [vmem:[#allocation65_spill] sm:$0xff] }
0x1258   : > { %v3033_v35 = vpop.xlane.xlu0 %3032 }
0x1259   : > { %v3188_v49 = vpack.c.bf16 %v3138_v58, %v3136_v22  ;;  %4321 = vrcp.f32 %v3033_v35  ;;  %v3187_v62 = vpack.c.bf16 %v3137_v18, %v3135_v24 }
0x125b   : > { %3263 = vperm.xlu1 %4116, %v3255_v11   ;;  %3219 = vmatprep.subr.bf16.mxu0 %v3188_v49  ;;  %v3036_v12 = vpop.xlane.xlu1 %3035  ;;  %v4318_v9 = vpop.eup %4317 }
0x125c   : > { %4323 = vrcp.f32 %v3036_v12  ;;  %v3140_v0 = vmul.f32 %v4318_v9, %v6755_v63  ;;  %v3139_v59 = vmul.f32 %v4318_v9, %v7247_v33 }
0x125d   : > { %3258 = vperm.xlu0 %4117, %v3254_v53   ;;  %v7253_v53 = vld [vmem:[#allocation71_spill] sm:$0xff] }
0x125e   : > { %v4320_v32 = vpop.eup %4319  ;;  %3220 = vmatpush1.bf16.xpose.msra.mxu0 %v3187_v62  ;;  %v7252_v62 = vld [vmem:[#allocation72_spill] sm:$0xff] }
0x125f   : > { %v3142_v48 = vmul.f32 %v4320_v32, %v7245_v17  ;;  %v3141_v20 = vmul.f32 %v4320_v32, %v7246_v34  ;;  %v7255_v17 = vld [vmem:[#allocation74_spill] sm:$0xff]  ;;  %v7256_v34 = vld [vmem:[#allocation76_spill] sm:$0xff] }
0x1260   : > { %v3039_v27 = vpop.xlane.xlu0 %3038 }
0x1261   : > { %v3190_v26 = vpack.c.bf16 %v3142_v48, %v3140_v0  ;;  %4325 = vrcp.f32 %v3039_v27  ;;  %v3189_v3 = vpack.c.bf16 %v3141_v20, %v3139_v59  ;;  %v7257_v27 = vld [vmem:[#allocation75_spill] sm:$0xff] }
0x1263   : > { %3221 = vmatprep.subr.bf16.mxu0 %v3190_v26  ;;  %v3042_v47 = vpop.xlane.xlu1 %3041  ;;  %v4322_v55 = vpop.eup %4321 }
0x1264   : > { %4327 = vrcp.f32 %v3042_v47  ;;  %v3144_v29 = vmul.f32 %v4322_v55, %v7248_v8  ;;  %v3143_v4 = vmul.f32 %v4322_v55, %v7251_v61 }
0x1266   : > { %v4324_v6 = vpop.eup %4323  ;;  %3222 = vmatpush1.bf16.xpose.msra.mxu0 %v3189_v3 }
0x1267   : > { %v3146_v63 = vmul.f32 %v4324_v6, %v7249_v44  ;;  %v3145_v56 = vmul.f32 %v4324_v6, %v7250_v2 }
0x1268   : > { %v3045_v41 = vpop.xlane.xlu0 %3044 }
0x1269   : > { %4329 = vrcp.f32 %v3045_v41  ;;  %v3192_v36 = vpack.c.bf16 %v3146_v63, %v3144_v29  ;;  %v3191_v13 = vpack.c.bf16 %v3145_v56, %v3143_v4 }
0x126a   : > { %v3048_v15 = vpop.xlane.xlu1 %3047 }
0x126b   : > { %3223 = vmatprep.subr.bf16.mxu0 %v3192_v36  ;;  %4331 = vrcp.f32 %v3048_v15  ;;  %v4326_v52 = vpop.eup %4325 }
0x126c   : > { %v3148_v5 = vmul.f32 %v4326_v52, %v6787_v7  ;;  %v3147_v22 = vmul.f32 %v4326_v52, %v6785_v31 }
0x126e   : > { %v4328_v14 = vpop.eup %4327  ;;  %3224 = vmatpush1.bf16.xpose.msra.mxu0 %v3191_v13 }
0x126f   : > { %v3150_v23 = vmul.f32 %v4328_v14, %v6795_v40  ;;  %v3149_v54 = vmul.f32 %v4328_v14, %v6789_v60  ;;  %v7254_v60 = vld [vmem:[#allocation70_spill] sm:$0xff] }
0x1270   : > { %v3051_v43 = vpop.xlane.xlu0 %3050 }
0x1271   : > { %4333 = vrcp.f32 %v3051_v43  ;;  %v3194_v58 = vpack.c.bf16 %v3150_v23, %v3148_v5  ;;  %v3193_v35 = vpack.c.bf16 %v3149_v54, %v3147_v22 }
0x1272   : > { %v3054_v18 = vpop.xlane.xlu1 %3053 }
0x1273   : > { %v4330_v11 = vpop.eup %4329  ;;  %3225 = vmatprep.subr.bf16.mxu0 %v3194_v58  ;;  %4335 = vrcp.f32 %v3054_v18 }
0x1274   : > { %v3152_v49 = vmul.f32 %v4330_v11, %v6803_v28  ;;  %v3151_v9 = vmul.f32 %v4330_v11, %v7254_v60  ;;  %v7258_v28 = vld [vmem:[#allocation73_spill] sm:$0xff] }
0x1275   : > { %v4332_v24 = vpop.eup %4331 }
0x1276   : > { %3226 = vmatpush1.bf16.xpose.msra.mxu0 %v3193_v35  ;;  %v3154_v7 = vmul.f32 %v4332_v24, %v7252_v62  ;;  %v3153_v40 = vmul.f32 %v4332_v24, %v7253_v53 }
0x1278   : > { %v3196_v12 = vpack.c.bf16 %v3154_v7, %v3152_v49  ;;  %v3195_v31 = vpack.c.bf16 %v3153_v40, %v3151_v9 }
0x127a   : > { %3227 = vmatprep.subr.bf16.mxu0 %v3196_v12 }
0x127b   : > { %v4334_v32 = vpop.eup %4333 }
0x127c   : > { %v3156_v48 = vmul.f32 %v4334_v32, %v7255_v17  ;;  %v3155_v26 = vmul.f32 %v4334_v32, %v7258_v28  ;;  %v7263_v28 = vld [vmem:[#allocation59_spill] sm:$0xff] }
0x127d   : > { %v4336_v0 = vpop.eup %4335 }
0x127e   : > { %3228 = vmatpush1.bf16.xpose.msra.mxu0 %v3195_v31  ;;  %v3158_v20 = vmul.f32 %v4336_v0, %v7256_v34  ;;  %v3157_v33 = vmul.f32 %v4336_v0, %v7257_v27 }
0x1280   : > { %v3198_v59 = vpack.c.bf16 %v3158_v20, %v3156_v48  ;;  %v3197_v3 = vpack.c.bf16 %v3157_v33, %v3155_v26  ;;  %v7262_v20 = vld [vmem:[#allocation58_spill] sm:$0xff] }
0x1282   : > { %3229 = vmatprep.subr.bf16.mxu0 %v3198_v59 }
0x1286   : > { %3230 = vmatpush1.bf16.xpose.msra.mxu0 %v3197_v3 }
0x12bc   : > { %v3057_v47 = vpop.xlane.xlu0 %3056 }
0x12bd   : > { %4337 = vrcp.f32 %v3057_v47  ;;  %v7264_v47 = vld [vmem:[#allocation60_spill] sm:$0xff] }
0x12bf   : > { %v3060_v55 = vpop.xlane.xlu1 %3059 }
0x12c0   : > { %4339 = vrcp.f32 %v3060_v55 }
0x12c4   : > { %v3063_v6 = vpop.xlane.xlu0 %3062 }
0x12c5   : > { %4341 = vrcp.f32 %v3063_v6  ;;  %v7265_v6 = vld [vmem:[#allocation61_spill] sm:$0xff] }
0x12c7   : > { %v3066_v8 = vpop.xlane.xlu1 %3065  ;;  %v4338_v29 = vpop.eup %4337 }
0x12c8   : > { %4343 = vrcp.f32 %v3066_v8  ;;  %v3160_v63 = vmul.f32 %v4338_v29, %v6839_v16  ;;  %v3159_v56 = vmul.f32 %v4338_v29, %v6837_v57 }
0x12ca   : > { %v4340_v44 = vpop.eup %4339 }
0x12cb   : > { %v3162_v2 = vmul.f32 %v4340_v44, %v6847_v39  ;;  %v3161_v41 = vmul.f32 %v4340_v44, %v6845_v38 }
0x12cc   : > { %v3069_v61 = vpop.xlane.xlu0 %3068 }
0x12cd   : > { %v3200_v4 = vpack.c.bf16 %v3162_v2, %v3160_v63  ;;  %v3199_v36 = vpack.c.bf16 %v3161_v41, %v3159_v56  ;;  %4345 = vrcp.f32 %v3069_v61 }
0x12cf   : > { %3231 = vmatprep.subr.bf16.mxu0 %v3200_v4  ;;  %v3072_v15 = vpop.xlane.xlu1 %3071  ;;  %v4342_v13 = vpop.eup %4341 }
0x12d0   : > { %4347 = vrcp.f32 %v3072_v15  ;;  %3232 = vmatpush1.bf16.xpose.msra.mxu0 %v3199_v36  ;;  %v3164_v14 = vmul.f32 %v4342_v13, %v6859_v10  ;;  %v3163_v39 = vmul.f32 %v4342_v13, %v6857_v21 }
0x12d2   : > { %v4344_v52 = vpop.eup %4343 }
0x12d3   : > { %v3166_v16 = vmul.f32 %v4344_v52, %v6867_v45  ;;  %v3165_v57 = vmul.f32 %v4344_v52, %v6865_v51 }
0x12d4   : > { %v3075_v5 = vpop.xlane.xlu0 %3074 }
0x12d5   : > { %v3202_v38 = vpack.c.bf16 %v3166_v16, %v3164_v14  ;;  %v3201_v23 = vpack.c.bf16 %v3165_v57, %v3163_v39  ;;  %4349 = vrcp.f32 %v3075_v5 }
0x12d7   : > { %3233 = vmatprep.subr.bf16.mxu0 %v3202_v38  ;;  %v3078_v54 = vpop.xlane.xlu1 %3077  ;;  %v4346_v43 = vpop.eup %4345 }
0x12d8   : > { %4351 = vrcp.f32 %v3078_v54  ;;  %3234 = vmatpush1.bf16.xpose.msra.mxu0 %v3201_v23  ;;  %v3168_v58 = vmul.f32 %v4346_v43, %v6879_v46  ;;  %v3167_v45 = vmul.f32 %v4346_v43, %v6877_v50  ;;  %v7259_v50 = vld [vmem:[#allocation63_spill] sm:$0xff] }
0x12da   : > { %v4348_v22 = vpop.eup %4347 }
0x12db   : > { %v3170_v10 = vmul.f32 %v4348_v22, %v6885_v1  ;;  %v3169_v21 = vmul.f32 %v4348_v22, %v6883_v30  ;;  %v7260_v30 = vld [vmem:[#allocation62_spill] sm:$0xff]  ;;  %v3264_v17 = vpop.permute.xlu1 %3263 }
0x12dc   : > { %v7261_v53 = vpack.c.bf16 %v7259_v50, %v7260_v30 }
0x12dd   : > { %v3204_v18 = vpack.c.bf16 %v3170_v10, %v3168_v58  ;;  %v3203_v51 = vpack.c.bf16 %v3169_v21, %v3167_v45 }
0x12df   : > { %3235 = vmatprep.subr.bf16.mxu0 %v3204_v18  ;;  %v4350_v35 = vpop.eup %4349 }
0x12e0   : > { %3236 = vmatpush1.bf16.xpose.msra.mxu0 %v3203_v51  ;;  %v3172_v24 = vmul.f32 %v4350_v35, %v6895_v37  ;;  %v3171_v62 = vmul.f32 %v4350_v35, %v6893_v19  ;;  %v3259_v19 = vpop.permute.xlu0 %3258 }
0x12e2   : > { %v4352_v11 = vpop.eup %4351 }
0x12e3   : > { %v3174_v49 = vmul.f32 %v4352_v11, %v6901_v42  ;;  %v3173_v46 = vmul.f32 %v4352_v11, %v6899_v25  ;;  %v4126_v42 = vld [vmem:[#allocation35] sm:$0xff]  }
0x12e5   : > { %v3206_v1 = vpack.c.bf16 %v3174_v49, %v3172_v24  ;;  %v3205_v7 = vpack.c.bf16 %v3173_v46, %v3171_v62 }
0x12e7   : > { %3237 = vmatprep.subr.bf16.mxu0 %v3206_v1 }
0x12e8   : > { %3238 = vmatpush1.bf16.xpose.msra.mxu0 %v3205_v7 }
0x12ef   : > { %3240 = vmatmul.mubr.bf16.vlgmr.msra.gmra.mrb[16].mxu0 %v7261_v53 }
0x13c2   : > { %v3241_v40 = vpop.f32.mrb[16].mxu0 }
0x13c3   : > { %v3243_v12 = vpop.f32.mrb[17].mxu0 }
0x13c4   : > { %v3245_v60 = vpop.f32.mrb[18].mxu0 }
0x13c5   : > { %v3252_v9 = vpack.c.bf16 %v3245_v60, %v3241_v40  ;;  %v3247_v37 = vpop.f32.mrb[19].mxu0 }
0x13c6   : > { %v3253_v31 = vpack.c.bf16 %v3247_v37, %v3243_v12 }
0x13c8   : > { %3274 = vmatprep.subr.bf16.mxu1 %v3253_v31 }
0x13c9   : > { %3275 = vmatpush1.bf16.msra.mxu1 %v3252_v9 }
0x13cc   : > { %3719 = vmatmul.mubr.msk.bf16.vlgmr.msra.gmra.mrb[88].mxu1 %vm1048_vm1, %v4126_v42 }
0x149f   : > { %v3308_v25 = vpop.f32.mrb[88].mxu1 }
0x14a0   : > { %v3309_v32 = vadd.f32 %v3308_v25, %v3259_v19  ;;  %v3310_v0 = vpop.f32.mrb[89].mxu1 }
0x14a1   : > { %v3311_v48 = vadd.f32 %v3310_v0, %v3259_v19  ;;  %v3312_v34 = vpop.f32.mrb[90].mxu1 }
0x14a2   : > { %v3317_v27 = vadd.f32 %v7262_v20, %v3309_v32  ;;  %v3313_v33 = vadd.f32 %v3312_v34, %v3264_v17  ;;  %v3314_v59 = vpop.f32.mrb[91].mxu1 }
0x14a3   : > { %v3318_v26 = vadd.f32 %v7263_v28, %v3311_v48  ;;  %v3315_v3 = vadd.f32 %v3314_v59, %v3264_v17 }
0x14a4   : > { %3321 = vst [vmem:[%s1035_s6] sm:$0xff] %v3317_v27  ;;  %v3319_v55 = vadd.f32 %v7264_v47, %v3313_v33 }
0x14a5   : > { %3322 = vst [vmem:[%s1035_s6 + $0x8] sm:$0xff] %v3318_v26  ;;  %v3320_v8 = vadd.f32 %v7265_v6, %v3315_v3 }
0x14a6   : > { %3323 = vst [vmem:[%s1035_s6 + $0x10] sm:$0xff] %v3319_v55 }
0x14a7   : > { %3324 = vst [vmem:[%s1035_s6 + $0x18] sm:$0xff] %v3320_v8 }
0x14a8   : > { %5014 = shalt.err (!%p5011_p0)
}
0x14a9   : > { %s5015_s6 = scalar_lea.hbm %s6968_s28, 512  ;;  %s5019_s30 = scalar_lea.hbm %s7266_s3, 1024 }
0x14aa   : > { %p5016_p2 = scmp.ne.s32.totalorder %s6968_s28, %s5015_s6  ;;  %p5020_p11 = scmp.lt.u32.totalorder %s6968_s28, %s7266_s3 }
0x14ab   : > { %p5021_p6 = scmp.lt.u32.totalorder %s5019_s30, %s5015_s6  ;;  %p5023_p5 = scmp.lt.u32.totalorder %s5015_s6, %s6968_s28 }
0x14ac   : > { %p5017_p8 = pnand %p5016_p2, %p7267_p7 }
0x14ad   : > { %p5022_p12 = por %p5021_p6, %p5020_p11 }
0x14ae   : > { %p5018_p10 = pneg %p5017_p8 }
0x14af   : > { %p5024_p4 = por %p5023_p5, %p5022_p12 }
0x14b1   : > { %p5025_p1 = pnand %p5024_p4, %p5018_p10 }
0x14b3   : > { %5028 = shalt.err (!%p5025_p1)
}
0x14b4   : > { %s5155_s11 = smov 256   ;;  %s7268_s7 = smov 16  }
0x14b5   : > { %3920 = dma.vmem_to_hbm [thread:$0]  (%p7267_p7), %s6961_s0, 512, %s6968_s28, %s3326_s29, %s5155_s11, %s5155_s11, %s7268_s7  }
0x14b6 PF: > { %s7269_s24 = sld [smem:[#allocation52_spill]]  ;;  %s7270_s10 = sld [smem:[#allocation55_spill]] }
0x14b7   : > { %p7271_p3 = scmp.ne.s32.totalorder %s7163_s5, 0 }
0x14bc   : > { %s3354_s20 = sand.u32 1, %s7269_s24   ;;  %p7272_p9 = scmp.ge.s32.totalorder %s7270_s10, 2 }
0x14bd   : > { %s3355_s6 = scalar_lea.sflag [#allocation4], %s3354_s20 }
0x14be   : > { %p3994_p13 = pnand %p7272_p9, %p7271_p3 }
0x14c0   : > { %5094 = dma.done.wait (!%p3994_p13), %s3355_s6, 512  }
0x14c1   : > { %5096 = vsyncadd (!%p3994_p13), %s3355_s6, 4294966784  ;;  %s7273_s4 = sld [smem:[#allocation53_spill]]  ;;  %s7274_s30 = sld [smem:[#allocation54_spill]] }
0x14c2   : > { %p47_p0 = scmp.ge.s32.totalorder %s5830_s25, 4   ;;  %s7275_s24 = smov %s5841_s2 }
0x14c4   :  { %49 = sbr.rel (!%p47_p0) target bundleno = 34 (0x22), region = 252 }
0x14cb   :  { %3360 = vsyncpa [#allocation3], 1 }
0x14cc   :  { %3362 = vsyncpa [#allocation3 + $0x1], 1 }
0x14cd   :  { %3363 = vsyncpa [#allocation6], 1 }
0x14ce   :  { %3364 = vsyncpa [#allocation9], 1 }
0x14cf   :  { %3365 = vsyncpa [#allocation12], 1 }
0x14d0   :  { %3366 = vsyncpa [#allocation15], 1 }
0x14d1   :  { %3367 = vsyncpa [#allocation18], 1 }
0x14d2   :  { %3368 = vsyncpa [#allocation21], 1 }
0x14d3   :  { %3369 = vsyncpa [#allocation24], 1 }
0x14d4   :  { %3370 = vsyncpa [#allocation27], 1 }
0x14d5   :  { %3371 = vsyncpa [#allocation30], 1 }
0x14d6   :  { %3372 = vsyncpa [#allocation33], 1 }
0x14d7   :  { %3373 = vsyncpa [#allocation36], 1 }
0x14d8   :  { %3374 = vsyncpa [#allocation4], 1 }
0x14d9   :  { %3376 = vsyncpa [#allocation4 + $0x1], 1 }

</bundles_post_ra>
